<compile_context>
chip_gen: v7x
topology: tpu7x:2x2x1
jax: 0.10.0
libtpu: 0.0.40
codegen_flags: <defaults>
</compile_context>

<pallas_src>
import functools

import jax
import jax.numpy as jnp
from jax.experimental import pallas as pl
from jax.experimental.pallas import tpu as pltpu


def _gcn_lstm_recurrence_kernel(gbd_ref, whcat_ref, p_ref, h0_ref, c0_ref,
                                hseq_ref, h_ref, c_ref, *, K, T, dim_hidden):
    """Serial GCN-LSTM recurrence for the whole (folded) batch.

    gbd_ref:   [K, BN, BN]   block-diagonal support matrices (BN = B*N)
    whcat_ref: [H, K*4H]     h-projection weights, concatenated over k
    p_ref:     [T, BN, 4H]   precomputed x-projection + bias, per timestep
    h0_ref:    [BN, H]       initial hidden state (batch folded)
    c0_ref:    [BN, H]       initial cell state   (batch folded)
    hseq_ref:  [BN, T*H]     per-timestep hidden outputs (lane-dense slab)
    h_ref:     [BN, H]       final hidden state
    c_ref:     [BN, H]       final cell state
    """
    H = dim_hidden

    # Hoist grid-invariant loads out of the (unrolled) time loop.
    whcat = whcat_ref[...]                       # [H, K*4H]
    gmats = [gbd_ref[k] for k in range(K)]       # K x [BN, BN]

    h = h0_ref[...]                              # [BN, H]
    c = c0_ref[...]                              # [BN, H]

    for t in range(T):
        # One MXU push computes all K h-projections; lane slices are
        # 128-aligned (4H = 128), so no relayout feeding the G matmuls.
        hw_all = jnp.dot(h, whcat, preferred_element_type=jnp.float32)   # [BN, K*4H]

        gates = p_ref[t]                                                  # [BN, 4H]
        for k in range(K):
            gates = gates + jnp.dot(
                gmats[k], hw_all[:, k * 4 * H:(k + 1) * 4 * H],
                preferred_element_type=jnp.float32)

        # sigmoid(x) == 0.5*(tanh(0.5*x)+1): one wide EUP op over i|f|o,
        # one over g -> ~half the EUP pushes of 3x sigmoid + 2x tanh.
        ifo = 0.5 * (jnp.tanh(0.5 * gates[:, :3 * H]) + 1.0)
        i = ifo[:, 0 * H:1 * H]
        f = ifo[:, 1 * H:2 * H]
        o = ifo[:, 2 * H:3 * H]
        g = jnp.tanh(gates[:, 3 * H:4 * H])

        c = f * c + i * g
        h = o * jnp.tanh(c)
        hseq_ref[:, t * H:(t + 1) * H] = h

    h_ref[...] = h
    c_ref[...] = c


def lstm_layer_pallas(G, W, b, x_seq, h0, c0, dim_hidden):
    """One GCN-LSTM layer over the whole sequence.

    The x-dependent gate contribution is precomputed with XLA (fully parallel
    over (b, t)); a single pallas_call then runs the serial h-recurrence with
    the entire batch folded into the sublane dimension.
    """
    B, T, N, C = x_seq.shape
    K = G.shape[0]
    H = dim_hidden
    din = C + H
    BN = B * N

    # Static split of W into x / h halves per support k (no concat in kernel).
    Wk = W.reshape(K, din, 4 * H)
    W_x = Wk[:, :C, :]                                        # [K, C, 4H]
    W_h = Wk[:, C:, :]                                        # [K, H, 4H]
    W_h_cat = jnp.moveaxis(W_h, 0, 1).reshape(H, K * 4 * H)   # [H, K*4H]

    # Block-diagonal supports so one matmul covers the folded batch.
    eyeB = jnp.eye(B, dtype=G.dtype)
    G_bd = jnp.einsum('ab,kij->kaibj', eyeB, G).reshape(K, BN, BN)

    # P[t, b*N+i, :] = sum_k (G[k] @ x[b,t]) @ W_x[k] + b  (single contraction,
    # no K-blown-up intermediate written to HBM).
    P = jnp.einsum('kij,btjc,kcq->tbiq', G, x_seq, W_x) + b   # [T, B, N, 4H]
    P = P.reshape(T, BN, 4 * H)

    h0f = h0.reshape(BN, H)
    c0f = c0.reshape(BN, H)

    kernel = functools.partial(_gcn_lstm_recurrence_kernel, K=K, T=T, dim_hidden=H)

    hseq_flat, h_last, c_last = pl.pallas_call(
        kernel,
        out_shape=(
            jax.ShapeDtypeStruct((BN, T * H), jnp.float32),
            jax.ShapeDtypeStruct((BN, H), jnp.float32),
            jax.ShapeDtypeStruct((BN, H), jnp.float32),
        ),
        grid_spec=pltpu.PrefetchScalarGridSpec(
            num_scalar_prefetch=0,
            grid=(1,),
            in_specs=[
                pl.BlockSpec((K, BN, BN), lambda i: (0, 0, 0)),        # G (block-diag)
                pl.BlockSpec((H, K * 4 * H), lambda i: (0, 0)),        # W_h_cat
                pl.BlockSpec((T, BN, 4 * H), lambda i: (0, 0, 0)),     # P
                pl.BlockSpec((BN, H), lambda i: (0, 0)),               # init_h
                pl.BlockSpec((BN, H), lambda i: (0, 0)),               # init_c
            ],
            out_specs=(
                pl.BlockSpec((BN, T * H), lambda i: (0, 0)),           # hseq slab
                pl.BlockSpec((BN, H), lambda i: (0, 0)),               # last h
                pl.BlockSpec((BN, H), lambda i: (0, 0)),               # last c
            ),
        ),
        compiler_params=pltpu.CompilerParams(
            dimension_semantics=("arbitrary",)),
    )(G_bd, W_h_cat, P, h0f, c0f)

    hseq = hseq_flat.reshape(B, N, T, H).transpose(0, 2, 1, 3)   # [B, T, N, H]
    h_last = h_last.reshape(B, N, H)
    c_last = c_last.reshape(B, N, H)
    return hseq, h_last, c_last


@functools.partial(jax.jit, static_argnames=("dim_hidden_list",))
def encoder_forward_pallas(G, x_seq, init_h, init_c, params, *, dim_hidden_list):
    """Mirrors Encoder.forward: stacks layers, feeding per-step hidden states upward."""
    current_inputs = x_seq
    output_h, output_c = [], []
    for i, (W, b) in enumerate(params):
        hseq, h_last, c_last = lstm_layer_pallas(
            G, W, b, current_inputs, init_h[i], init_c[i], dim_hidden_list[i])
        output_h.append(h_last)
        output_c.append(c_last)
        current_inputs = hseq
    return output_h, output_c


# ----------------------------- pure-JAX reference -----------------------------

def _gcn_ref(G, x, W, b):
    K = G.shape[0]
    supports = [jnp.einsum('ij,bjp->bip', G[k], x) for k in range(K)]
    support_cat = jnp.concatenate(supports, axis=-1)
    return jnp.einsum('bip,pq->biq', support_cat, W) + b


def _cell_ref(G, x_t, h_pre, c_pre, W, b, H):
    combined = jnp.concatenate([x_t, h_pre], axis=-1)
    gates = _gcn_ref(G, combined, W, b)
    gc_i, gc_f, gc_o, gc_g = jnp.split(gates, 4, axis=-1)
    i = jax.nn.sigmoid(gc_i)
    f = jax.nn.sigmoid(gc_f)
    o = jax.nn.sigmoid(gc_o)
    g = jnp.tanh(gc_g)
    c_t = f * c_pre + i * g
    h_t = o * jnp.tanh(c_t)
    return h_t, c_t


def encoder_forward_ref(G, x_seq, init_h, init_c, params, dim_hidden_list):
    T = x_seq.shape[1]
    current_inputs = x_seq
    output_h, output_c = [], []
    for i, (W, b) in enumerate(params):
        h, c = init_h[i], init_c[i]
        h_lst = []
        for t in range(T):
            h, c = _cell_ref(G, current_inputs[:, t], h, c, W, b, dim_hidden_list[i])
            h_lst.append(h)
        output_h.append(h)
        output_c.append(c)
        current_inputs = jnp.stack(h_lst, axis=1)
    return output_h, output_c


# ----------------------------------- main -------------------------------------

if __name__ == "__main__":
    # Small shapes consistent with the module's forward.
    B, T, N, C, H, K = 2, 8, 16, 4, 32, 3
    num_layers = 2
    dim_hidden_list = (H,) * num_layers

    key = jax.random.PRNGKey(0)
    k_g, k_x, key = jax.random.split(key, 3)

    # Inputs.
    G = jax.random.normal(k_g, (K, N, N), jnp.float32) * 0.2
    x_seq = jax.random.normal(k_x, (B, T, N, C), jnp.float32)
    init_h = [jnp.zeros((B, N, H), jnp.float32) for _ in range(num_layers)]
    init_c = [jnp.zeros((B, N, H), jnp.float32) for _ in range(num_layers)]

    # Parameters: per layer, W ~ xavier_normal([K*(din), 4H]), b = 0.
    params = []
    for i in range(num_layers):
        cur_input_dim = C if i == 0 else dim_hidden_list[i - 1]
        din = cur_input_dim + dim_hidden_list[i]
        fan_in, fan_out = K * din, 4 * dim_hidden_list[i]
        std = (2.0 / (fan_in + fan_out)) ** 0.5
        key, k_w = jax.random.split(key)
        W = std * jax.random.normal(k_w, (fan_in, fan_out), jnp.float32)
        b = jnp.zeros((1, fan_out), jnp.float32)   # kept 2-D for TPU-friendly layout
        params.append((W, b))

    out_h, out_c = encoder_forward_pallas(
        G, x_seq, init_h, init_c, params, dim_hidden_list=dim_hidden_list)
    out_h = [jax.block_until_ready(h) for h in out_h]
    out_c = [jax.block_until_ready(c) for c in out_c]

    # Verify against a pure-JAX reference of the PyTorch forward.
    ref_h, ref_c = encoder_forward_ref(G, x_seq, init_h, init_c, params, list(dim_hidden_list))
    for i in range(num_layers):
        assert jnp.allclose(out_h[i], ref_h[i], rtol=1e-4, atol=1e-4), f"h mismatch layer {i}"
        assert jnp.allclose(out_c[i], ref_c[i], rtol=1e-4, atol=1e-4), f"c mismatch layer {i}"

    print("KERNEL_OK")
</pallas_src>

<mosaic_0001>
module attributes {stable_mosaic.version = 11 : i64} {
  func.func @_gcn_lstm_recurrence_kernel(%arg0: i32, %arg1: memref<3x32x32xf32, #tpu.memory_space<vmem>>, %arg2: memref<32x384xf32, #tpu.memory_space<vmem>>, %arg3: memref<8x32x128xf32, #tpu.memory_space<vmem>>, %arg4: memref<32x32xf32, #tpu.memory_space<vmem>>, %arg5: memref<32x32xf32, #tpu.memory_space<vmem>>, %arg6: memref<32x256xf32, #tpu.memory_space<vmem>>, %arg7: memref<32x32xf32, #tpu.memory_space<vmem>>, %arg8: memref<32x32xf32, #tpu.memory_space<vmem>>) attributes {dimension_semantics = [#tpu.dimension_semantics<arbitrary>], iteration_bounds = array<i64: 1>, scalar_prefetch = 0 : i64, scratch_operands = 0 : i64, tpu.core_type = #tpu.core_type<tc>, window_params = [{pipeline_mode = #tpu.pipeline_mode<synchronous>, transform_indices = @transform_0, window_bounds = array<i64: 3, 32, 32>}, {pipeline_mode = #tpu.pipeline_mode<synchronous>, transform_indices = @transform_1, window_bounds = array<i64: 32, 384>}, {pipeline_mode = #tpu.pipeline_mode<synchronous>, transform_indices = @transform_2, window_bounds = array<i64: 8, 32, 128>}, {pipeline_mode = #tpu.pipeline_mode<synchronous>, transform_indices = @transform_3, window_bounds = array<i64: 32, 32>}, {pipeline_mode = #tpu.pipeline_mode<synchronous>, transform_indices = @transform_4, window_bounds = array<i64: 32, 32>}, {pipeline_mode = #tpu.pipeline_mode<synchronous>, transform_indices = @transform_5, window_bounds = array<i64: 32, 256>}, {pipeline_mode = #tpu.pipeline_mode<synchronous>, transform_indices = @transform_6, window_bounds = array<i64: 32, 32>}, {pipeline_mode = #tpu.pipeline_mode<synchronous>, transform_indices = @transform_7, window_bounds = array<i64: 32, 32>}]} {
    %c0 = arith.constant 0 : index
    %c0_0 = arith.constant 0 : index
    %0 = vector.load %arg2[%c0, %c0_0] : memref<32x384xf32, #tpu.memory_space<vmem>>, vector<32x384xf32>
    %c0_1 = arith.constant 0 : index
    %c0_2 = arith.constant 0 : index
    %c0_3 = arith.constant 0 : index
    %1 = vector.load %arg1[%c0_1, %c0_2, %c0_3] : memref<3x32x32xf32, #tpu.memory_space<vmem>>, vector<1x32x32xf32>
    %2 = vector.shape_cast %1 : vector<1x32x32xf32> to vector<32x32xf32>
    %c1 = arith.constant 1 : index
    %c0_4 = arith.constant 0 : index
    %c0_5 = arith.constant 0 : index
    %3 = vector.load %arg1[%c1, %c0_4, %c0_5] : memref<3x32x32xf32, #tpu.memory_space<vmem>>, vector<1x32x32xf32>
    %4 = vector.shape_cast %3 : vector<1x32x32xf32> to vector<32x32xf32>
    %c2 = arith.constant 2 : index
    %c0_6 = arith.constant 0 : index
    %c0_7 = arith.constant 0 : index
    %5 = vector.load %arg1[%c2, %c0_6, %c0_7] : memref<3x32x32xf32, #tpu.memory_space<vmem>>, vector<1x32x32xf32>
    %6 = vector.shape_cast %5 : vector<1x32x32xf32> to vector<32x32xf32>
    %c0_8 = arith.constant 0 : index
    %c0_9 = arith.constant 0 : index
    %7 = vector.load %arg4[%c0_8, %c0_9] : memref<32x32xf32, #tpu.memory_space<vmem>>, vector<32x32xf32>
    %c0_10 = arith.constant 0 : index
    %c0_11 = arith.constant 0 : index
    %8 = vector.load %arg5[%c0_10, %c0_11] : memref<32x32xf32, #tpu.memory_space<vmem>>, vector<32x32xf32>
    %cst = arith.constant dense<0.000000e+00> : vector<32x384xf32>
    %9 = tpu.matmul %7, %0, %cst {dimension_numbers = #tpu.dot_dimension_numbers<[1], [0], [0], [1], [0, 0, 1, 1], [], []>} : vector<32x32xf32>, vector<32x384xf32>, vector<32x384xf32> -> vector<32x384xf32>
    %c0_12 = arith.constant 0 : index
    %c0_13 = arith.constant 0 : index
    %c0_14 = arith.constant 0 : index
    %10 = vector.load %arg3[%c0_12, %c0_13, %c0_14] : memref<8x32x128xf32, #tpu.memory_space<vmem>>, vector<1x32x128xf32>
    %11 = vector.shape_cast %10 : vector<1x32x128xf32> to vector<32x128xf32>
    %12 = vector.extract_strided_slice %9 {offsets = [0, 0], sizes = [32, 128], strides = [1, 1]} : vector<32x384xf32> to vector<32x128xf32>
    %cst_15 = arith.constant dense<0.000000e+00> : vector<32x128xf32>
    %13 = tpu.matmul %2, %12, %cst_15 {dimension_numbers = #tpu.dot_dimension_numbers<[1], [0], [0], [1], [0, 0, 1, 1], [], []>} : vector<32x32xf32>, vector<32x128xf32>, vector<32x128xf32> -> vector<32x128xf32>
    %14 = arith.addf %11, %13 : vector<32x128xf32>
    %15 = vector.extract_strided_slice %9 {offsets = [0, 128], sizes = [32, 128], strides = [1, 1]} : vector<32x384xf32> to vector<32x128xf32>
    %cst_16 = arith.constant dense<0.000000e+00> : vector<32x128xf32>
    %16 = tpu.matmul %4, %15, %cst_16 {dimension_numbers = #tpu.dot_dimension_numbers<[1], [0], [0], [1], [0, 0, 1, 1], [], []>} : vector<32x32xf32>, vector<32x128xf32>, vector<32x128xf32> -> vector<32x128xf32>
    %17 = arith.addf %14, %16 : vector<32x128xf32>
    %18 = vector.extract_strided_slice %9 {offsets = [0, 256], sizes = [32, 128], strides = [1, 1]} : vector<32x384xf32> to vector<32x128xf32>
    %cst_17 = arith.constant dense<0.000000e+00> : vector<32x128xf32>
    %19 = tpu.matmul %6, %18, %cst_17 {dimension_numbers = #tpu.dot_dimension_numbers<[1], [0], [0], [1], [0, 0, 1, 1], [], []>} : vector<32x32xf32>, vector<32x128xf32>, vector<32x128xf32> -> vector<32x128xf32>
    %20 = arith.addf %17, %19 : vector<32x128xf32>
    %21 = vector.extract_strided_slice %20 {offsets = [0, 0], sizes = [32, 96], strides = [1, 1]} : vector<32x128xf32> to vector<32x96xf32>
    %cst_18 = arith.constant 5.000000e-01 : f32
    %22 = vector.broadcast %cst_18 : f32 to vector<32x96xf32>
    %23 = arith.mulf %22, %21 : vector<32x96xf32>
    %24 = math.tanh %23 : vector<32x96xf32>
    %cst_19 = arith.constant 1.000000e+00 : f32
    %25 = vector.broadcast %cst_19 : f32 to vector<32x96xf32>
    %26 = arith.addf %24, %25 : vector<32x96xf32>
    %cst_20 = arith.constant 5.000000e-01 : f32
    %27 = vector.broadcast %cst_20 : f32 to vector<32x96xf32>
    %28 = arith.mulf %27, %26 : vector<32x96xf32>
    %29 = vector.extract_strided_slice %28 {offsets = [0, 0], sizes = [32, 32], strides = [1, 1]} : vector<32x96xf32> to vector<32x32xf32>
    %30 = vector.extract_strided_slice %28 {offsets = [0, 32], sizes = [32, 32], strides = [1, 1]} : vector<32x96xf32> to vector<32x32xf32>
    %31 = vector.extract_strided_slice %28 {offsets = [0, 64], sizes = [32, 32], strides = [1, 1]} : vector<32x96xf32> to vector<32x32xf32>
    %32 = vector.extract_strided_slice %20 {offsets = [0, 96], sizes = [32, 32], strides = [1, 1]} : vector<32x128xf32> to vector<32x32xf32>
    %33 = math.tanh %32 : vector<32x32xf32>
    %34 = arith.mulf %30, %8 : vector<32x32xf32>
    %35 = arith.mulf %29, %33 : vector<32x32xf32>
    %36 = arith.addf %34, %35 : vector<32x32xf32>
    %37 = math.tanh %36 : vector<32x32xf32>
    %38 = arith.mulf %31, %37 : vector<32x32xf32>
    %c0_21 = arith.constant 0 : index
    %c0_22 = arith.constant 0 : index
    %39 = vector.load %arg6[%c0_21, %c0_22] : memref<32x256xf32, #tpu.memory_space<vmem>>, vector<32x32xf32>
    tpu.vector_store %arg6[%c0_21, %c0_22], %38 {strides = array<i32>} : memref<32x256xf32, #tpu.memory_space<vmem>>, vector<32x32xf32>,
    %cst_23 = arith.constant dense<0.000000e+00> : vector<32x384xf32>
    %40 = tpu.matmul %38, %0, %cst_23 {dimension_numbers = #tpu.dot_dimension_numbers<[1], [0], [0], [1], [0, 0, 1, 1], [], []>} : vector<32x32xf32>, vector<32x384xf32>, vector<32x384xf32> -> vector<32x384xf32>
    %c1_24 = arith.constant 1 : index
    %c0_25 = arith.constant 0 : index
    %c0_26 = arith.constant 0 : index
    %41 = vector.load %arg3[%c1_24, %c0_25, %c0_26] : memref<8x32x128xf32, #tpu.memory_space<vmem>>, vector<1x32x128xf32>
    %42 = vector.shape_cast %41 : vector<1x32x128xf32> to vector<32x128xf32>
    %43 = vector.extract_strided_slice %40 {offsets = [0, 0], sizes = [32, 128], strides = [1, 1]} : vector<32x384xf32> to vector<32x128xf32>
    %cst_27 = arith.constant dense<0.000000e+00> : vector<32x128xf32>
    %44 = tpu.matmul %2, %43, %cst_27 {dimension_numbers = #tpu.dot_dimension_numbers<[1], [0], [0], [1], [0, 0, 1, 1], [], []>} : vector<32x32xf32>, vector<32x128xf32>, vector<32x128xf32> -> vector<32x128xf32>
    %45 = arith.addf %42, %44 : vector<32x128xf32>
    %46 = vector.extract_strided_slice %40 {offsets = [0, 128], sizes = [32, 128], strides = [1, 1]} : vector<32x384xf32> to vector<32x128xf32>
    %cst_28 = arith.constant dense<0.000000e+00> : vector<32x128xf32>
    %47 = tpu.matmul %4, %46, %cst_28 {dimension_numbers = #tpu.dot_dimension_numbers<[1], [0], [0], [1], [0, 0, 1, 1], [], []>} : vector<32x32xf32>, vector<32x128xf32>, vector<32x128xf32> -> vector<32x128xf32>
    %48 = arith.addf %45, %47 : vector<32x128xf32>
    %49 = vector.extract_strided_slice %40 {offsets = [0, 256], sizes = [32, 128], strides = [1, 1]} : vector<32x384xf32> to vector<32x128xf32>
    %cst_29 = arith.constant dense<0.000000e+00> : vector<32x128xf32>
    %50 = tpu.matmul %6, %49, %cst_29 {dimension_numbers = #tpu.dot_dimension_numbers<[1], [0], [0], [1], [0, 0, 1, 1], [], []>} : vector<32x32xf32>, vector<32x128xf32>, vector<32x128xf32> -> vector<32x128xf32>
    %51 = arith.addf %48, %50 : vector<32x128xf32>
    %52 = vector.extract_strided_slice %51 {offsets = [0, 0], sizes = [32, 96], strides = [1, 1]} : vector<32x128xf32> to vector<32x96xf32>
    %cst_30 = arith.constant 5.000000e-01 : f32
    %53 = vector.broadcast %cst_30 : f32 to vector<32x96xf32>
    %54 = arith.mulf %53, %52 : vector<32x96xf32>
    %55 = math.tanh %54 : vector<32x96xf32>
    %cst_31 = arith.constant 1.000000e+00 : f32
    %56 = vector.broadcast %cst_31 : f32 to vector<32x96xf32>
    %57 = arith.addf %55, %56 : vector<32x96xf32>
    %cst_32 = arith.constant 5.000000e-01 : f32
    %58 = vector.broadcast %cst_32 : f32 to vector<32x96xf32>
    %59 = arith.mulf %58, %57 : vector<32x96xf32>
    %60 = vector.extract_strided_slice %59 {offsets = [0, 0], sizes = [32, 32], strides = [1, 1]} : vector<32x96xf32> to vector<32x32xf32>
    %61 = vector.extract_strided_slice %59 {offsets = [0, 32], sizes = [32, 32], strides = [1, 1]} : vector<32x96xf32> to vector<32x32xf32>
    %62 = vector.extract_strided_slice %59 {offsets = [0, 64], sizes = [32, 32], strides = [1, 1]} : vector<32x96xf32> to vector<32x32xf32>
    %63 = vector.extract_strided_slice %51 {offsets = [0, 96], sizes = [32, 32], strides = [1, 1]} : vector<32x128xf32> to vector<32x32xf32>
    %64 = math.tanh %63 : vector<32x32xf32>
    %65 = arith.mulf %61, %36 : vector<32x32xf32>
    %66 = arith.mulf %60, %64 : vector<32x32xf32>
    %67 = arith.addf %65, %66 : vector<32x32xf32>
    %68 = math.tanh %67 : vector<32x32xf32>
    %69 = arith.mulf %62, %68 : vector<32x32xf32>
    %c0_33 = arith.constant 0 : index
    %c32 = arith.constant 32 : index
    %70 = vector.load %arg6[%c0_33, %c32] : memref<32x256xf32, #tpu.memory_space<vmem>>, vector<32x32xf32>
    tpu.vector_store %arg6[%c0_33, %c32], %69 {strides = array<i32>} : memref<32x256xf32, #tpu.memory_space<vmem>>, vector<32x32xf32>,
    %cst_34 = arith.constant dense<0.000000e+00> : vector<32x384xf32>
    %71 = tpu.matmul %69, %0, %cst_34 {dimension_numbers = #tpu.dot_dimension_numbers<[1], [0], [0], [1], [0, 0, 1, 1], [], []>} : vector<32x32xf32>, vector<32x384xf32>, vector<32x384xf32> -> vector<32x384xf32>
    %c2_35 = arith.constant 2 : index
    %c0_36 = arith.constant 0 : index
    %c0_37 = arith.constant 0 : index
    %72 = vector.load %arg3[%c2_35, %c0_36, %c0_37] : memref<8x32x128xf32, #tpu.memory_space<vmem>>, vector<1x32x128xf32>
    %73 = vector.shape_cast %72 : vector<1x32x128xf32> to vector<32x128xf32>
    %74 = vector.extract_strided_slice %71 {offsets = [0, 0], sizes = [32, 128], strides = [1, 1]} : vector<32x384xf32> to vector<32x128xf32>
    %cst_38 = arith.constant dense<0.000000e+00> : vector<32x128xf32>
    %75 = tpu.matmul %2, %74, %cst_38 {dimension_numbers = #tpu.dot_dimension_numbers<[1], [0], [0], [1], [0, 0, 1, 1], [], []>} : vector<32x32xf32>, vector<32x128xf32>, vector<32x128xf32> -> vector<32x128xf32>
    %76 = arith.addf %73, %75 : vector<32x128xf32>
    %77 = vector.extract_strided_slice %71 {offsets = [0, 128], sizes = [32, 128], strides = [1, 1]} : vector<32x384xf32> to vector<32x128xf32>
    %cst_39 = arith.constant dense<0.000000e+00> : vector<32x128xf32>
    %78 = tpu.matmul %4, %77, %cst_39 {dimension_numbers = #tpu.dot_dimension_numbers<[1], [0], [0], [1], [0, 0, 1, 1], [], []>} : vector<32x32xf32>, vector<32x128xf32>, vector<32x128xf32> -> vector<32x128xf32>
    %79 = arith.addf %76, %78 : vector<32x128xf32>
    %80 = vector.extract_strided_slice %71 {offsets = [0, 256], sizes = [32, 128], strides = [1, 1]} : vector<32x384xf32> to vector<32x128xf32>
    %cst_40 = arith.constant dense<0.000000e+00> : vector<32x128xf32>
    %81 = tpu.matmul %6, %80, %cst_40 {dimension_numbers = #tpu.dot_dimension_numbers<[1], [0], [0], [1], [0, 0, 1, 1], [], []>} : vector<32x32xf32>, vector<32x128xf32>, vector<32x128xf32> -> vector<32x128xf32>
    %82 = arith.addf %79, %81 : vector<32x128xf32>
    %83 = vector.extract_strided_slice %82 {offsets = [0, 0], sizes = [32, 96], strides = [1, 1]} : vector<32x128xf32> to vector<32x96xf32>
    %cst_41 = arith.constant 5.000000e-01 : f32
    %84 = vector.broadcast %cst_41 : f32 to vector<32x96xf32>
    %85 = arith.mulf %84, %83 : vector<32x96xf32>
    %86 = math.tanh %85 : vector<32x96xf32>
    %cst_42 = arith.constant 1.000000e+00 : f32
    %87 = vector.broadcast %cst_42 : f32 to vector<32x96xf32>
    %88 = arith.addf %86, %87 : vector<32x96xf32>
    %cst_43 = arith.constant 5.000000e-01 : f32
    %89 = vector.broadcast %cst_43 : f32 to vector<32x96xf32>
    %90 = arith.mulf %89, %88 : vector<32x96xf32>
    %91 = vector.extract_strided_slice %90 {offsets = [0, 0], sizes = [32, 32], strides = [1, 1]} : vector<32x96xf32> to vector<32x32xf32>
    %92 = vector.extract_strided_slice %90 {offsets = [0, 32], sizes = [32, 32], strides = [1, 1]} : vector<32x96xf32> to vector<32x32xf32>
    %93 = vector.extract_strided_slice %90 {offsets = [0, 64], sizes = [32, 32], strides = [1, 1]} : vector<32x96xf32> to vector<32x32xf32>
    %94 = vector.extract_strided_slice %82 {offsets = [0, 96], sizes = [32, 32], strides = [1, 1]} : vector<32x128xf32> to vector<32x32xf32>
    %95 = math.tanh %94 : vector<32x32xf32>
    %96 = arith.mulf %92, %67 : vector<32x32xf32>
    %97 = arith.mulf %91, %95 : vector<32x32xf32>
    %98 = arith.addf %96, %97 : vector<32x32xf32>
    %99 = math.tanh %98 : vector<32x32xf32>
    %100 = arith.mulf %93, %99 : vector<32x32xf32>
    %c0_44 = arith.constant 0 : index
    %c64 = arith.constant 64 : index
    %101 = vector.load %arg6[%c0_44, %c64] : memref<32x256xf32, #tpu.memory_space<vmem>>, vector<32x32xf32>
    tpu.vector_store %arg6[%c0_44, %c64], %100 {strides = array<i32>} : memref<32x256xf32, #tpu.memory_space<vmem>>, vector<32x32xf32>,
    %cst_45 = arith.constant dense<0.000000e+00> : vector<32x384xf32>
    %102 = tpu.matmul %100, %0, %cst_45 {dimension_numbers = #tpu.dot_dimension_numbers<[1], [0], [0], [1], [0, 0, 1, 1], [], []>} : vector<32x32xf32>, vector<32x384xf32>, vector<32x384xf32> -> vector<32x384xf32>
    %c3 = arith.constant 3 : index
    %c0_46 = arith.constant 0 : index
    %c0_47 = arith.constant 0 : index
    %103 = vector.load %arg3[%c3, %c0_46, %c0_47] : memref<8x32x128xf32, #tpu.memory_space<vmem>>, vector<1x32x128xf32>
    %104 = vector.shape_cast %103 : vector<1x32x128xf32> to vector<32x128xf32>
    %105 = vector.extract_strided_slice %102 {offsets = [0, 0], sizes = [32, 128], strides = [1, 1]} : vector<32x384xf32> to vector<32x128xf32>
    %cst_48 = arith.constant dense<0.000000e+00> : vector<32x128xf32>
    %106 = tpu.matmul %2, %105, %cst_48 {dimension_numbers = #tpu.dot_dimension_numbers<[1], [0], [0], [1], [0, 0, 1, 1], [], []>} : vector<32x32xf32>, vector<32x128xf32>, vector<32x128xf32> -> vector<32x128xf32>
    %107 = arith.addf %104, %106 : vector<32x128xf32>
    %108 = vector.extract_strided_slice %102 {offsets = [0, 128], sizes = [32, 128], strides = [1, 1]} : vector<32x384xf32> to vector<32x128xf32>
    %cst_49 = arith.constant dense<0.000000e+00> : vector<32x128xf32>
    %109 = tpu.matmul %4, %108, %cst_49 {dimension_numbers = #tpu.dot_dimension_numbers<[1], [0], [0], [1], [0, 0, 1, 1], [], []>} : vector<32x32xf32>, vector<32x128xf32>, vector<32x128xf32> -> vector<32x128xf32>
    %110 = arith.addf %107, %109 : vector<32x128xf32>
    %111 = vector.extract_strided_slice %102 {offsets = [0, 256], sizes = [32, 128], strides = [1, 1]} : vector<32x384xf32> to vector<32x128xf32>
    %cst_50 = arith.constant dense<0.000000e+00> : vector<32x128xf32>
    %112 = tpu.matmul %6, %111, %cst_50 {dimension_numbers = #tpu.dot_dimension_numbers<[1], [0], [0], [1], [0, 0, 1, 1], [], []>} : vector<32x32xf32>, vector<32x128xf32>, vector<32x128xf32> -> vector<32x128xf32>
    %113 = arith.addf %110, %112 : vector<32x128xf32>
    %114 = vector.extract_strided_slice %113 {offsets = [0, 0], sizes = [32, 96], strides = [1, 1]} : vector<32x128xf32> to vector<32x96xf32>
    %cst_51 = arith.constant 5.000000e-01 : f32
    %115 = vector.broadcast %cst_51 : f32 to vector<32x96xf32>
    %116 = arith.mulf %115, %114 : vector<32x96xf32>
    %117 = math.tanh %116 : vector<32x96xf32>
    %cst_52 = arith.constant 1.000000e+00 : f32
    %118 = vector.broadcast %cst_52 : f32 to vector<32x96xf32>
    %119 = arith.addf %117, %118 : vector<32x96xf32>
    %cst_53 = arith.constant 5.000000e-01 : f32
    %120 = vector.broadcast %cst_53 : f32 to vector<32x96xf32>
    %121 = arith.mulf %120, %119 : vector<32x96xf32>
    %122 = vector.extract_strided_slice %121 {offsets = [0, 0], sizes = [32, 32], strides = [1, 1]} : vector<32x96xf32> to vector<32x32xf32>
    %123 = vector.extract_strided_slice %121 {offsets = [0, 32], sizes = [32, 32], strides = [1, 1]} : vector<32x96xf32> to vector<32x32xf32>
    %124 = vector.extract_strided_slice %121 {offsets = [0, 64], sizes = [32, 32], strides = [1, 1]} : vector<32x96xf32> to vector<32x32xf32>
    %125 = vector.extract_strided_slice %113 {offsets = [0, 96], sizes = [32, 32], strides = [1, 1]} : vector<32x128xf32> to vector<32x32xf32>
    %126 = math.tanh %125 : vector<32x32xf32>
    %127 = arith.mulf %123, %98 : vector<32x32xf32>
    %128 = arith.mulf %122, %126 : vector<32x32xf32>
    %129 = arith.addf %127, %128 : vector<32x32xf32>
    %130 = math.tanh %129 : vector<32x32xf32>
    %131 = arith.mulf %124, %130 : vector<32x32xf32>
    %c0_54 = arith.constant 0 : index
    %c96 = arith.constant 96 : index
    %132 = vector.load %arg6[%c0_54, %c96] : memref<32x256xf32, #tpu.memory_space<vmem>>, vector<32x32xf32>
    tpu.vector_store %arg6[%c0_54, %c96], %131 {strides = array<i32>} : memref<32x256xf32, #tpu.memory_space<vmem>>, vector<32x32xf32>,
    %cst_55 = arith.constant dense<0.000000e+00> : vector<32x384xf32>
    %133 = tpu.matmul %131, %0, %cst_55 {dimension_numbers = #tpu.dot_dimension_numbers<[1], [0], [0], [1], [0, 0, 1, 1], [], []>} : vector<32x32xf32>, vector<32x384xf32>, vector<32x384xf32> -> vector<32x384xf32>
    %c4 = arith.constant 4 : index
    %c0_56 = arith.constant 0 : index
    %c0_57 = arith.constant 0 : index
    %134 = vector.load %arg3[%c4, %c0_56, %c0_57] : memref<8x32x128xf32, #tpu.memory_space<vmem>>, vector<1x32x128xf32>
    %135 = vector.shape_cast %134 : vector<1x32x128xf32> to vector<32x128xf32>
    %136 = vector.extract_strided_slice %133 {offsets = [0, 0], sizes = [32, 128], strides = [1, 1]} : vector<32x384xf32> to vector<32x128xf32>
    %cst_58 = arith.constant dense<0.000000e+00> : vector<32x128xf32>
    %137 = tpu.matmul %2, %136, %cst_58 {dimension_numbers = #tpu.dot_dimension_numbers<[1], [0], [0], [1], [0, 0, 1, 1], [], []>} : vector<32x32xf32>, vector<32x128xf32>, vector<32x128xf32> -> vector<32x128xf32>
    %138 = arith.addf %135, %137 : vector<32x128xf32>
    %139 = vector.extract_strided_slice %133 {offsets = [0, 128], sizes = [32, 128], strides = [1, 1]} : vector<32x384xf32> to vector<32x128xf32>
    %cst_59 = arith.constant dense<0.000000e+00> : vector<32x128xf32>
    %140 = tpu.matmul %4, %139, %cst_59 {dimension_numbers = #tpu.dot_dimension_numbers<[1], [0], [0], [1], [0, 0, 1, 1], [], []>} : vector<32x32xf32>, vector<32x128xf32>, vector<32x128xf32> -> vector<32x128xf32>
    %141 = arith.addf %138, %140 : vector<32x128xf32>
    %142 = vector.extract_strided_slice %133 {offsets = [0, 256], sizes = [32, 128], strides = [1, 1]} : vector<32x384xf32> to vector<32x128xf32>
    %cst_60 = arith.constant dense<0.000000e+00> : vector<32x128xf32>
    %143 = tpu.matmul %6, %142, %cst_60 {dimension_numbers = #tpu.dot_dimension_numbers<[1], [0], [0], [1], [0, 0, 1, 1], [], []>} : vector<32x32xf32>, vector<32x128xf32>, vector<32x128xf32> -> vector<32x128xf32>
    %144 = arith.addf %141, %143 : vector<32x128xf32>
    %145 = vector.extract_strided_slice %144 {offsets = [0, 0], sizes = [32, 96], strides = [1, 1]} : vector<32x128xf32> to vector<32x96xf32>
    %cst_61 = arith.constant 5.000000e-01 : f32
    %146 = vector.broadcast %cst_61 : f32 to vector<32x96xf32>
    %147 = arith.mulf %146, %145 : vector<32x96xf32>
    %148 = math.tanh %147 : vector<32x96xf32>
    %cst_62 = arith.constant 1.000000e+00 : f32
    %149 = vector.broadcast %cst_62 : f32 to vector<32x96xf32>
    %150 = arith.addf %148, %149 : vector<32x96xf32>
    %cst_63 = arith.constant 5.000000e-01 : f32
    %151 = vector.broadcast %cst_63 : f32 to vector<32x96xf32>
    %152 = arith.mulf %151, %150 : vector<32x96xf32>
    %153 = vector.extract_strided_slice %152 {offsets = [0, 0], sizes = [32, 32], strides = [1, 1]} : vector<32x96xf32> to vector<32x32xf32>
    %154 = vector.extract_strided_slice %152 {offsets = [0, 32], sizes = [32, 32], strides = [1, 1]} : vector<32x96xf32> to vector<32x32xf32>
    %155 = vector.extract_strided_slice %152 {offsets = [0, 64], sizes = [32, 32], strides = [1, 1]} : vector<32x96xf32> to vector<32x32xf32>
    %156 = vector.extract_strided_slice %144 {offsets = [0, 96], sizes = [32, 32], strides = [1, 1]} : vector<32x128xf32> to vector<32x32xf32>
    %157 = math.tanh %156 : vector<32x32xf32>
    %158 = arith.mulf %154, %129 : vector<32x32xf32>
    %159 = arith.mulf %153, %157 : vector<32x32xf32>
    %160 = arith.addf %158, %159 : vector<32x32xf32>
    %161 = math.tanh %160 : vector<32x32xf32>
    %162 = arith.mulf %155, %161 : vector<32x32xf32>
    %c0_64 = arith.constant 0 : index
    %c128 = arith.constant 128 : index
    %163 = vector.load %arg6[%c0_64, %c128] : memref<32x256xf32, #tpu.memory_space<vmem>>, vector<32x32xf32>
    tpu.vector_store %arg6[%c0_64, %c128], %162 {strides = array<i32>} : memref<32x256xf32, #tpu.memory_space<vmem>>, vector<32x32xf32>,
    %cst_65 = arith.constant dense<0.000000e+00> : vector<32x384xf32>
    %164 = tpu.matmul %162, %0, %cst_65 {dimension_numbers = #tpu.dot_dimension_numbers<[1], [0], [0], [1], [0, 0, 1, 1], [], []>} : vector<32x32xf32>, vector<32x384xf32>, vector<32x384xf32> -> vector<32x384xf32>
    %c5 = arith.constant 5 : index
    %c0_66 = arith.constant 0 : index
    %c0_67 = arith.constant 0 : index
    %165 = vector.load %arg3[%c5, %c0_66, %c0_67] : memref<8x32x128xf32, #tpu.memory_space<vmem>>, vector<1x32x128xf32>
    %166 = vector.shape_cast %165 : vector<1x32x128xf32> to vector<32x128xf32>
    %167 = vector.extract_strided_slice %164 {offsets = [0, 0], sizes = [32, 128], strides = [1, 1]} : vector<32x384xf32> to vector<32x128xf32>
    %cst_68 = arith.constant dense<0.000000e+00> : vector<32x128xf32>
    %168 = tpu.matmul %2, %167, %cst_68 {dimension_numbers = #tpu.dot_dimension_numbers<[1], [0], [0], [1], [0, 0, 1, 1], [], []>} : vector<32x32xf32>, vector<32x128xf32>, vector<32x128xf32> -> vector<32x128xf32>
    %169 = arith.addf %166, %168 : vector<32x128xf32>
    %170 = vector.extract_strided_slice %164 {offsets = [0, 128], sizes = [32, 128], strides = [1, 1]} : vector<32x384xf32> to vector<32x128xf32>
    %cst_69 = arith.constant dense<0.000000e+00> : vector<32x128xf32>
    %171 = tpu.matmul %4, %170, %cst_69 {dimension_numbers = #tpu.dot_dimension_numbers<[1], [0], [0], [1], [0, 0, 1, 1], [], []>} : vector<32x32xf32>, vector<32x128xf32>, vector<32x128xf32> -> vector<32x128xf32>
    %172 = arith.addf %169, %171 : vector<32x128xf32>
    %173 = vector.extract_strided_slice %164 {offsets = [0, 256], sizes = [32, 128], strides = [1, 1]} : vector<32x384xf32> to vector<32x128xf32>
    %cst_70 = arith.constant dense<0.000000e+00> : vector<32x128xf32>
    %174 = tpu.matmul %6, %173, %cst_70 {dimension_numbers = #tpu.dot_dimension_numbers<[1], [0], [0], [1], [0, 0, 1, 1], [], []>} : vector<32x32xf32>, vector<32x128xf32>, vector<32x128xf32> -> vector<32x128xf32>
    %175 = arith.addf %172, %174 : vector<32x128xf32>
    %176 = vector.extract_strided_slice %175 {offsets = [0, 0], sizes = [32, 96], strides = [1, 1]} : vector<32x128xf32> to vector<32x96xf32>
    %cst_71 = arith.constant 5.000000e-01 : f32
    %177 = vector.broadcast %cst_71 : f32 to vector<32x96xf32>
    %178 = arith.mulf %177, %176 : vector<32x96xf32>
    %179 = math.tanh %178 : vector<32x96xf32>
    %cst_72 = arith.constant 1.000000e+00 : f32
    %180 = vector.broadcast %cst_72 : f32 to vector<32x96xf32>
    %181 = arith.addf %179, %180 : vector<32x96xf32>
    %cst_73 = arith.constant 5.000000e-01 : f32
    %182 = vector.broadcast %cst_73 : f32 to vector<32x96xf32>
    %183 = arith.mulf %182, %181 : vector<32x96xf32>
    %184 = vector.extract_strided_slice %183 {offsets = [0, 0], sizes = [32, 32], strides = [1, 1]} : vector<32x96xf32> to vector<32x32xf32>
    %185 = vector.extract_strided_slice %183 {offsets = [0, 32], sizes = [32, 32], strides = [1, 1]} : vector<32x96xf32> to vector<32x32xf32>
    %186 = vector.extract_strided_slice %183 {offsets = [0, 64], sizes = [32, 32], strides = [1, 1]} : vector<32x96xf32> to vector<32x32xf32>
    %187 = vector.extract_strided_slice %175 {offsets = [0, 96], sizes = [32, 32], strides = [1, 1]} : vector<32x128xf32> to vector<32x32xf32>
    %188 = math.tanh %187 : vector<32x32xf32>
    %189 = arith.mulf %185, %160 : vector<32x32xf32>
    %190 = arith.mulf %184, %188 : vector<32x32xf32>
    %191 = arith.addf %189, %190 : vector<32x32xf32>
    %192 = math.tanh %191 : vector<32x32xf32>
    %193 = arith.mulf %186, %192 : vector<32x32xf32>
    %c0_74 = arith.constant 0 : index
    %c160 = arith.constant 160 : index
    %194 = vector.load %arg6[%c0_74, %c160] : memref<32x256xf32, #tpu.memory_space<vmem>>, vector<32x32xf32>
    tpu.vector_store %arg6[%c0_74, %c160], %193 {strides = array<i32>} : memref<32x256xf32, #tpu.memory_space<vmem>>, vector<32x32xf32>,
    %cst_75 = arith.constant dense<0.000000e+00> : vector<32x384xf32>
    %195 = tpu.matmul %193, %0, %cst_75 {dimension_numbers = #tpu.dot_dimension_numbers<[1], [0], [0], [1], [0, 0, 1, 1], [], []>} : vector<32x32xf32>, vector<32x384xf32>, vector<32x384xf32> -> vector<32x384xf32>
    %c6 = arith.constant 6 : index
    %c0_76 = arith.constant 0 : index
    %c0_77 = arith.constant 0 : index
    %196 = vector.load %arg3[%c6, %c0_76, %c0_77] : memref<8x32x128xf32, #tpu.memory_space<vmem>>, vector<1x32x128xf32>
    %197 = vector.shape_cast %196 : vector<1x32x128xf32> to vector<32x128xf32>
    %198 = vector.extract_strided_slice %195 {offsets = [0, 0], sizes = [32, 128], strides = [1, 1]} : vector<32x384xf32> to vector<32x128xf32>
    %cst_78 = arith.constant dense<0.000000e+00> : vector<32x128xf32>
    %199 = tpu.matmul %2, %198, %cst_78 {dimension_numbers = #tpu.dot_dimension_numbers<[1], [0], [0], [1], [0, 0, 1, 1], [], []>} : vector<32x32xf32>, vector<32x128xf32>, vector<32x128xf32> -> vector<32x128xf32>
    %200 = arith.addf %197, %199 : vector<32x128xf32>
    %201 = vector.extract_strided_slice %195 {offsets = [0, 128], sizes = [32, 128], strides = [1, 1]} : vector<32x384xf32> to vector<32x128xf32>
    %cst_79 = arith.constant dense<0.000000e+00> : vector<32x128xf32>
    %202 = tpu.matmul %4, %201, %cst_79 {dimension_numbers = #tpu.dot_dimension_numbers<[1], [0], [0], [1], [0, 0, 1, 1], [], []>} : vector<32x32xf32>, vector<32x128xf32>, vector<32x128xf32> -> vector<32x128xf32>
    %203 = arith.addf %200, %202 : vector<32x128xf32>
    %204 = vector.extract_strided_slice %195 {offsets = [0, 256], sizes = [32, 128], strides = [1, 1]} : vector<32x384xf32> to vector<32x128xf32>
    %cst_80 = arith.constant dense<0.000000e+00> : vector<32x128xf32>
    %205 = tpu.matmul %6, %204, %cst_80 {dimension_numbers = #tpu.dot_dimension_numbers<[1], [0], [0], [1], [0, 0, 1, 1], [], []>} : vector<32x32xf32>, vector<32x128xf32>, vector<32x128xf32> -> vector<32x128xf32>
    %206 = arith.addf %203, %205 : vector<32x128xf32>
    %207 = vector.extract_strided_slice %206 {offsets = [0, 0], sizes = [32, 96], strides = [1, 1]} : vector<32x128xf32> to vector<32x96xf32>
    %cst_81 = arith.constant 5.000000e-01 : f32
    %208 = vector.broadcast %cst_81 : f32 to vector<32x96xf32>
    %209 = arith.mulf %208, %207 : vector<32x96xf32>
    %210 = math.tanh %209 : vector<32x96xf32>
    %cst_82 = arith.constant 1.000000e+00 : f32
    %211 = vector.broadcast %cst_82 : f32 to vector<32x96xf32>
    %212 = arith.addf %210, %211 : vector<32x96xf32>
    %cst_83 = arith.constant 5.000000e-01 : f32
    %213 = vector.broadcast %cst_83 : f32 to vector<32x96xf32>
    %214 = arith.mulf %213, %212 : vector<32x96xf32>
    %215 = vector.extract_strided_slice %214 {offsets = [0, 0], sizes = [32, 32], strides = [1, 1]} : vector<32x96xf32> to vector<32x32xf32>
    %216 = vector.extract_strided_slice %214 {offsets = [0, 32], sizes = [32, 32], strides = [1, 1]} : vector<32x96xf32> to vector<32x32xf32>
    %217 = vector.extract_strided_slice %214 {offsets = [0, 64], sizes = [32, 32], strides = [1, 1]} : vector<32x96xf32> to vector<32x32xf32>
    %218 = vector.extract_strided_slice %206 {offsets = [0, 96], sizes = [32, 32], strides = [1, 1]} : vector<32x128xf32> to vector<32x32xf32>
    %219 = math.tanh %218 : vector<32x32xf32>
    %220 = arith.mulf %216, %191 : vector<32x32xf32>
    %221 = arith.mulf %215, %219 : vector<32x32xf32>
    %222 = arith.addf %220, %221 : vector<32x32xf32>
    %223 = math.tanh %222 : vector<32x32xf32>
    %224 = arith.mulf %217, %223 : vector<32x32xf32>
    %c0_84 = arith.constant 0 : index
    %c192 = arith.constant 192 : index
    %225 = vector.load %arg6[%c0_84, %c192] : memref<32x256xf32, #tpu.memory_space<vmem>>, vector<32x32xf32>
    tpu.vector_store %arg6[%c0_84, %c192], %224 {strides = array<i32>} : memref<32x256xf32, #tpu.memory_space<vmem>>, vector<32x32xf32>,
    %cst_85 = arith.constant dense<0.000000e+00> : vector<32x384xf32>
    %226 = tpu.matmul %224, %0, %cst_85 {dimension_numbers = #tpu.dot_dimension_numbers<[1], [0], [0], [1], [0, 0, 1, 1], [], []>} : vector<32x32xf32>, vector<32x384xf32>, vector<32x384xf32> -> vector<32x384xf32>
    %c7 = arith.constant 7 : index
    %c0_86 = arith.constant 0 : index
    %c0_87 = arith.constant 0 : index
    %227 = vector.load %arg3[%c7, %c0_86, %c0_87] : memref<8x32x128xf32, #tpu.memory_space<vmem>>, vector<1x32x128xf32>
    %228 = vector.shape_cast %227 : vector<1x32x128xf32> to vector<32x128xf32>
    %229 = vector.extract_strided_slice %226 {offsets = [0, 0], sizes = [32, 128], strides = [1, 1]} : vector<32x384xf32> to vector<32x128xf32>
    %cst_88 = arith.constant dense<0.000000e+00> : vector<32x128xf32>
    %230 = tpu.matmul %2, %229, %cst_88 {dimension_numbers = #tpu.dot_dimension_numbers<[1], [0], [0], [1], [0, 0, 1, 1], [], []>} : vector<32x32xf32>, vector<32x128xf32>, vector<32x128xf32> -> vector<32x128xf32>
    %231 = arith.addf %228, %230 : vector<32x128xf32>
    %232 = vector.extract_strided_slice %226 {offsets = [0, 128], sizes = [32, 128], strides = [1, 1]} : vector<32x384xf32> to vector<32x128xf32>
    %cst_89 = arith.constant dense<0.000000e+00> : vector<32x128xf32>
    %233 = tpu.matmul %4, %232, %cst_89 {dimension_numbers = #tpu.dot_dimension_numbers<[1], [0], [0], [1], [0, 0, 1, 1], [], []>} : vector<32x32xf32>, vector<32x128xf32>, vector<32x128xf32> -> vector<32x128xf32>
    %234 = arith.addf %231, %233 : vector<32x128xf32>
    %235 = vector.extract_strided_slice %226 {offsets = [0, 256], sizes = [32, 128], strides = [1, 1]} : vector<32x384xf32> to vector<32x128xf32>
    %cst_90 = arith.constant dense<0.000000e+00> : vector<32x128xf32>
    %236 = tpu.matmul %6, %235, %cst_90 {dimension_numbers = #tpu.dot_dimension_numbers<[1], [0], [0], [1], [0, 0, 1, 1], [], []>} : vector<32x32xf32>, vector<32x128xf32>, vector<32x128xf32> -> vector<32x128xf32>
    %237 = arith.addf %234, %236 : vector<32x128xf32>
    %238 = vector.extract_strided_slice %237 {offsets = [0, 0], sizes = [32, 96], strides = [1, 1]} : vector<32x128xf32> to vector<32x96xf32>
    %cst_91 = arith.constant 5.000000e-01 : f32
    %239 = vector.broadcast %cst_91 : f32 to vector<32x96xf32>
    %240 = arith.mulf %239, %238 : vector<32x96xf32>
    %241 = math.tanh %240 : vector<32x96xf32>
    %cst_92 = arith.constant 1.000000e+00 : f32
    %242 = vector.broadcast %cst_92 : f32 to vector<32x96xf32>
    %243 = arith.addf %241, %242 : vector<32x96xf32>
    %cst_93 = arith.constant 5.000000e-01 : f32
    %244 = vector.broadcast %cst_93 : f32 to vector<32x96xf32>
    %245 = arith.mulf %244, %243 : vector<32x96xf32>
    %246 = vector.extract_strided_slice %245 {offsets = [0, 0], sizes = [32, 32], strides = [1, 1]} : vector<32x96xf32> to vector<32x32xf32>
    %247 = vector.extract_strided_slice %245 {offsets = [0, 32], sizes = [32, 32], strides = [1, 1]} : vector<32x96xf32> to vector<32x32xf32>
    %248 = vector.extract_strided_slice %245 {offsets = [0, 64], sizes = [32, 32], strides = [1, 1]} : vector<32x96xf32> to vector<32x32xf32>
    %249 = vector.extract_strided_slice %237 {offsets = [0, 96], sizes = [32, 32], strides = [1, 1]} : vector<32x128xf32> to vector<32x32xf32>
    %250 = math.tanh %249 : vector<32x32xf32>
    %251 = arith.mulf %247, %222 : vector<32x32xf32>
    %252 = arith.mulf %246, %250 : vector<32x32xf32>
    %253 = arith.addf %251, %252 : vector<32x32xf32>
    %254 = math.tanh %253 : vector<32x32xf32>
    %255 = arith.mulf %248, %254 : vector<32x32xf32>
    %c0_94 = arith.constant 0 : index
    %c224 = arith.constant 224 : index
    %256 = vector.load %arg6[%c0_94, %c224] : memref<32x256xf32, #tpu.memory_space<vmem>>, vector<32x32xf32>
    tpu.vector_store %arg6[%c0_94, %c224], %255 {strides = array<i32>} : memref<32x256xf32, #tpu.memory_space<vmem>>, vector<32x32xf32>,
    %c0_95 = arith.constant 0 : index
    %c0_96 = arith.constant 0 : index
    %257 = vector.load %arg7[%c0_95, %c0_96] : memref<32x32xf32, #tpu.memory_space<vmem>>, vector<32x32xf32>
    tpu.vector_store %arg7[%c0_95, %c0_96], %255 {strides = array<i32>} : memref<32x32xf32, #tpu.memory_space<vmem>>, vector<32x32xf32>,
    %c0_97 = arith.constant 0 : index
    %c0_98 = arith.constant 0 : index
    %258 = vector.load %arg8[%c0_97, %c0_98] : memref<32x32xf32, #tpu.memory_space<vmem>>, vector<32x32xf32>
    tpu.vector_store %arg8[%c0_97, %c0_98], %253 {strides = array<i32>} : memref<32x32xf32, #tpu.memory_space<vmem>>, vector<32x32xf32>,
    return
  }
  func.func @transform_0(%arg0: i32) -> (i32, i32, i32) {
    %c0_i32 = arith.constant 0 : i32
    %c0_i32_0 = arith.constant 0 : i32
    %c0_i32_1 = arith.constant 0 : i32
    %c0_i32_2 = arith.constant 0 : i32
    return %c0_i32, %c0_i32_0, %c0_i32_1 : i32, i32, i32
  }
  func.func @transform_1(%arg0: i32) -> (i32, i32) {
    %c0_i32 = arith.constant 0 : i32
    %c0_i32_0 = arith.constant 0 : i32
    %c0_i32_1 = arith.constant 0 : i32
    return %c0_i32, %c0_i32_0 : i32, i32
  }
  func.func @transform_2(%arg0: i32) -> (i32, i32, i32) {
    %c0_i32 = arith.constant 0 : i32
    %c0_i32_0 = arith.constant 0 : i32
    %c0_i32_1 = arith.constant 0 : i32
    %c0_i32_2 = arith.constant 0 : i32
    return %c0_i32, %c0_i32_0, %c0_i32_1 : i32, i32, i32
  }
  func.func @transform_3(%arg0: i32) -> (i32, i32) {
    %c0_i32 = arith.constant 0 : i32
    %c0_i32_0 = arith.constant 0 : i32
    %c0_i32_1 = arith.constant 0 : i32
    return %c0_i32, %c0_i32_0 : i32, i32
  }
  func.func @transform_4(%arg0: i32) -> (i32, i32) {
    %c0_i32 = arith.constant 0 : i32
    %c0_i32_0 = arith.constant 0 : i32
    %c0_i32_1 = arith.constant 0 : i32
    return %c0_i32, %c0_i32_0 : i32, i32
  }
  func.func @transform_5(%arg0: i32) -> (i32, i32) {
    %c0_i32 = arith.constant 0 : i32
    %c0_i32_0 = arith.constant 0 : i32
    %c0_i32_1 = arith.constant 0 : i32
    return %c0_i32, %c0_i32_0 : i32, i32
  }
  func.func @transform_6(%arg0: i32) -> (i32, i32) {
    %c0_i32 = arith.constant 0 : i32
    %c0_i32_0 = arith.constant 0 : i32
    %c0_i32_1 = arith.constant 0 : i32
    return %c0_i32, %c0_i32_0 : i32, i32
  }
  func.func @transform_7(%arg0: i32) -> (i32, i32) {
    %c0_i32 = arith.constant 0 : i32
    %c0_i32_0 = arith.constant 0 : i32
    %c0_i32_1 = arith.constant 0 : i32
    return %c0_i32, %c0_i32_0 : i32, i32
  }
}

module attributes {stable_mosaic.version = 11 : i64} {
  func.func @_gcn_lstm_recurrence_kernel(%arg0: i32, %arg1: memref<3x32x32xf32, #tpu.memory_space<vmem>>, %arg2: memref<32x384xf32, #tpu.memory_space<vmem>>, %arg3: memref<8x32x128xf32, #tpu.memory_space<vmem>>, %arg4: memref<32x32xf32, #tpu.memory_space<vmem>>, %arg5: memref<32x32xf32, #tpu.memory_space<vmem>>, %arg6: memref<32x256xf32, #tpu.memory_space<vmem>>, %arg7: memref<32x32xf32, #tpu.memory_space<vmem>>, %arg8: memref<32x32xf32, #tpu.memory_space<vmem>>) attributes {dimension_semantics = [#tpu.dimension_semantics<arbitrary>], iteration_bounds = array<i64: 1>, scalar_prefetch = 0 : i64, scratch_operands = 0 : i64, tpu.core_type = #tpu.core_type<tc>, window_params = [{pipeline_mode = #tpu.pipeline_mode<synchronous>, transform_indices = @transform_0, window_bounds = array<i64: 3, 32, 32>}, {pipeline_mode = #tpu.pipeline_mode<synchronous>, transform_indices = @transform_1, window_bounds = array<i64: 32, 384>}, {pipeline_mode = #tpu.pipeline_mode<synchronous>, transform_indices = @transform_2, window_bounds = array<i64: 8, 32, 128>}, {pipeline_mode = #tpu.pipeline_mode<synchronous>, transform_indices = @transform_3, window_bounds = array<i64: 32, 32>}, {pipeline_mode = #tpu.pipeline_mode<synchronous>, transform_indices = @transform_4, window_bounds = array<i64: 32, 32>}, {pipeline_mode = #tpu.pipeline_mode<synchronous>, transform_indices = @transform_5, window_bounds = array<i64: 32, 256>}, {pipeline_mode = #tpu.pipeline_mode<synchronous>, transform_indices = @transform_6, window_bounds = array<i64: 32, 32>}, {pipeline_mode = #tpu.pipeline_mode<synchronous>, transform_indices = @transform_7, window_bounds = array<i64: 32, 32>}]} {
    %c0 = arith.constant 0 : index
    %c0_0 = arith.constant 0 : index
    %0 = vector.load %arg2[%c0, %c0_0] : memref<32x384xf32, #tpu.memory_space<vmem>>, vector<32x384xf32>
    %c0_1 = arith.constant 0 : index
    %c0_2 = arith.constant 0 : index
    %c0_3 = arith.constant 0 : index
    %1 = vector.load %arg1[%c0_1, %c0_2, %c0_3] : memref<3x32x32xf32, #tpu.memory_space<vmem>>, vector<1x32x32xf32>
    %2 = vector.shape_cast %1 : vector<1x32x32xf32> to vector<32x32xf32>
    %c1 = arith.constant 1 : index
    %c0_4 = arith.constant 0 : index
    %c0_5 = arith.constant 0 : index
    %3 = vector.load %arg1[%c1, %c0_4, %c0_5] : memref<3x32x32xf32, #tpu.memory_space<vmem>>, vector<1x32x32xf32>
    %4 = vector.shape_cast %3 : vector<1x32x32xf32> to vector<32x32xf32>
    %c2 = arith.constant 2 : index
    %c0_6 = arith.constant 0 : index
    %c0_7 = arith.constant 0 : index
    %5 = vector.load %arg1[%c2, %c0_6, %c0_7] : memref<3x32x32xf32, #tpu.memory_space<vmem>>, vector<1x32x32xf32>
    %6 = vector.shape_cast %5 : vector<1x32x32xf32> to vector<32x32xf32>
    %c0_8 = arith.constant 0 : index
    %c0_9 = arith.constant 0 : index
    %7 = vector.load %arg4[%c0_8, %c0_9] : memref<32x32xf32, #tpu.memory_space<vmem>>, vector<32x32xf32>
    %c0_10 = arith.constant 0 : index
    %c0_11 = arith.constant 0 : index
    %8 = vector.load %arg5[%c0_10, %c0_11] : memref<32x32xf32, #tpu.memory_space<vmem>>, vector<32x32xf32>
    %cst = arith.constant dense<0.000000e+00> : vector<32x384xf32>
    %9 = tpu.matmul %7, %0, %cst {dimension_numbers = #tpu.dot_dimension_numbers<[1], [0], [0], [1], [0, 0, 1, 1], [], []>} : vector<32x32xf32>, vector<32x384xf32>, vector<32x384xf32> -> vector<32x384xf32>
    %c0_12 = arith.constant 0 : index
    %c0_13 = arith.constant 0 : index
    %c0_14 = arith.constant 0 : index
    %10 = vector.load %arg3[%c0_12, %c0_13, %c0_14] : memref<8x32x128xf32, #tpu.memory_space<vmem>>, vector<1x32x128xf32>
    %11 = vector.shape_cast %10 : vector<1x32x128xf32> to vector<32x128xf32>
    %12 = vector.extract_strided_slice %9 {offsets = [0, 0], sizes = [32, 128], strides = [1, 1]} : vector<32x384xf32> to vector<32x128xf32>
    %cst_15 = arith.constant dense<0.000000e+00> : vector<32x128xf32>
    %13 = tpu.matmul %2, %12, %cst_15 {dimension_numbers = #tpu.dot_dimension_numbers<[1], [0], [0], [1], [0, 0, 1, 1], [], []>} : vector<32x32xf32>, vector<32x128xf32>, vector<32x128xf32> -> vector<32x128xf32>
    %14 = arith.addf %11, %13 : vector<32x128xf32>
    %15 = vector.extract_strided_slice %9 {offsets = [0, 128], sizes = [32, 128], strides = [1, 1]} : vector<32x384xf32> to vector<32x128xf32>
    %cst_16 = arith.constant dense<0.000000e+00> : vector<32x128xf32>
    %16 = tpu.matmul %4, %15, %cst_16 {dimension_numbers = #tpu.dot_dimension_numbers<[1], [0], [0], [1], [0, 0, 1, 1], [], []>} : vector<32x32xf32>, vector<32x128xf32>, vector<32x128xf32> -> vector<32x128xf32>
    %17 = arith.addf %14, %16 : vector<32x128xf32>
    %18 = vector.extract_strided_slice %9 {offsets = [0, 256], sizes = [32, 128], strides = [1, 1]} : vector<32x384xf32> to vector<32x128xf32>
    %cst_17 = arith.constant dense<0.000000e+00> : vector<32x128xf32>
    %19 = tpu.matmul %6, %18, %cst_17 {dimension_numbers = #tpu.dot_dimension_numbers<[1], [0], [0], [1], [0, 0, 1, 1], [], []>} : vector<32x32xf32>, vector<32x128xf32>, vector<32x128xf32> -> vector<32x128xf32>
    %20 = arith.addf %17, %19 : vector<32x128xf32>
    %21 = vector.extract_strided_slice %20 {offsets = [0, 0], sizes = [32, 96], strides = [1, 1]} : vector<32x128xf32> to vector<32x96xf32>
    %cst_18 = arith.constant 5.000000e-01 : f32
    %22 = vector.broadcast %cst_18 : f32 to vector<32x96xf32>
    %23 = arith.mulf %22, %21 : vector<32x96xf32>
    %24 = math.tanh %23 : vector<32x96xf32>
    %cst_19 = arith.constant 1.000000e+00 : f32
    %25 = vector.broadcast %cst_19 : f32 to vector<32x96xf32>
    %26 = arith.addf %24, %25 : vector<32x96xf32>
    %cst_20 = arith.constant 5.000000e-01 : f32
    %27 = vector.broadcast %cst_20 : f32 to vector<32x96xf32>
    %28 = arith.mulf %27, %26 : vector<32x96xf32>
    %29 = vector.extract_strided_slice %28 {offsets = [0, 0], sizes = [32, 32], strides = [1, 1]} : vector<32x96xf32> to vector<32x32xf32>
    %30 = vector.extract_strided_slice %28 {offsets = [0, 32], sizes = [32, 32], strides = [1, 1]} : vector<32x96xf32> to vector<32x32xf32>
    %31 = vector.extract_strided_slice %28 {offsets = [0, 64], sizes = [32, 32], strides = [1, 1]} : vector<32x96xf32> to vector<32x32xf32>
    %32 = vector.extract_strided_slice %20 {offsets = [0, 96], sizes = [32, 32], strides = [1, 1]} : vector<32x128xf32> to vector<32x32xf32>
    %33 = math.tanh %32 : vector<32x32xf32>
    %34 = arith.mulf %30, %8 : vector<32x32xf32>
    %35 = arith.mulf %29, %33 : vector<32x32xf32>
    %36 = arith.addf %34, %35 : vector<32x32xf32>
    %37 = math.tanh %36 : vector<32x32xf32>
    %38 = arith.mulf %31, %37 : vector<32x32xf32>
    %c0_21 = arith.constant 0 : index
    %c0_22 = arith.constant 0 : index
    %39 = vector.load %arg6[%c0_21, %c0_22] : memref<32x256xf32, #tpu.memory_space<vmem>>, vector<32x32xf32>
    tpu.vector_store %arg6[%c0_21, %c0_22], %38 {strides = array<i32>} : memref<32x256xf32, #tpu.memory_space<vmem>>, vector<32x32xf32>,
    %cst_23 = arith.constant dense<0.000000e+00> : vector<32x384xf32>
    %40 = tpu.matmul %38, %0, %cst_23 {dimension_numbers = #tpu.dot_dimension_numbers<[1], [0], [0], [1], [0, 0, 1, 1], [], []>} : vector<32x32xf32>, vector<32x384xf32>, vector<32x384xf32> -> vector<32x384xf32>
    %c1_24 = arith.constant 1 : index
    %c0_25 = arith.constant 0 : index
    %c0_26 = arith.constant 0 : index
    %41 = vector.load %arg3[%c1_24, %c0_25, %c0_26] : memref<8x32x128xf32, #tpu.memory_space<vmem>>, vector<1x32x128xf32>
    %42 = vector.shape_cast %41 : vector<1x32x128xf32> to vector<32x128xf32>
    %43 = vector.extract_strided_slice %40 {offsets = [0, 0], sizes = [32, 128], strides = [1, 1]} : vector<32x384xf32> to vector<32x128xf32>
    %cst_27 = arith.constant dense<0.000000e+00> : vector<32x128xf32>
    %44 = tpu.matmul %2, %43, %cst_27 {dimension_numbers = #tpu.dot_dimension_numbers<[1], [0], [0], [1], [0, 0, 1, 1], [], []>} : vector<32x32xf32>, vector<32x128xf32>, vector<32x128xf32> -> vector<32x128xf32>
    %45 = arith.addf %42, %44 : vector<32x128xf32>
    %46 = vector.extract_strided_slice %40 {offsets = [0, 128], sizes = [32, 128], strides = [1, 1]} : vector<32x384xf32> to vector<32x128xf32>
    %cst_28 = arith.constant dense<0.000000e+00> : vector<32x128xf32>
    %47 = tpu.matmul %4, %46, %cst_28 {dimension_numbers = #tpu.dot_dimension_numbers<[1], [0], [0], [1], [0, 0, 1, 1], [], []>} : vector<32x32xf32>, vector<32x128xf32>, vector<32x128xf32> -> vector<32x128xf32>
    %48 = arith.addf %45, %47 : vector<32x128xf32>
    %49 = vector.extract_strided_slice %40 {offsets = [0, 256], sizes = [32, 128], strides = [1, 1]} : vector<32x384xf32> to vector<32x128xf32>
    %cst_29 = arith.constant dense<0.000000e+00> : vector<32x128xf32>
    %50 = tpu.matmul %6, %49, %cst_29 {dimension_numbers = #tpu.dot_dimension_numbers<[1], [0], [0], [1], [0, 0, 1, 1], [], []>} : vector<32x32xf32>, vector<32x128xf32>, vector<32x128xf32> -> vector<32x128xf32>
    %51 = arith.addf %48, %50 : vector<32x128xf32>
    %52 = vector.extract_strided_slice %51 {offsets = [0, 0], sizes = [32, 96], strides = [1, 1]} : vector<32x128xf32> to vector<32x96xf32>
    %cst_30 = arith.constant 5.000000e-01 : f32
    %53 = vector.broadcast %cst_30 : f32 to vector<32x96xf32>
    %54 = arith.mulf %53, %52 : vector<32x96xf32>
    %55 = math.tanh %54 : vector<32x96xf32>
    %cst_31 = arith.constant 1.000000e+00 : f32
    %56 = vector.broadcast %cst_31 : f32 to vector<32x96xf32>
    %57 = arith.addf %55, %56 : vector<32x96xf32>
    %cst_32 = arith.constant 5.000000e-01 : f32
    %58 = vector.broadcast %cst_32 : f32 to vector<32x96xf32>
    %59 = arith.mulf %58, %57 : vector<32x96xf32>
    %60 = vector.extract_strided_slice %59 {offsets = [0, 0], sizes = [32, 32], strides = [1, 1]} : vector<32x96xf32> to vector<32x32xf32>
    %61 = vector.extract_strided_slice %59 {offsets = [0, 32], sizes = [32, 32], strides = [1, 1]} : vector<32x96xf32> to vector<32x32xf32>
    %62 = vector.extract_strided_slice %59 {offsets = [0, 64], sizes = [32, 32], strides = [1, 1]} : vector<32x96xf32> to vector<32x32xf32>
    %63 = vector.extract_strided_slice %51 {offsets = [0, 96], sizes = [32, 32], strides = [1, 1]} : vector<32x128xf32> to vector<32x32xf32>
    %64 = math.tanh %63 : vector<32x32xf32>
    %65 = arith.mulf %61, %36 : vector<32x32xf32>
    %66 = arith.mulf %60, %64 : vector<32x32xf32>
    %67 = arith.addf %65, %66 : vector<32x32xf32>
    %68 = math.tanh %67 : vector<32x32xf32>
    %69 = arith.mulf %62, %68 : vector<32x32xf32>
    %c0_33 = arith.constant 0 : index
    %c32 = arith.constant 32 : index
    %70 = vector.load %arg6[%c0_33, %c32] : memref<32x256xf32, #tpu.memory_space<vmem>>, vector<32x32xf32>
    tpu.vector_store %arg6[%c0_33, %c32], %69 {strides = array<i32>} : memref<32x256xf32, #tpu.memory_space<vmem>>, vector<32x32xf32>,
    %cst_34 = arith.constant dense<0.000000e+00> : vector<32x384xf32>
    %71 = tpu.matmul %69, %0, %cst_34 {dimension_numbers = #tpu.dot_dimension_numbers<[1], [0], [0], [1], [0, 0, 1, 1], [], []>} : vector<32x32xf32>, vector<32x384xf32>, vector<32x384xf32> -> vector<32x384xf32>
    %c2_35 = arith.constant 2 : index
    %c0_36 = arith.constant 0 : index
    %c0_37 = arith.constant 0 : index
    %72 = vector.load %arg3[%c2_35, %c0_36, %c0_37] : memref<8x32x128xf32, #tpu.memory_space<vmem>>, vector<1x32x128xf32>
    %73 = vector.shape_cast %72 : vector<1x32x128xf32> to vector<32x128xf32>
    %74 = vector.extract_strided_slice %71 {offsets = [0, 0], sizes = [32, 128], strides = [1, 1]} : vector<32x384xf32> to vector<32x128xf32>
    %cst_38 = arith.constant dense<0.000000e+00> : vector<32x128xf32>
    %75 = tpu.matmul %2, %74, %cst_38 {dimension_numbers = #tpu.dot_dimension_numbers<[1], [0], [0], [1], [0, 0, 1, 1], [], []>} : vector<32x32xf32>, vector<32x128xf32>, vector<32x128xf32> -> vector<32x128xf32>
    %76 = arith.addf %73, %75 : vector<32x128xf32>
    %77 = vector.extract_strided_slice %71 {offsets = [0, 128], sizes = [32, 128], strides = [1, 1]} : vector<32x384xf32> to vector<32x128xf32>
    %cst_39 = arith.constant dense<0.000000e+00> : vector<32x128xf32>
    %78 = tpu.matmul %4, %77, %cst_39 {dimension_numbers = #tpu.dot_dimension_numbers<[1], [0], [0], [1], [0, 0, 1, 1], [], []>} : vector<32x32xf32>, vector<32x128xf32>, vector<32x128xf32> -> vector<32x128xf32>
    %79 = arith.addf %76, %78 : vector<32x128xf32>
    %80 = vector.extract_strided_slice %71 {offsets = [0, 256], sizes = [32, 128], strides = [1, 1]} : vector<32x384xf32> to vector<32x128xf32>
    %cst_40 = arith.constant dense<0.000000e+00> : vector<32x128xf32>
    %81 = tpu.matmul %6, %80, %cst_40 {dimension_numbers = #tpu.dot_dimension_numbers<[1], [0], [0], [1], [0, 0, 1, 1], [], []>} : vector<32x32xf32>, vector<32x128xf32>, vector<32x128xf32> -> vector<32x128xf32>
    %82 = arith.addf %79, %81 : vector<32x128xf32>
    %83 = vector.extract_strided_slice %82 {offsets = [0, 0], sizes = [32, 96], strides = [1, 1]} : vector<32x128xf32> to vector<32x96xf32>
    %cst_41 = arith.constant 5.000000e-01 : f32
    %84 = vector.broadcast %cst_41 : f32 to vector<32x96xf32>
    %85 = arith.mulf %84, %83 : vector<32x96xf32>
    %86 = math.tanh %85 : vector<32x96xf32>
    %cst_42 = arith.constant 1.000000e+00 : f32
    %87 = vector.broadcast %cst_42 : f32 to vector<32x96xf32>
    %88 = arith.addf %86, %87 : vector<32x96xf32>
    %cst_43 = arith.constant 5.000000e-01 : f32
    %89 = vector.broadcast %cst_43 : f32 to vector<32x96xf32>
    %90 = arith.mulf %89, %88 : vector<32x96xf32>
    %91 = vector.extract_strided_slice %90 {offsets = [0, 0], sizes = [32, 32], strides = [1, 1]} : vector<32x96xf32> to vector<32x32xf32>
    %92 = vector.extract_strided_slice %90 {offsets = [0, 32], sizes = [32, 32], strides = [1, 1]} : vector<32x96xf32> to vector<32x32xf32>
    %93 = vector.extract_strided_slice %90 {offsets = [0, 64], sizes = [32, 32], strides = [1, 1]} : vector<32x96xf32> to vector<32x32xf32>
    %94 = vector.extract_strided_slice %82 {offsets = [0, 96], sizes = [32, 32], strides = [1, 1]} : vector<32x128xf32> to vector<32x32xf32>
    %95 = math.tanh %94 : vector<32x32xf32>
    %96 = arith.mulf %92, %67 : vector<32x32xf32>
    %97 = arith.mulf %91, %95 : vector<32x32xf32>
    %98 = arith.addf %96, %97 : vector<32x32xf32>
    %99 = math.tanh %98 : vector<32x32xf32>
    %100 = arith.mulf %93, %99 : vector<32x32xf32>
    %c0_44 = arith.constant 0 : index
    %c64 = arith.constant 64 : index
    %101 = vector.load %arg6[%c0_44, %c64] : memref<32x256xf32, #tpu.memory_space<vmem>>, vector<32x32xf32>
    tpu.vector_store %arg6[%c0_44, %c64], %100 {strides = array<i32>} : memref<32x256xf32, #tpu.memory_space<vmem>>, vector<32x32xf32>,
    %cst_45 = arith.constant dense<0.000000e+00> : vector<32x384xf32>
    %102 = tpu.matmul %100, %0, %cst_45 {dimension_numbers = #tpu.dot_dimension_numbers<[1], [0], [0], [1], [0, 0, 1, 1], [], []>} : vector<32x32xf32>, vector<32x384xf32>, vector<32x384xf32> -> vector<32x384xf32>
    %c3 = arith.constant 3 : index
    %c0_46 = arith.constant 0 : index
    %c0_47 = arith.constant 0 : index
    %103 = vector.load %arg3[%c3, %c0_46, %c0_47] : memref<8x32x128xf32, #tpu.memory_space<vmem>>, vector<1x32x128xf32>
    %104 = vector.shape_cast %103 : vector<1x32x128xf32> to vector<32x128xf32>
    %105 = vector.extract_strided_slice %102 {offsets = [0, 0], sizes = [32, 128], strides = [1, 1]} : vector<32x384xf32> to vector<32x128xf32>
    %cst_48 = arith.constant dense<0.000000e+00> : vector<32x128xf32>
    %106 = tpu.matmul %2, %105, %cst_48 {dimension_numbers = #tpu.dot_dimension_numbers<[1], [0], [0], [1], [0, 0, 1, 1], [], []>} : vector<32x32xf32>, vector<32x128xf32>, vector<32x128xf32> -> vector<32x128xf32>
    %107 = arith.addf %104, %106 : vector<32x128xf32>
    %108 = vector.extract_strided_slice %102 {offsets = [0, 128], sizes = [32, 128], strides = [1, 1]} : vector<32x384xf32> to vector<32x128xf32>
    %cst_49 = arith.constant dense<0.000000e+00> : vector<32x128xf32>
    %109 = tpu.matmul %4, %108, %cst_49 {dimension_numbers = #tpu.dot_dimension_numbers<[1], [0], [0], [1], [0, 0, 1, 1], [], []>} : vector<32x32xf32>, vector<32x128xf32>, vector<32x128xf32> -> vector<32x128xf32>
    %110 = arith.addf %107, %109 : vector<32x128xf32>
    %111 = vector.extract_strided_slice %102 {offsets = [0, 256], sizes = [32, 128], strides = [1, 1]} : vector<32x384xf32> to vector<32x128xf32>
    %cst_50 = arith.constant dense<0.000000e+00> : vector<32x128xf32>
    %112 = tpu.matmul %6, %111, %cst_50 {dimension_numbers = #tpu.dot_dimension_numbers<[1], [0], [0], [1], [0, 0, 1, 1], [], []>} : vector<32x32xf32>, vector<32x128xf32>, vector<32x128xf32> -> vector<32x128xf32>
    %113 = arith.addf %110, %112 : vector<32x128xf32>
    %114 = vector.extract_strided_slice %113 {offsets = [0, 0], sizes = [32, 96], strides = [1, 1]} : vector<32x128xf32> to vector<32x96xf32>
    %cst_51 = arith.constant 5.000000e-01 : f32
    %115 = vector.broadcast %cst_51 : f32 to vector<32x96xf32>
    %116 = arith.mulf %115, %114 : vector<32x96xf32>
    %117 = math.tanh %116 : vector<32x96xf32>
    %cst_52 = arith.constant 1.000000e+00 : f32
    %118 = vector.broadcast %cst_52 : f32 to vector<32x96xf32>
    %119 = arith.addf %117, %118 : vector<32x96xf32>
    %cst_53 = arith.constant 5.000000e-01 : f32
    %120 = vector.broadcast %cst_53 : f32 to vector<32x96xf32>
    %121 = arith.mulf %120, %119 : vector<32x96xf32>
    %122 = vector.extract_strided_slice %121 {offsets = [0, 0], sizes = [32, 32], strides = [1, 1]} : vector<32x96xf32> to vector<32x32xf32>
    %123 = vector.extract_strided_slice %121 {offsets = [0, 32], sizes = [32, 32], strides = [1, 1]} : vector<32x96xf32> to vector<32x32xf32>
    %124 = vector.extract_strided_slice %121 {offsets = [0, 64], sizes = [32, 32], strides = [1, 1]} : vector<32x96xf32> to vector<32x32xf32>
    %125 = vector.extract_strided_slice %113 {offsets = [0, 96], sizes = [32, 32], strides = [1, 1]} : vector<32x128xf32> to vector<32x32xf32>
    %126 = math.tanh %125 : vector<32x32xf32>
    %127 = arith.mulf %123, %98 : vector<32x32xf32>
    %128 = arith.mulf %122, %126 : vector<32x32xf32>
    %129 = arith.addf %127, %128 : vector<32x32xf32>
    %130 = math.tanh %129 : vector<32x32xf32>
    %131 = arith.mulf %124, %130 : vector<32x32xf32>
    %c0_54 = arith.constant 0 : index
    %c96 = arith.constant 96 : index
    %132 = vector.load %arg6[%c0_54, %c96] : memref<32x256xf32, #tpu.memory_space<vmem>>, vector<32x32xf32>
    tpu.vector_store %arg6[%c0_54, %c96], %131 {strides = array<i32>} : memref<32x256xf32, #tpu.memory_space<vmem>>, vector<32x32xf32>,
    %cst_55 = arith.constant dense<0.000000e+00> : vector<32x384xf32>
    %133 = tpu.matmul %131, %0, %cst_55 {dimension_numbers = #tpu.dot_dimension_numbers<[1], [0], [0], [1], [0, 0, 1, 1], [], []>} : vector<32x32xf32>, vector<32x384xf32>, vector<32x384xf32> -> vector<32x384xf32>
    %c4 = arith.constant 4 : index
    %c0_56 = arith.constant 0 : index
    %c0_57 = arith.constant 0 : index
    %134 = vector.load %arg3[%c4, %c0_56, %c0_57] : memref<8x32x128xf32, #tpu.memory_space<vmem>>, vector<1x32x128xf32>
    %135 = vector.shape_cast %134 : vector<1x32x128xf32> to vector<32x128xf32>
    %136 = vector.extract_strided_slice %133 {offsets = [0, 0], sizes = [32, 128], strides = [1, 1]} : vector<32x384xf32> to vector<32x128xf32>
    %cst_58 = arith.constant dense<0.000000e+00> : vector<32x128xf32>
    %137 = tpu.matmul %2, %136, %cst_58 {dimension_numbers = #tpu.dot_dimension_numbers<[1], [0], [0], [1], [0, 0, 1, 1], [], []>} : vector<32x32xf32>, vector<32x128xf32>, vector<32x128xf32> -> vector<32x128xf32>
    %138 = arith.addf %135, %137 : vector<32x128xf32>
    %139 = vector.extract_strided_slice %133 {offsets = [0, 128], sizes = [32, 128], strides = [1, 1]} : vector<32x384xf32> to vector<32x128xf32>
    %cst_59 = arith.constant dense<0.000000e+00> : vector<32x128xf32>
    %140 = tpu.matmul %4, %139, %cst_59 {dimension_numbers = #tpu.dot_dimension_numbers<[1], [0], [0], [1], [0, 0, 1, 1], [], []>} : vector<32x32xf32>, vector<32x128xf32>, vector<32x128xf32> -> vector<32x128xf32>
    %141 = arith.addf %138, %140 : vector<32x128xf32>
    %142 = vector.extract_strided_slice %133 {offsets = [0, 256], sizes = [32, 128], strides = [1, 1]} : vector<32x384xf32> to vector<32x128xf32>
    %cst_60 = arith.constant dense<0.000000e+00> : vector<32x128xf32>
    %143 = tpu.matmul %6, %142, %cst_60 {dimension_numbers = #tpu.dot_dimension_numbers<[1], [0], [0], [1], [0, 0, 1, 1], [], []>} : vector<32x32xf32>, vector<32x128xf32>, vector<32x128xf32> -> vector<32x128xf32>
    %144 = arith.addf %141, %143 : vector<32x128xf32>
    %145 = vector.extract_strided_slice %144 {offsets = [0, 0], sizes = [32, 96], strides = [1, 1]} : vector<32x128xf32> to vector<32x96xf32>
    %cst_61 = arith.constant 5.000000e-01 : f32
    %146 = vector.broadcast %cst_61 : f32 to vector<32x96xf32>
    %147 = arith.mulf %146, %145 : vector<32x96xf32>
    %148 = math.tanh %147 : vector<32x96xf32>
    %cst_62 = arith.constant 1.000000e+00 : f32
    %149 = vector.broadcast %cst_62 : f32 to vector<32x96xf32>
    %150 = arith.addf %148, %149 : vector<32x96xf32>
    %cst_63 = arith.constant 5.000000e-01 : f32
    %151 = vector.broadcast %cst_63 : f32 to vector<32x96xf32>
    %152 = arith.mulf %151, %150 : vector<32x96xf32>
    %153 = vector.extract_strided_slice %152 {offsets = [0, 0], sizes = [32, 32], strides = [1, 1]} : vector<32x96xf32> to vector<32x32xf32>
    %154 = vector.extract_strided_slice %152 {offsets = [0, 32], sizes = [32, 32], strides = [1, 1]} : vector<32x96xf32> to vector<32x32xf32>
    %155 = vector.extract_strided_slice %152 {offsets = [0, 64], sizes = [32, 32], strides = [1, 1]} : vector<32x96xf32> to vector<32x32xf32>
    %156 = vector.extract_strided_slice %144 {offsets = [0, 96], sizes = [32, 32], strides = [1, 1]} : vector<32x128xf32> to vector<32x32xf32>
    %157 = math.tanh %156 : vector<32x32xf32>
    %158 = arith.mulf %154, %129 : vector<32x32xf32>
    %159 = arith.mulf %153, %157 : vector<32x32xf32>
    %160 = arith.addf %158, %159 : vector<32x32xf32>
    %161 = math.tanh %160 : vector<32x32xf32>
    %162 = arith.mulf %155, %161 : vector<32x32xf32>
    %c0_64 = arith.constant 0 : index
    %c128 = arith.constant 128 : index
    %163 = vector.load %arg6[%c0_64, %c128] : memref<32x256xf32, #tpu.memory_space<vmem>>, vector<32x32xf32>
    tpu.vector_store %arg6[%c0_64, %c128], %162 {strides = array<i32>} : memref<32x256xf32, #tpu.memory_space<vmem>>, vector<32x32xf32>,
    %cst_65 = arith.constant dense<0.000000e+00> : vector<32x384xf32>
    %164 = tpu.matmul %162, %0, %cst_65 {dimension_numbers = #tpu.dot_dimension_numbers<[1], [0], [0], [1], [0, 0, 1, 1], [], []>} : vector<32x32xf32>, vector<32x384xf32>, vector<32x384xf32> -> vector<32x384xf32>
    %c5 = arith.constant 5 : index
    %c0_66 = arith.constant 0 : index
    %c0_67 = arith.constant 0 : index
    %165 = vector.load %arg3[%c5, %c0_66, %c0_67] : memref<8x32x128xf32, #tpu.memory_space<vmem>>, vector<1x32x128xf32>
    %166 = vector.shape_cast %165 : vector<1x32x128xf32> to vector<32x128xf32>
    %167 = vector.extract_strided_slice %164 {offsets = [0, 0], sizes = [32, 128], strides = [1, 1]} : vector<32x384xf32> to vector<32x128xf32>
    %cst_68 = arith.constant dense<0.000000e+00> : vector<32x128xf32>
    %168 = tpu.matmul %2, %167, %cst_68 {dimension_numbers = #tpu.dot_dimension_numbers<[1], [0], [0], [1], [0, 0, 1, 1], [], []>} : vector<32x32xf32>, vector<32x128xf32>, vector<32x128xf32> -> vector<32x128xf32>
    %169 = arith.addf %166, %168 : vector<32x128xf32>
    %170 = vector.extract_strided_slice %164 {offsets = [0, 128], sizes = [32, 128], strides = [1, 1]} : vector<32x384xf32> to vector<32x128xf32>
    %cst_69 = arith.constant dense<0.000000e+00> : vector<32x128xf32>
    %171 = tpu.matmul %4, %170, %cst_69 {dimension_numbers = #tpu.dot_dimension_numbers<[1], [0], [0], [1], [0, 0, 1, 1], [], []>} : vector<32x32xf32>, vector<32x128xf32>, vector<32x128xf32> -> vector<32x128xf32>
    %172 = arith.addf %169, %171 : vector<32x128xf32>
    %173 = vector.extract_strided_slice %164 {offsets = [0, 256], sizes = [32, 128], strides = [1, 1]} : vector<32x384xf32> to vector<32x128xf32>
    %cst_70 = arith.constant dense<0.000000e+00> : vector<32x128xf32>
    %174 = tpu.matmul %6, %173, %cst_70 {dimension_numbers = #tpu.dot_dimension_numbers<[1], [0], [0], [1], [0, 0, 1, 1], [], []>} : vector<32x32xf32>, vector<32x128xf32>, vector<32x128xf32> -> vector<32x128xf32>
    %175 = arith.addf %172, %174 : vector<32x128xf32>
    %176 = vector.extract_strided_slice %175 {offsets = [0, 0], sizes = [32, 96], strides = [1, 1]} : vector<32x128xf32> to vector<32x96xf32>
    %cst_71 = arith.constant 5.000000e-01 : f32
    %177 = vector.broadcast %cst_71 : f32 to vector<32x96xf32>
    %178 = arith.mulf %177, %176 : vector<32x96xf32>
    %179 = math.tanh %178 : vector<32x96xf32>
    %cst_72 = arith.constant 1.000000e+00 : f32
    %180 = vector.broadcast %cst_72 : f32 to vector<32x96xf32>
    %181 = arith.addf %179, %180 : vector<32x96xf32>
    %cst_73 = arith.constant 5.000000e-01 : f32
    %182 = vector.broadcast %cst_73 : f32 to vector<32x96xf32>
    %183 = arith.mulf %182, %181 : vector<32x96xf32>
    %184 = vector.extract_strided_slice %183 {offsets = [0, 0], sizes = [32, 32], strides = [1, 1]} : vector<32x96xf32> to vector<32x32xf32>
    %185 = vector.extract_strided_slice %183 {offsets = [0, 32], sizes = [32, 32], strides = [1, 1]} : vector<32x96xf32> to vector<32x32xf32>
    %186 = vector.extract_strided_slice %183 {offsets = [0, 64], sizes = [32, 32], strides = [1, 1]} : vector<32x96xf32> to vector<32x32xf32>
    %187 = vector.extract_strided_slice %175 {offsets = [0, 96], sizes = [32, 32], strides = [1, 1]} : vector<32x128xf32> to vector<32x32xf32>
    %188 = math.tanh %187 : vector<32x32xf32>
    %189 = arith.mulf %185, %160 : vector<32x32xf32>
    %190 = arith.mulf %184, %188 : vector<32x32xf32>
    %191 = arith.addf %189, %190 : vector<32x32xf32>
    %192 = math.tanh %191 : vector<32x32xf32>
    %193 = arith.mulf %186, %192 : vector<32x32xf32>
    %c0_74 = arith.constant 0 : index
    %c160 = arith.constant 160 : index
    %194 = vector.load %arg6[%c0_74, %c160] : memref<32x256xf32, #tpu.memory_space<vmem>>, vector<32x32xf32>
    tpu.vector_store %arg6[%c0_74, %c160], %193 {strides = array<i32>} : memref<32x256xf32, #tpu.memory_space<vmem>>, vector<32x32xf32>,
    %cst_75 = arith.constant dense<0.000000e+00> : vector<32x384xf32>
    %195 = tpu.matmul %193, %0, %cst_75 {dimension_numbers = #tpu.dot_dimension_numbers<[1], [0], [0], [1], [0, 0, 1, 1], [], []>} : vector<32x32xf32>, vector<32x384xf32>, vector<32x384xf32> -> vector<32x384xf32>
    %c6 = arith.constant 6 : index
    %c0_76 = arith.constant 0 : index
    %c0_77 = arith.constant 0 : index
    %196 = vector.load %arg3[%c6, %c0_76, %c0_77] : memref<8x32x128xf32, #tpu.memory_space<vmem>>, vector<1x32x128xf32>
    %197 = vector.shape_cast %196 : vector<1x32x128xf32> to vector<32x128xf32>
    %198 = vector.extract_strided_slice %195 {offsets = [0, 0], sizes = [32, 128], strides = [1, 1]} : vector<32x384xf32> to vector<32x128xf32>
    %cst_78 = arith.constant dense<0.000000e+00> : vector<32x128xf32>
    %199 = tpu.matmul %2, %198, %cst_78 {dimension_numbers = #tpu.dot_dimension_numbers<[1], [0], [0], [1], [0, 0, 1, 1], [], []>} : vector<32x32xf32>, vector<32x128xf32>, vector<32x128xf32> -> vector<32x128xf32>
    %200 = arith.addf %197, %199 : vector<32x128xf32>
    %201 = vector.extract_strided_slice %195 {offsets = [0, 128], sizes = [32, 128], strides = [1, 1]} : vector<32x384xf32> to vector<32x128xf32>
    %cst_79 = arith.constant dense<0.000000e+00> : vector<32x128xf32>
    %202 = tpu.matmul %4, %201, %cst_79 {dimension_numbers = #tpu.dot_dimension_numbers<[1], [0], [0], [1], [0, 0, 1, 1], [], []>} : vector<32x32xf32>, vector<32x128xf32>, vector<32x128xf32> -> vector<32x128xf32>
    %203 = arith.addf %200, %202 : vector<32x128xf32>
    %204 = vector.extract_strided_slice %195 {offsets = [0, 256], sizes = [32, 128], strides = [1, 1]} : vector<32x384xf32> to vector<32x128xf32>
    %cst_80 = arith.constant dense<0.000000e+00> : vector<32x128xf32>
    %205 = tpu.matmul %6, %204, %cst_80 {dimension_numbers = #tpu.dot_dimension_numbers<[1], [0], [0], [1], [0, 0, 1, 1], [], []>} : vector<32x32xf32>, vector<32x128xf32>, vector<32x128xf32> -> vector<32x128xf32>
    %206 = arith.addf %203, %205 : vector<32x128xf32>
    %207 = vector.extract_strided_slice %206 {offsets = [0, 0], sizes = [32, 96], strides = [1, 1]} : vector<32x128xf32> to vector<32x96xf32>
    %cst_81 = arith.constant 5.000000e-01 : f32
    %208 = vector.broadcast %cst_81 : f32 to vector<32x96xf32>
    %209 = arith.mulf %208, %207 : vector<32x96xf32>
    %210 = math.tanh %209 : vector<32x96xf32>
    %cst_82 = arith.constant 1.000000e+00 : f32
    %211 = vector.broadcast %cst_82 : f32 to vector<32x96xf32>
    %212 = arith.addf %210, %211 : vector<32x96xf32>
    %cst_83 = arith.constant 5.000000e-01 : f32
    %213 = vector.broadcast %cst_83 : f32 to vector<32x96xf32>
    %214 = arith.mulf %213, %212 : vector<32x96xf32>
    %215 = vector.extract_strided_slice %214 {offsets = [0, 0], sizes = [32, 32], strides = [1, 1]} : vector<32x96xf32> to vector<32x32xf32>
    %216 = vector.extract_strided_slice %214 {offsets = [0, 32], sizes = [32, 32], strides = [1, 1]} : vector<32x96xf32> to vector<32x32xf32>
    %217 = vector.extract_strided_slice %214 {offsets = [0, 64], sizes = [32, 32], strides = [1, 1]} : vector<32x96xf32> to vector<32x32xf32>
    %218 = vector.extract_strided_slice %206 {offsets = [0, 96], sizes = [32, 32], strides = [1, 1]} : vector<32x128xf32> to vector<32x32xf32>
    %219 = math.tanh %218 : vector<32x32xf32>
    %220 = arith.mulf %216, %191 : vector<32x32xf32>
    %221 = arith.mulf %215, %219 : vector<32x32xf32>
    %222 = arith.addf %220, %221 : vector<32x32xf32>
    %223 = math.tanh %222 : vector<32x32xf32>
    %224 = arith.mulf %217, %223 : vector<32x32xf32>
    %c0_84 = arith.constant 0 : index
    %c192 = arith.constant 192 : index
    %225 = vector.load %arg6[%c0_84, %c192] : memref<32x256xf32, #tpu.memory_space<vmem>>, vector<32x32xf32>
    tpu.vector_store %arg6[%c0_84, %c192], %224 {strides = array<i32>} : memref<32x256xf32, #tpu.memory_space<vmem>>, vector<32x32xf32>,
    %cst_85 = arith.constant dense<0.000000e+00> : vector<32x384xf32>
    %226 = tpu.matmul %224, %0, %cst_85 {dimension_numbers = #tpu.dot_dimension_numbers<[1], [0], [0], [1], [0, 0, 1, 1], [], []>} : vector<32x32xf32>, vector<32x384xf32>, vector<32x384xf32> -> vector<32x384xf32>
    %c7 = arith.constant 7 : index
    %c0_86 = arith.constant 0 : index
    %c0_87 = arith.constant 0 : index
    %227 = vector.load %arg3[%c7, %c0_86, %c0_87] : memref<8x32x128xf32, #tpu.memory_space<vmem>>, vector<1x32x128xf32>
    %228 = vector.shape_cast %227 : vector<1x32x128xf32> to vector<32x128xf32>
    %229 = vector.extract_strided_slice %226 {offsets = [0, 0], sizes = [32, 128], strides = [1, 1]} : vector<32x384xf32> to vector<32x128xf32>
    %cst_88 = arith.constant dense<0.000000e+00> : vector<32x128xf32>
    %230 = tpu.matmul %2, %229, %cst_88 {dimension_numbers = #tpu.dot_dimension_numbers<[1], [0], [0], [1], [0, 0, 1, 1], [], []>} : vector<32x32xf32>, vector<32x128xf32>, vector<32x128xf32> -> vector<32x128xf32>
    %231 = arith.addf %228, %230 : vector<32x128xf32>
    %232 = vector.extract_strided_slice %226 {offsets = [0, 128], sizes = [32, 128], strides = [1, 1]} : vector<32x384xf32> to vector<32x128xf32>
    %cst_89 = arith.constant dense<0.000000e+00> : vector<32x128xf32>
    %233 = tpu.matmul %4, %232, %cst_89 {dimension_numbers = #tpu.dot_dimension_numbers<[1], [0], [0], [1], [0, 0, 1, 1], [], []>} : vector<32x32xf32>, vector<32x128xf32>, vector<32x128xf32> -> vector<32x128xf32>
    %234 = arith.addf %231, %233 : vector<32x128xf32>
    %235 = vector.extract_strided_slice %226 {offsets = [0, 256], sizes = [32, 128], strides = [1, 1]} : vector<32x384xf32> to vector<32x128xf32>
    %cst_90 = arith.constant dense<0.000000e+00> : vector<32x128xf32>
    %236 = tpu.matmul %6, %235, %cst_90 {dimension_numbers = #tpu.dot_dimension_numbers<[1], [0], [0], [1], [0, 0, 1, 1], [], []>} : vector<32x32xf32>, vector<32x128xf32>, vector<32x128xf32> -> vector<32x128xf32>
    %237 = arith.addf %234, %236 : vector<32x128xf32>
    %238 = vector.extract_strided_slice %237 {offsets = [0, 0], sizes = [32, 96], strides = [1, 1]} : vector<32x128xf32> to vector<32x96xf32>
    %cst_91 = arith.constant 5.000000e-01 : f32
    %239 = vector.broadcast %cst_91 : f32 to vector<32x96xf32>
    %240 = arith.mulf %239, %238 : vector<32x96xf32>
    %241 = math.tanh %240 : vector<32x96xf32>
    %cst_92 = arith.constant 1.000000e+00 : f32
    %242 = vector.broadcast %cst_92 : f32 to vector<32x96xf32>
    %243 = arith.addf %241, %242 : vector<32x96xf32>
    %cst_93 = arith.constant 5.000000e-01 : f32
    %244 = vector.broadcast %cst_93 : f32 to vector<32x96xf32>
    %245 = arith.mulf %244, %243 : vector<32x96xf32>
    %246 = vector.extract_strided_slice %245 {offsets = [0, 0], sizes = [32, 32], strides = [1, 1]} : vector<32x96xf32> to vector<32x32xf32>
    %247 = vector.extract_strided_slice %245 {offsets = [0, 32], sizes = [32, 32], strides = [1, 1]} : vector<32x96xf32> to vector<32x32xf32>
    %248 = vector.extract_strided_slice %245 {offsets = [0, 64], sizes = [32, 32], strides = [1, 1]} : vector<32x96xf32> to vector<32x32xf32>
    %249 = vector.extract_strided_slice %237 {offsets = [0, 96], sizes = [32, 32], strides = [1, 1]} : vector<32x128xf32> to vector<32x32xf32>
    %250 = math.tanh %249 : vector<32x32xf32>
    %251 = arith.mulf %247, %222 : vector<32x32xf32>
    %252 = arith.mulf %246, %250 : vector<32x32xf32>
    %253 = arith.addf %251, %252 : vector<32x32xf32>
    %254 = math.tanh %253 : vector<32x32xf32>
    %255 = arith.mulf %248, %254 : vector<32x32xf32>
    %c0_94 = arith.constant 0 : index
    %c224 = arith.constant 224 : index
    %256 = vector.load %arg6[%c0_94, %c224] : memref<32x256xf32, #tpu.memory_space<vmem>>, vector<32x32xf32>
    tpu.vector_store %arg6[%c0_94, %c224], %255 {strides = array<i32>} : memref<32x256xf32, #tpu.memory_space<vmem>>, vector<32x32xf32>,
    %c0_95 = arith.constant 0 : index
    %c0_96 = arith.constant 0 : index
    %257 = vector.load %arg7[%c0_95, %c0_96] : memref<32x32xf32, #tpu.memory_space<vmem>>, vector<32x32xf32>
    tpu.vector_store %arg7[%c0_95, %c0_96], %255 {strides = array<i32>} : memref<32x32xf32, #tpu.memory_space<vmem>>, vector<32x32xf32>,
    %c0_97 = arith.constant 0 : index
    %c0_98 = arith.constant 0 : index
    %258 = vector.load %arg8[%c0_97, %c0_98] : memref<32x32xf32, #tpu.memory_space<vmem>>, vector<32x32xf32>
    tpu.vector_store %arg8[%c0_97, %c0_98], %253 {strides = array<i32>} : memref<32x32xf32, #tpu.memory_space<vmem>>, vector<32x32xf32>,
    return
  }
  func.func @transform_0(%arg0: i32) -> (i32, i32, i32) {
    %c0_i32 = arith.constant 0 : i32
    %c0_i32_0 = arith.constant 0 : i32
    %c0_i32_1 = arith.constant 0 : i32
    %c0_i32_2 = arith.constant 0 : i32
    return %c0_i32, %c0_i32_0, %c0_i32_1 : i32, i32, i32
  }
  func.func @transform_1(%arg0: i32) -> (i32, i32) {
    %c0_i32 = arith.constant 0 : i32
    %c0_i32_0 = arith.constant 0 : i32
    %c0_i32_1 = arith.constant 0 : i32
    return %c0_i32, %c0_i32_0 : i32, i32
  }
  func.func @transform_2(%arg0: i32) -> (i32, i32, i32) {
    %c0_i32 = arith.constant 0 : i32
    %c0_i32_0 = arith.constant 0 : i32
    %c0_i32_1 = arith.constant 0 : i32
    %c0_i32_2 = arith.constant 0 : i32
    return %c0_i32, %c0_i32_0, %c0_i32_1 : i32, i32, i32
  }
  func.func @transform_3(%arg0: i32) -> (i32, i32) {
    %c0_i32 = arith.constant 0 : i32
    %c0_i32_0 = arith.constant 0 : i32
    %c0_i32_1 = arith.constant 0 : i32
    return %c0_i32, %c0_i32_0 : i32, i32
  }
  func.func @transform_4(%arg0: i32) -> (i32, i32) {
    %c0_i32 = arith.constant 0 : i32
    %c0_i32_0 = arith.constant 0 : i32
    %c0_i32_1 = arith.constant 0 : i32
    return %c0_i32, %c0_i32_0 : i32, i32
  }
  func.func @transform_5(%arg0: i32) -> (i32, i32) {
    %c0_i32 = arith.constant 0 : i32
    %c0_i32_0 = arith.constant 0 : i32
    %c0_i32_1 = arith.constant 0 : i32
    return %c0_i32, %c0_i32_0 : i32, i32
  }
  func.func @transform_6(%arg0: i32) -> (i32, i32) {
    %c0_i32 = arith.constant 0 : i32
    %c0_i32_0 = arith.constant 0 : i32
    %c0_i32_1 = arith.constant 0 : i32
    return %c0_i32, %c0_i32_0 : i32, i32
  }
  func.func @transform_7(%arg0: i32) -> (i32, i32) {
    %c0_i32 = arith.constant 0 : i32
    %c0_i32_0 = arith.constant 0 : i32
    %c0_i32_1 = arith.constant 0 : i32
    return %c0_i32, %c0_i32_0 : i32, i32
  }
}

</mosaic_0001>

<bundles_post_ra>
// kernel: encoder_forward_pallas.2
= control target key start
LH: loop header
LB: loop body
LE: loop exit
PB: predicated region body
PF: predicated region fallthrough
CT: control target
= control target key end

     0   :  { %13 = vsyncpa [#allocation3], 0  ;;  %v6278_v7 = vmov 0.0   ;;  %s7474_s0 = inlined_call_operand.vmem [shape: f32[3,32,32], index: 0, kind: input, shape index: {}]   ;;  %s7475_s1 = inlined_call_operand.vmem [shape: f32[32,384], index: 1, kind: input, shape index: {}]   ;;  %s7476_s2 = inlined_call_operand.vmem [shape: f32[8,32,128], index: 2, kind: input, shape index: {}]   ;;  %s7477_s3 = inlined_call_operand.vmem [shape: f32[32,32], index: 3, kind: input, shape index: {}]   ;;  %s7478_s4 = inlined_call_operand.vmem [shape: f32[32,32], index: 4, kind: input, shape index: {}]   ;;  %s7479_s5 = inlined_call_operand.vmem [shape: f32[32,256], index: 5, kind: output, shape index: {0}]   ;;  %s7480_s6 = inlined_call_operand.hbm [shape: f32[32,32], index: 6, kind: output, shape index: {1}]   ;;  %s7481_s7 = inlined_call_operand.hbm [shape: f32[32,32], index: 7, kind: output, shape index: {2}]  }
   0x1   :  { %v26_v0 = vld [vmem:[%s7475_s1 + $0x8] sm:$0xff]  ;;  %v29_v1 = vld [vmem:[%s7475_s1 + $0x20] sm:$0xff]  ;;  %v28_v4 = vld [vmem:[%s7475_s1 + $0x18] sm:$0xff]  ;;  %136 = vmatprep.mubr.f32.mxu0 %v6278_v7 }
   0x2   :  { %v25_v2 = vld [vmem:[%s7475_s1] sm:$0xff]  ;;  %v6335_v3 = vpack.c.bf16 %v29_v1, %v26_v0  ;;  %v32_v5 = vld [vmem:[%s7475_s1 + $0x38] sm:$0xff]  ;;  %v35_v6 = vld [vmem:[%s7475_s1 + $0x50] sm:$0xff] }
   0x3   :  { %v6347_v8 = vpack.c.bf16 %v28_v4, %v25_v2  ;;  %v6349_v9 = vpack.c.bf16 %v35_v6, %v32_v5  ;;  %v31_v10 = vld [vmem:[%s7475_s1 + $0x30] sm:$0xff]  ;;  %v34_v11 = vld [vmem:[%s7475_s1 + $0x48] sm:$0xff] }
   0x4   :  { %5603 = vmatprep.subr.bf16.mxu0 %v6335_v3  ;;  %v27_v12 = vld [vmem:[%s7475_s1 + $0x10] sm:$0xff]  ;;  %v30_v13 = vld [vmem:[%s7475_s1 + $0x28] sm:$0xff]  ;;  %v6365_v14 = vpack.c.bf16 %v34_v11, %v31_v10 }
   0x5   :  { %5605 = vmatpush1.bf16.msra.mxu0 %v6347_v8  ;;  %v6368_v15 = vpack.c.bf16 %v30_v13, %v27_v12 }
   0x6   :  { %5607 = vmatprep.subr.bf16.mxu0 %v6349_v9 }
   0x7   :  { %14 = vsyncpa [#allocation5], 0  ;;  %v33_v16 = vld [vmem:[%s7475_s1 + $0x40] sm:$0xff]  ;;  %v36_v17 = vld [vmem:[%s7475_s1 + $0x58] sm:$0xff]  ;;  %vm59_vm0 = vcmask 261120   ;;  %s6279_s15 = smov 32  }
   0x8   :  { %v51_v18 = vld [vmem:[%s7477_s3] sm:$0xff]  ;;  %v6381_v19 = vpack.c.bf16 %v36_v17, %v33_v16  ;;  %v52_v20 = vld [vmem:[%s7477_s3 + $0x8] sm:$0xff]  ;;  %v53_v21 = vld [vmem:[%s7477_s3 + $0x10] sm:$0xff]  ;;  %vm1235_vm1 = vcmask 523520   ;;  %vm1790_vm2 = vcmask 785920   ;;  %s6282_s26 = smov [#allocation4]  }
   0x9   :  { %5609 = vmatpush1.bf16.msra.mxu0 %v6365_v14  ;;  %v54_v22 = vld [vmem:[%s7477_s3 + $0x18] sm:$0xff]  ;;  %v6415_v23 = vld [vmem:[%s7474_s0] sm:$0xff]  ;;  %v6422_v36 = vld [vmem:[%s7474_s0 + $0x8] sm:$0xff]  ;;  %s4685_s27 = sshll.u32 %s6282_s26, 4  ;;  %vm2365_vm3 = vcmask 1048320   ;;  %s4686_s27 = int_to_ptr.vmem [resolvable:$true] %s4685_s27 }
   0xa   :  { %5611 = vmatprep.subr.bf16.mxu0 %v6368_v15  ;;  %5176 = vmatprep.mubr.msk.f32.mxu1 %vm59_vm0, %v6415_v23  ;;  %v6427_v38 = vld [vmem:[%s7474_s0 + $0x10] sm:$0xff]  ;;  %v6436_v41 = vld [vmem:[%s7474_s0 + $0x18] sm:$0xff]  ;;  %v6441_v43 = vld [vmem:[%s7474_s0 + $0x20] sm:$0xff]  ;;  %s6230_s28 = scalar_lea.vmem %s4686_s27, 512  ;;  %p6235_p1 = scmp.lt.s32.totalorder %s4686_s27, %s4686_s27 }
   0xb   :  { %v6450_v46 = vld [vmem:[%s7474_s0 + $0x28] sm:$0xff]  ;;  %v6455_v47 = vld [vmem:[%s7474_s0 + $0x30] sm:$0xff]  ;;  %v6464_v48 = vld [vmem:[%s7474_s0 + $0x38] sm:$0xff]  ;;  %p6231_p0 = scmp.ne.s32.totalorder %s4686_s27, %s6230_s28  ;;  %p6236_p2 = scmp.lt.s32.totalorder %s6230_s28, %s6230_s28 }
   0xc   :  { %4710 = vmatmul.mubr.msk.f32.vlgmr.msra.gmra.mrb[0].mxu0 %vm59_vm0, %v51_v18  ;;  %v6469_v49 = vld [vmem:[%s7474_s0 + $0x40] sm:$0xff]  ;;  %v6478_v50 = vld [vmem:[%s7474_s0 + $0x48] sm:$0xff]  ;;  %v6483_v51 = vld [vmem:[%s7474_s0 + $0x50] sm:$0xff] }
   0xd   :  { %142 = vmatprep.mubr.f32.mxu0 %v6278_v7  ;;  %5613 = vmatpush3.bf16.msra.mxu0 %v6368_v15  ;;  %v6492_v52 = vld [vmem:[%s7474_s0 + $0x58] sm:$0xff]  ;;  %v246_v53 = vld [vmem:[%s7476_s2] sm:$0xff]  ;;  %v247_v54 = vld [vmem:[%s7476_s2 + $0x8] sm:$0xff]  ;;  %p6237_p3 = por %p6236_p2, %p6235_p1 }
   0xe   :  { %5615 = vmatprep.subr.bf16.mxu0 %v6381_v19  ;;  %v248_v59 = vld [vmem:[%s7476_s2 + $0x10] sm:$0xff]  ;;  %v249_v61 = vld [vmem:[%s7476_s2 + $0x18] sm:$0xff]  ;;  %v55_v5 = vld [vmem:[%s7478_s4] sm:$0xff] }
   0xf   :  { %v56_v10 = vld [vmem:[%s7478_s4 + $0x8] sm:$0xff]  ;;  %v57_v11 = vld [vmem:[%s7478_s4 + $0x10] sm:$0xff]  ;;  %v58_v12 = vld [vmem:[%s7478_s4 + $0x18] sm:$0xff]  ;;  %s6280_s4 = smov 64   ;;  %p6238_p4 = pnand %p6237_p3, %p6231_p0 }
  0x10   :  { %4711 = vmatmul.mubr.msk.f32.gmra.mrb[2].mxu0 %vm59_vm0, %v52_v20 }
  0x11   :  { %148 = vmatprep.mubr.f32.mxu0 %v6278_v7  ;;  %5617 = vmatpush3.bf16.msra.mxu0 %v6381_v19 }
  0x12   :  { %5643 = vmatprep.subr.bf16.mxu0 %v6335_v3 }
  0x14   :  { %4712 = vmatmul.mubr.msk.f32.gmra.mrb[4].mxu0 %vm59_vm0, %v53_v21 }
  0x15   :  { %154 = vmatprep.mubr.f32.mxu0 %v6278_v7 }
  0x18   :  { %4713 = vmatmul.mubr.msk.f32.gmra.mrb[6].mxu0 %vm59_vm0, %v54_v22 }
  0x19   :  { %5162 = vmatprep.mubr.msk.f32.mxu0 %vm59_vm0, %v51_v18 }
  0x1c   :  { %5163 = vmatmul.mubr.msk.f32.vlgmr.msra.gmra.mrb[8].mxu0 %vm59_vm0, %v52_v20 }
  0x1d   :  { %5165 = vmatprep.mubr.msk.f32.mxu0 %vm59_vm0, %v53_v21  ;;  %5645 = vmatpush1.bf16.msra.mxu0 %v6347_v8 }
  0x1e   :  { %5647 = vmatprep.subr.bf16.mxu0 %v6349_v9 }
  0x20   :  { %5166 = vmatmul.mubr.msk.f32.gmra.mrb[10].mxu0 %vm59_vm0, %v54_v22 }
  0x21   :  { %5649 = vmatpush1.bf16.msra.mxu0 %v6365_v14  ;;  %749 = vmatprep.mubr.f32.mxu0 %v6278_v7 }
  0x22   :  { %5651 = vmatprep.subr.bf16.mxu0 %v6368_v15 }
  0xdf   :  { %v138_v24 = vpop.f32.mrb[0].mxu0 }
  0xe0   :  { %v140_v25 = vpop.f32.mrb[1].mxu0 }
  0xe3   :  { %v144_v26 = vpop.f32.mrb[2].mxu0 }
  0xe4   :  { %v5618_v27 = vpack.c.bf16 %v144_v26, %v138_v24  ;;  %v146_v28 = vpop.f32.mrb[3].mxu0 }
  0xe5   :  { %v5626_v29 = vpack.c.bf16 %v146_v28, %v140_v25 }
  0xe6   :  { %5619 = vmatprep.subr.bf16.mxu1 %v5618_v27 }
  0xe7   :  { %v150_v30 = vpop.f32.mrb[4].mxu0  ;;  %5621 = vmatpush3.bf16.msra.mxu1 %v5618_v27 }
  0xe8   :  { %v152_v31 = vpop.f32.mrb[5].mxu0 }
  0xeb   :  { %v156_v32 = vpop.f32.mrb[6].mxu0 }
  0xec   :  { %v5622_v33 = vpack.c.bf16 %v156_v32, %v150_v30  ;;  %v158_v34 = vpop.f32.mrb[7].mxu0 }
  0xed   :  { %v5630_v35 = vpack.c.bf16 %v158_v34, %v152_v31 }
  0xee   :  { %5623 = vmatprep.subr.bf16.mxu1 %v5622_v33 }
  0xef   :  { %5625 = vmatpush3.bf16.msra.mxu1 %v5622_v33  ;;  %v5164_v37 = vpop.f32.mrb[8].mxu0 }
  0xf0   :  { %5627 = vmatprep.subr.bf16.mxu1 %v5626_v29  ;;  %v227_v39 = vpop.f32.mrb[9].mxu0 }
  0xf1   :  { %v5634_v40 = vpack.c.bf16 %v5164_v37, %v227_v39 }
  0xf2   :  { %5177 = vmatmul.mubr.msk.f32.vlgmr.msra.gmra.mrb[0].mxu1 %vm59_vm0, %v6422_v36 }
  0xf3   :  { %5629 = vmatpush3.bf16.msra.mxu1 %v5626_v29  ;;  %5179 = vmatprep.mubr.msk.f32.mxu1 %vm59_vm0, %v6427_v38  ;;  %v5167_v42 = vpop.f32.mrb[10].mxu0 }
  0xf4   :  { %5631 = vmatprep.subr.bf16.mxu1 %v5630_v35  ;;  %v237_v44 = vpop.f32.mrb[11].mxu0 }
  0xf5   :  { %v5638_v45 = vpack.c.bf16 %v5167_v42, %v237_v44 }
  0xf6   :  { %5180 = vmatmul.mubr.msk.f32.gmra.mrb[2].mxu1 %vm59_vm0, %v6436_v41 }
  0xf7   :  { %5633 = vmatpush3.bf16.msra.mxu1 %v5630_v35  ;;  %5190 = vmatprep.mubr.msk.f32.mxu1 %vm59_vm0, %v6441_v43 }
  0xf8   :  { %5635 = vmatprep.subr.bf16.mxu1 %v5634_v40 }
  0xfa   :  { %5191 = vmatmul.mubr.msk.f32.vlgmr.msra.gmra.mrb[0].mxu1 %vm59_vm0, %v6450_v46 }
  0xfb   :  { %5637 = vmatpush3.bf16.msra.mxu1 %v5634_v40  ;;  %5193 = vmatprep.mubr.msk.f32.mxu1 %vm59_vm0, %v6455_v47 }
  0xfc   :  { %5639 = vmatprep.subr.bf16.mxu1 %v5638_v45 }
  0xfe   :  { %5194 = vmatmul.mubr.msk.f32.gmra.mrb[2].mxu1 %vm59_vm0, %v6464_v48 }
  0xff   :  { %5641 = vmatpush3.bf16.msra.mxu1 %v5638_v45  ;;  %5204 = vmatprep.mubr.msk.f32.mxu1 %vm59_vm0, %v6469_v49 }
 0x102   :  { %5205 = vmatmul.mubr.msk.f32.vlgmr.msra.gmra.mrb[0].mxu1 %vm59_vm0, %v6478_v50 }
 0x103   :  { %5207 = vmatprep.mubr.msk.f32.mxu1 %vm59_vm0, %v6483_v51 }
 0x106   :  { %5208 = vmatmul.mubr.msk.f32.gmra.mrb[2].mxu1 %vm59_vm0, %v6492_v52 }
 0x107   :  { %5232 = vmatprep.mubr.msk.f32.mxu1 %vm59_vm0, %v6415_v23 }
 0x1d5   :  { %v5206_v55 = vpop.f32.mrb[0].mxu1 }
 0x1d6   :  { %v530_v56 = vpop.f32.mrb[1].mxu1  ;;  %v5922_v58 = vadd.f32 %v5206_v55, %v247_v54 }
 0x1d7   :  { %v5923_v57 = vadd.f32 %v530_v56, %v246_v53 }
 0x1d8   :  { %v554_v16 = vmul.f32 0.5, %v5922_v58 }
 0x1d9   :  { %6026 = vtanh.f32 %v5923_v57  ;;  %v5209_v60 = vpop.f32.mrb[2].mxu1  ;;  %v553_v13 = vmul.f32 0.5, %v5923_v57 }
 0x1da   :  { %v540_v62 = vpop.f32.mrb[3].mxu1  ;;  %6028 = vtanh.f32 %v5922_v58  ;;  %v5924_v0 = vadd.f32 %v5209_v60, %v249_v61 }
 0x1db   :  { %v5925_v63 = vadd.f32 %v540_v62, %v248_v59 }
 0x1dc   :  { %v556_v18 = vmul.f32 0.5, %v5924_v0 }
 0x1dd   :  { %6030 = vtanh.f32 %v5925_v63  ;;  %v555_v17 = vmul.f32 0.5, %v5925_v63 }
 0x1de   :  { %6032 = vtanh.f32 %v5924_v0 }
 0x1df   :  { %6034 = vtanh.f32 %v553_v13 }
 0x1e0   :  { %6036 = vtanh.f32 %v554_v16 }
 0x1e1   :  { %6038 = vtanh.f32 %v555_v17 }
 0x1e2   :  { %6040 = vtanh.f32 %v556_v18 }
 0x1e3   :  { %v6027_v1 = vpop.eup %6026 }
 0x1e4   :  { %597 = vrot.lane.b32.xlu0 %v6027_v1, %s6279_s15  ;;  %v6029_v2 = vpop.eup %6028 }
 0x1e7   :  { %v6031_v4 = vpop.eup %6030 }
 0x1e8   :  { %599 = vrot.lane.b32.xlu0 %v6029_v2, %s6279_s15  ;;  %601 = vrot.lane.b32.xlu1 %v6031_v4, %s6279_s15  ;;  %v6033_v6 = vpop.eup %6032 }
 0x1e9   :  { %v6035_v20 = vpop.eup %6034 }
 0x1ea   :  { %v561_v21 = vadd.f32 1.0, %v6035_v20  ;;  %v6037_v22 = vpop.eup %6036 }
 0x1eb   :  { %v562_v24 = vadd.f32 1.0, %v6037_v22  ;;  %v6039_v26 = vpop.eup %6038 }
 0x1ec   :  { %577 = vrot.lane.b32.xlu0 %v55_v5, %s6279_s15  ;;  %603 = vrot.lane.b32.xlu1 %v6033_v6, %s6279_s15  ;;  %v565_v25 = vmul.f32 0.5, %v561_v21  ;;  %v563_v29 = vadd.f32 1.0, %v6039_v26  ;;  %v6041_v31 = vpop.eup %6040 }
 0x1ed   :  { %v566_v30 = vmul.f32 0.5, %v562_v24  ;;  %v564_v35 = vadd.f32 1.0, %v6041_v31 }
 0x1ee   :  { %v567_v37 = vmul.f32 0.5, %v563_v29 }
 0x1ef   :  { %v568_v42 = vmul.f32 0.5, %v564_v35 }
 0x1f0   :  { %579 = vrot.lane.b32.xlu0 %v56_v10, %s6279_s15 }
 0x1f4   :  { %581 = vrot.lane.b32.xlu0 %v57_v11, %s6279_s15 }
 0x1f8   :  { %583 = vrot.lane.b32.xlu0 %v58_v12, %s6279_s15 }
 0x256   :  { %v598_v27 = vpop.permute.xlu0 %597 }
 0x257   :  { %v609_v28 = vmul.f32 %v598_v27, %v565_v25 }
 0x259   :  { %617 = vrot.lane.b32.xlu1 %v609_v28, %s6279_s15 }
 0x25a   :  { %v600_v32 = vpop.permute.xlu0 %599  ;;  %v602_v33 = vpop.permute.xlu1 %601 }
 0x25b   :  { %v610_v34 = vmul.f32 %v600_v32, %v566_v30  ;;  %v611_v39 = vmul.f32 %v602_v33, %v567_v37 }
 0x25d   :  { %619 = vrot.lane.b32.xlu1 %v610_v34, %s6279_s15 }
 0x25e   :  { %v604_v40 = vpop.permute.xlu1 %603  ;;  %v578_v45 = vpop.permute.xlu0 %577 }
 0x25f   :  { %v612_v44 = vmul.f32 %v604_v40, %v568_v42  ;;  %v589_v54 = vmul.f32 %v578_v45, %v565_v25 }
 0x261   :  { %621 = vrot.lane.b32.xlu1 %v611_v39, %s6279_s15 }
 0x262   :  { %v580_v53 = vpop.permute.xlu0 %579 }
 0x263   :  { %v590_v58 = vmul.f32 %v580_v53, %v566_v30 }
 0x265   :  { %623 = vrot.lane.b32.xlu1 %v612_v44, %s6279_s15 }
 0x266   :  { %v582_v57 = vpop.permute.xlu0 %581 }
 0x267   :  { %v591_v61 = vmul.f32 %v582_v57, %v567_v37 }
 0x26a   :  { %v584_v62 = vpop.permute.xlu0 %583 }
 0x26b   :  { %v592_v1 = vmul.f32 %v584_v62, %v568_v42 }
 0x2cb   :  { %v618_v55 = vpop.permute.xlu1 %617 }
 0x2cc   :  { %v6534_v56 = vadd.f32 %v618_v55, %v589_v54 }
 0x2ce   :  { %6042 = vtanh.f32 %v6534_v56 }
 0x2cf   :  { %v620_v59 = vpop.permute.xlu1 %619 }
 0x2d0   :  { %v6537_v60 = vadd.f32 %v620_v59, %v590_v58  ;;  %v4739_v58 = vld [vmem:[%s7476_s2 + $0x28] sm:$0xff]  ;;  %v4738_v59 = vld [vmem:[%s7476_s2 + $0x20] sm:$0xff] }
 0x2d2   :  { %6044 = vtanh.f32 %v6537_v60 }
 0x2d3   :  { %v622_v63 = vpop.permute.xlu1 %621 }
 0x2d4   :  { %v6540_v0 = vadd.f32 %v622_v63, %v591_v61 }
 0x2d6   :  { %6046 = vtanh.f32 %v6540_v0 }
 0x2d7   :  { %v624_v2 = vpop.permute.xlu1 %623 }
 0x2d8   :  { %v6043_v4 = vpop.eup %6042  ;;  %v6543_v5 = vadd.f32 %v624_v2, %v592_v1  ;;  %v4741_v2 = vld [vmem:[%s7476_s2 + $0x38] sm:$0xff] }
 0x2d9   :  { %641 = vrot.lane.b32.xlu0 %v6043_v4, %s6279_s15  ;;  %v4740_v4 = vld [vmem:[%s7476_s2 + $0x30] sm:$0xff] }
 0x2da   :  { %6048 = vtanh.f32 %v6543_v5 }
 0x2dc   :  { %v6045_v6 = vpop.eup %6044 }
 0x2dd   :  { %643 = vrot.lane.b32.xlu1 %v6045_v6, %s6279_s15 }
 0x2e0   :  { %v6047_v10 = vpop.eup %6046 }
 0x2e1   :  { %645 = vrot.lane.b32.xlu0 %v6047_v10, %s6279_s15 }
 0x2e4   :  { %v6049_v11 = vpop.eup %6048 }
 0x2e5   :  { %647 = vrot.lane.b32.xlu1 %v6049_v11, %s6279_s15 }
 0x34b   :  { %v642_v12 = vpop.permute.xlu0 %641 }
 0x34c   :  { %v653_v13 = vmul.f32 %v642_v12, %v565_v25 }
 0x34e   :  { %661 = vrot.lane.b32.xlu0 %v653_v13, %s6280_s4 }
 0x34f   :  { %v644_v16 = vpop.permute.xlu1 %643 }
 0x350   :  { %v654_v17 = vmul.f32 %v644_v16, %v566_v30 }
 0x352   :  { %663 = vrot.lane.b32.xlu1 %v654_v17, %s6280_s4 }
 0x353   :  { %v646_v18 = vpop.permute.xlu0 %645 }
 0x354   :  { %v655_v20 = vmul.f32 %v646_v18, %v567_v37 }
 0x356   :  { %665 = vrot.lane.b32.xlu0 %v655_v20, %s6280_s4 }
 0x357   :  { %v648_v21 = vpop.permute.xlu1 %647 }
 0x358   :  { %v656_v22 = vmul.f32 %v648_v21, %v568_v42 }
 0x35a   :  { %667 = vrot.lane.b32.xlu1 %v656_v22, %s6280_s4 }
 0x3c0   :  { %v662_v24 = vpop.permute.xlu0 %661 }
 0x3c1   :  { %673 = vst.msk [vmem:[%s7479_s5] sm:$0xff] %vm59_vm0, %v662_v24  ;;  %4730 = vmatmul.mubr.msk.f32.vlgmr.msra.gmra.mrb[12].mxu0 %vm59_vm0, %v662_v24 }
 0x3c2   :  { %755 = vmatprep.mubr.f32.mxu0 %v6278_v7  ;;  %5653 = vmatpush3.bf16.msra.mxu0 %v6368_v15 }
 0x3c3   :  { %5655 = vmatprep.subr.bf16.mxu0 %v6381_v19 }
 0x3c4   :  { %v664_v25 = vpop.permute.xlu1 %663 }
 0x3c5   :  { %674 = vst.msk [vmem:[%s7479_s5 + $0x10] sm:$0xff] %vm59_vm0, %v664_v25  ;;  %4731 = vmatmul.mubr.msk.f32.gmra.mrb[14].mxu0 %vm59_vm0, %v664_v25 }
 0x3c6   :  { %761 = vmatprep.mubr.f32.mxu0 %v6278_v7  ;;  %5657 = vmatpush3.bf16.msra.mxu0 %v6381_v19 }
 0x3c7   :  { %5683 = vmatprep.subr.bf16.mxu0 %v6335_v3 }
 0x3c8   :  { %v666_v26 = vpop.permute.xlu0 %665 }
 0x3c9   :  { %675 = vst.msk [vmem:[%s7479_s5 + $0x20] sm:$0xff] %vm59_vm0, %v666_v26  ;;  %4732 = vmatmul.mubr.msk.f32.gmra.mrb[16].mxu0 %vm59_vm0, %v666_v26 }
 0x3ca   :  { %767 = vmatprep.mubr.f32.mxu0 %v6278_v7 }
 0x3cc   :  { %v668_v27 = vpop.permute.xlu1 %667 }
 0x3cd   :  { %676 = vst.msk [vmem:[%s7479_s5 + $0x30] sm:$0xff] %vm59_vm0, %v668_v27  ;;  %4733 = vmatmul.mubr.msk.f32.gmra.mrb[18].mxu0 %vm59_vm0, %v668_v27 }
 0x3ce   :  { %5218 = vmatprep.mubr.msk.f32.mxu0 %vm59_vm0, %v662_v24 }
 0x3d1   :  { %5219 = vmatmul.mubr.msk.f32.vlgmr.msra.gmra.mrb[20].mxu0 %vm59_vm0, %v664_v25 }
 0x3d2   :  { %5221 = vmatprep.mubr.msk.f32.mxu0 %vm59_vm0, %v666_v26  ;;  %5685 = vmatpush1.bf16.msra.mxu0 %v6347_v8 }
 0x3d3   :  { %5687 = vmatprep.subr.bf16.mxu0 %v6349_v9 }
 0x3d5   :  { %5222 = vmatmul.mubr.msk.f32.gmra.mrb[22].mxu0 %vm59_vm0, %v668_v27 }
 0x3d6   :  { %5689 = vmatpush1.bf16.msra.mxu0 %v6365_v14  ;;  %1320 = vmatprep.mubr.f32.mxu0 %v6278_v7 }
 0x3d7   :  { %5691 = vmatprep.subr.bf16.mxu0 %v6368_v15 }
 0x494   :  { %v751_v28 = vpop.f32.mrb[12].mxu0 }
 0x495   :  { %v753_v29 = vpop.f32.mrb[13].mxu0 }
 0x498   :  { %v757_v30 = vpop.f32.mrb[14].mxu0 }
 0x499   :  { %v5658_v31 = vpack.c.bf16 %v757_v30, %v751_v28  ;;  %v759_v32 = vpop.f32.mrb[15].mxu0 }
 0x49a   :  { %v5666_v33 = vpack.c.bf16 %v759_v32, %v753_v29 }
 0x49b   :  { %5659 = vmatprep.subr.bf16.mxu1 %v5658_v31 }
 0x49c   :  { %v763_v34 = vpop.f32.mrb[16].mxu0  ;;  %5661 = vmatpush3.bf16.msra.mxu1 %v5658_v31 }
 0x49d   :  { %v765_v35 = vpop.f32.mrb[17].mxu0 }
 0x4a0   :  { %v769_v37 = vpop.f32.mrb[18].mxu0 }
 0x4a1   :  { %v5662_v39 = vpack.c.bf16 %v769_v37, %v763_v34  ;;  %v771_v40 = vpop.f32.mrb[19].mxu0 }
 0x4a2   :  { %v5670_v42 = vpack.c.bf16 %v771_v40, %v765_v35 }
 0x4a3   :  { %5663 = vmatprep.subr.bf16.mxu1 %v5662_v39 }
 0x4a4   :  { %v5220_v44 = vpop.f32.mrb[20].mxu0  ;;  %5665 = vmatpush3.bf16.msra.mxu1 %v5662_v39 }
 0x4a5   :  { %v840_v45 = vpop.f32.mrb[21].mxu0  ;;  %5667 = vmatprep.subr.bf16.mxu1 %v5666_v33 }
 0x4a6   :  { %v5674_v53 = vpack.c.bf16 %v5220_v44, %v840_v45 }
 0x4a7   :  { %5233 = vmatmul.mubr.msk.f32.vlgmr.msra.gmra.mrb[4].mxu1 %vm59_vm0, %v6422_v36 }
 0x4a8   :  { %v5223_v54 = vpop.f32.mrb[22].mxu0  ;;  %5669 = vmatpush3.bf16.msra.mxu1 %v5666_v33  ;;  %5235 = vmatprep.mubr.msk.f32.mxu1 %vm59_vm0, %v6427_v38 }
 0x4a9   :  { %v850_v55 = vpop.f32.mrb[23].mxu0  ;;  %5671 = vmatprep.subr.bf16.mxu1 %v5670_v42 }
 0x4aa   :  { %v5678_v57 = vpack.c.bf16 %v5223_v54, %v850_v55 }
 0x4ab   :  { %5236 = vmatmul.mubr.msk.f32.gmra.mrb[6].mxu1 %vm59_vm0, %v6436_v41 }
 0x4ac   :  { %5673 = vmatpush3.bf16.msra.mxu1 %v5670_v42  ;;  %5246 = vmatprep.mubr.msk.f32.mxu1 %vm59_vm0, %v6441_v43 }
 0x4ad   :  { %5675 = vmatprep.subr.bf16.mxu1 %v5674_v53 }
 0x4af   :  { %5247 = vmatmul.mubr.msk.f32.vlgmr.msra.gmra.mrb[4].mxu1 %vm59_vm0, %v6450_v46 }
 0x4b0   :  { %5677 = vmatpush3.bf16.msra.mxu1 %v5674_v53  ;;  %5249 = vmatprep.mubr.msk.f32.mxu1 %vm59_vm0, %v6455_v47 }
 0x4b1   :  { %5679 = vmatprep.subr.bf16.mxu1 %v5678_v57 }
 0x4b3   :  { %5250 = vmatmul.mubr.msk.f32.gmra.mrb[6].mxu1 %vm59_vm0, %v6464_v48 }
 0x4b4   :  { %5681 = vmatpush3.bf16.msra.mxu1 %v5678_v57  ;;  %5260 = vmatprep.mubr.msk.f32.mxu1 %vm59_vm0, %v6469_v49 }
 0x4b7   :  { %5261 = vmatmul.mubr.msk.f32.vlgmr.msra.gmra.mrb[4].mxu1 %vm59_vm0, %v6478_v50 }
 0x4b8   :  { %5263 = vmatprep.mubr.msk.f32.mxu1 %vm59_vm0, %v6483_v51 }
 0x4bb   :  { %5264 = vmatmul.mubr.msk.f32.gmra.mrb[6].mxu1 %vm59_vm0, %v6492_v52 }
 0x4bc   :  { %5288 = vmatprep.mubr.msk.f32.mxu1 %vm59_vm0, %v6415_v23 }
 0x58a   :  { %v5262_v61 = vpop.f32.mrb[4].mxu1 }
 0x58b   :  { %v5926_v62 = vadd.f32 %v5262_v61, %v4739_v58  ;;  %v1108_v63 = vpop.f32.mrb[5].mxu1 }
 0x58c   :  { %v5927_v1 = vadd.f32 %v4738_v59, %v1108_v63 }
 0x58d   :  { %6050 = vtanh.f32 %v5926_v62  ;;  %v1132_v20 = vmul.f32 0.5, %v5926_v62 }
 0x58e   :  { %6052 = vtanh.f32 %v5927_v1  ;;  %v5265_v6 = vpop.f32.mrb[6].mxu1  ;;  %v1131_v21 = vmul.f32 0.5, %v5927_v1 }
 0x58f   :  { %v5928_v10 = vadd.f32 %v5265_v6, %v4741_v2  ;;  %v1118_v11 = vpop.f32.mrb[7].mxu1 }
 0x590   :  { %v5929_v12 = vadd.f32 %v4740_v4, %v1118_v11 }
 0x591   :  { %6054 = vtanh.f32 %v5928_v10  ;;  %v1134_v22 = vmul.f32 0.5, %v5928_v10 }
 0x592   :  { %6056 = vtanh.f32 %v5929_v12  ;;  %v1133_v24 = vmul.f32 0.5, %v5929_v12 }
 0x593   :  { %6058 = vtanh.f32 %v1132_v20 }
 0x594   :  { %6060 = vtanh.f32 %v1131_v21 }
 0x595   :  { %6062 = vtanh.f32 %v1134_v22 }
 0x596   :  { %6064 = vtanh.f32 %v1133_v24 }
 0x597   :  { %v6051_v13 = vpop.eup %6050 }
 0x598   :  { %v6053_v16 = vpop.eup %6052  ;;  %1161 = vrot.lane.b32.xlu1 %v6051_v13, %s6279_s15 }
 0x599   :  { %1159 = vrot.lane.b32.xlu0 %v6053_v16, %s6279_s15 }
 0x59b   :  { %v6055_v17 = vpop.eup %6054 }
 0x59c   :  { %v6057_v18 = vpop.eup %6056  ;;  %1165 = vrot.lane.b32.xlu1 %v6055_v17, %s6279_s15 }
 0x59d   :  { %1163 = vrot.lane.b32.xlu0 %v6057_v18, %s6279_s15  ;;  %v6059_v25 = vpop.eup %6058 }
 0x59e   :  { %v6061_v26 = vpop.eup %6060  ;;  %v1140_v27 = vadd.f32 1.0, %v6059_v25 }
 0x59f   :  { %v6063_v28 = vpop.eup %6062  ;;  %v1139_v29 = vadd.f32 1.0, %v6061_v26 }
 0x5a0   :  { %v6065_v30 = vpop.eup %6064  ;;  %v1142_v31 = vadd.f32 1.0, %v6063_v28  ;;  %v1144_v32 = vmul.f32 0.5, %v1140_v27 }
 0x5a1   :  { %v1141_v33 = vadd.f32 1.0, %v6065_v30  ;;  %v1143_v35 = vmul.f32 0.5, %v1139_v29 }
 0x5a2   :  { %v1146_v42 = vmul.f32 0.5, %v1142_v31  ;;  %v1152_v57 = vmul.f32 %v1144_v32, %v6537_v60 }
 0x5a3   :  { %v1145_v45 = vmul.f32 0.5, %v1141_v33  ;;  %v1151_v59 = vmul.f32 %v1143_v35, %v6534_v56 }
 0x5a4   :  { %v1154_v1 = vmul.f32 %v1146_v42, %v6543_v5 }
 0x5a5   :  { %v1153_v4 = vmul.f32 %v1145_v45, %v6540_v0 }
 0x60a   :  { %v1162_v34 = vpop.permute.xlu1 %1161 }
 0x60b   :  { %v1172_v37 = vmul.f32 %v1162_v34, %v1144_v32  ;;  %v1160_v39 = vpop.permute.xlu0 %1159 }
 0x60c   :  { %v1171_v40 = vmul.f32 %v1160_v39, %v1143_v35 }
 0x60d   :  { %1181 = vrot.lane.b32.xlu1 %v1172_v37, %s6279_s15 }
 0x60e   :  { %v1166_v44 = vpop.permute.xlu1 %1165  ;;  %1179 = vrot.lane.b32.xlu0 %v1171_v40, %s6279_s15 }
 0x60f   :  { %v1174_v53 = vmul.f32 %v1166_v44, %v1146_v42  ;;  %v1164_v54 = vpop.permute.xlu0 %1163 }
 0x610   :  { %v1173_v55 = vmul.f32 %v1164_v54, %v1145_v45 }
 0x611   :  { %1185 = vrot.lane.b32.xlu1 %v1174_v53, %s6279_s15 }
 0x612   :  { %1183 = vrot.lane.b32.xlu0 %v1173_v55, %s6279_s15 }
 0x67f   :  { %v1182_v58 = vpop.permute.xlu1 %1181 }
 0x680   :  { %v6636_v61 = vadd.f32 %v1182_v58, %v1152_v57  ;;  %v1180_v62 = vpop.permute.xlu0 %1179  ;;  %v4763_v58 = vld [vmem:[%s7476_s2 + $0x48] sm:$0xff] }
 0x681   :  { %v6638_v63 = vadd.f32 %v1180_v62, %v1151_v59  ;;  %v4762_v59 = vld [vmem:[%s7476_s2 + $0x40] sm:$0xff] }
 0x682   :  { %6066 = vtanh.f32 %v6636_v61 }
 0x683   :  { %6068 = vtanh.f32 %v6638_v63  ;;  %v1186_v2 = vpop.permute.xlu1 %1185 }
 0x684   :  { %v6644_v6 = vadd.f32 %v1186_v2, %v1154_v1  ;;  %v1184_v60 = vpop.permute.xlu0 %1183 }
 0x685   :  { %v6646_v10 = vadd.f32 %v1184_v60, %v1153_v4  ;;  %v4765_v60 = vld [vmem:[%s7476_s2 + $0x58] sm:$0xff] }
 0x686   :  { %6070 = vtanh.f32 %v6644_v6 }
 0x687   :  { %6072 = vtanh.f32 %v6646_v10 }
 0x68c   :  { %v6067_v56 = vpop.eup %6066 }
 0x68d   :  { %v6069_v11 = vpop.eup %6068  ;;  %1205 = vrot.lane.b32.xlu1 %v6067_v56, %s6279_s15 }
 0x68e   :  { %1203 = vrot.lane.b32.xlu0 %v6069_v11, %s6279_s15 }
 0x690   :  { %v6071_v5 = vpop.eup %6070 }
 0x691   :  { %v6073_v12 = vpop.eup %6072  ;;  %1209 = vrot.lane.b32.xlu1 %v6071_v5, %s6279_s15 }
 0x692   :  { %1207 = vrot.lane.b32.xlu0 %v6073_v12, %s6279_s15 }
 0x6ff   :  { %v1206_v0 = vpop.permute.xlu1 %1205 }
 0x700   :  { %v6654_v13 = vmul.f32 %v1206_v0, %v1144_v32  ;;  %v1204_v16 = vpop.permute.xlu0 %1203 }
 0x701   :  { %v6656_v17 = vmul.f32 %v1204_v16, %v1143_v35 }
 0x702   :  { %1242 = vrot.lane.b32.xlu1 %v6654_v13, %s6280_s4 }
 0x703   :  { %v1210_v18 = vpop.permute.xlu1 %1209  ;;  %1240 = vrot.lane.b32.xlu0 %v6656_v17, %s6280_s4 }
 0x704   :  { %v6662_v20 = vmul.f32 %v1210_v18, %v1146_v42  ;;  %v1208_v21 = vpop.permute.xlu0 %1207 }
 0x705   :  { %v6664_v22 = vmul.f32 %v1208_v21, %v1145_v45 }
 0x706   :  { %1246 = vrot.lane.b32.xlu1 %v6662_v20, %s6280_s4 }
 0x707   :  { %1244 = vrot.lane.b32.xlu0 %v6664_v22, %s6280_s4 }
 0x774   :  { %v1243_v25 = vpop.permute.xlu1 %1242 }
 0x775   :  { %v1241_v24 = vpop.permute.xlu0 %1240 }
 0x776   :  { %4754 = vmatmul.mubr.msk.f32.vlgmr.msra.gmra.mrb[24].mxu0 %vm59_vm0, %v1241_v24 }
 0x777   :  { %1326 = vmatprep.mubr.f32.mxu0 %v6278_v7  ;;  %5693 = vmatpush3.bf16.msra.mxu0 %v6368_v15 }
 0x778   :  { %5695 = vmatprep.subr.bf16.mxu0 %v6381_v19  ;;  %v1247_v27 = vpop.permute.xlu1 %1246 }
 0x779   :  { %v1245_v26 = vpop.permute.xlu0 %1244 }
 0x77a   :  { %4755 = vmatmul.mubr.msk.f32.gmra.mrb[26].mxu0 %vm59_vm0, %v1243_v25 }
 0x77b   :  { %1332 = vmatprep.mubr.f32.mxu0 %v6278_v7  ;;  %5697 = vmatpush3.bf16.msra.mxu0 %v6381_v19 }
 0x77c   :  { %5723 = vmatprep.subr.bf16.mxu0 %v6335_v3 }
 0x77e   :  { %4756 = vmatmul.mubr.msk.f32.gmra.mrb[28].mxu0 %vm59_vm0, %v1245_v26 }
 0x77f   :  { %1338 = vmatprep.mubr.f32.mxu0 %v6278_v7 }
 0x782   :  { %4757 = vmatmul.mubr.msk.f32.gmra.mrb[30].mxu0 %vm59_vm0, %v1247_v27 }
 0x783   :  { %5274 = vmatprep.mubr.msk.f32.mxu0 %vm59_vm0, %v1241_v24 }
 0x786   :  { %5275 = vmatmul.mubr.msk.f32.vlgmr.msra.gmra.mrb[32].mxu0 %vm59_vm0, %v1243_v25 }
 0x787   :  { %5277 = vmatprep.mubr.msk.f32.mxu0 %vm59_vm0, %v1245_v26  ;;  %5725 = vmatpush1.bf16.msra.mxu0 %v6347_v8 }
 0x788   :  { %5727 = vmatprep.subr.bf16.mxu0 %v6349_v9 }
 0x78a   :  { %5278 = vmatmul.mubr.msk.f32.gmra.mrb[34].mxu0 %vm59_vm0, %v1247_v27 }
 0x78b   :  { %5729 = vmatpush1.bf16.msra.mxu0 %v6365_v14  ;;  %1879 = vmatprep.mubr.f32.mxu0 %v6278_v7 }
 0x78c   :  { %5731 = vmatprep.subr.bf16.mxu0 %v6368_v15 }
 0x849   :  { %v1322_v28 = vpop.f32.mrb[24].mxu0 }
 0x84a   :  { %v1324_v29 = vpop.f32.mrb[25].mxu0 }
 0x84d   :  { %v1328_v30 = vpop.f32.mrb[26].mxu0 }
 0x84e   :  { %v5698_v31 = vpack.c.bf16 %v1328_v30, %v1322_v28  ;;  %v1330_v32 = vpop.f32.mrb[27].mxu0 }
 0x84f   :  { %v5706_v33 = vpack.c.bf16 %v1330_v32, %v1324_v29 }
 0x850   :  { %5699 = vmatprep.subr.bf16.mxu1 %v5698_v31 }
 0x851   :  { %v1334_v34 = vpop.f32.mrb[28].mxu0  ;;  %5701 = vmatpush3.bf16.msra.mxu1 %v5698_v31 }
 0x852   :  { %v1336_v35 = vpop.f32.mrb[29].mxu0 }
 0x855   :  { %v1340_v37 = vpop.f32.mrb[30].mxu0 }
 0x856   :  { %v5702_v39 = vpack.c.bf16 %v1340_v37, %v1334_v34  ;;  %v1342_v40 = vpop.f32.mrb[31].mxu0 }
 0x857   :  { %v5710_v42 = vpack.c.bf16 %v1342_v40, %v1336_v35 }
 0x858   :  { %5703 = vmatprep.subr.bf16.mxu1 %v5702_v39 }
 0x859   :  { %v5276_v44 = vpop.f32.mrb[32].mxu0  ;;  %5705 = vmatpush3.bf16.msra.mxu1 %v5702_v39 }
 0x85a   :  { %v1411_v45 = vpop.f32.mrb[33].mxu0  ;;  %5707 = vmatprep.subr.bf16.mxu1 %v5706_v33 }
 0x85b   :  { %v5714_v53 = vpack.c.bf16 %v5276_v44, %v1411_v45 }
 0x85c   :  { %5289 = vmatmul.mubr.msk.f32.vlgmr.msra.gmra.mrb[8].mxu1 %vm59_vm0, %v6422_v36 }
 0x85d   :  { %v5279_v54 = vpop.f32.mrb[34].mxu0  ;;  %5709 = vmatpush3.bf16.msra.mxu1 %v5706_v33  ;;  %5291 = vmatprep.mubr.msk.f32.mxu1 %vm59_vm0, %v6427_v38 }
 0x85e   :  { %v1421_v55 = vpop.f32.mrb[35].mxu0  ;;  %5711 = vmatprep.subr.bf16.mxu1 %v5710_v42 }
 0x85f   :  { %v5718_v57 = vpack.c.bf16 %v5279_v54, %v1421_v55 }
 0x860   :  { %5292 = vmatmul.mubr.msk.f32.gmra.mrb[10].mxu1 %vm59_vm0, %v6436_v41 }
 0x861   :  { %5713 = vmatpush3.bf16.msra.mxu1 %v5710_v42  ;;  %5302 = vmatprep.mubr.msk.f32.mxu1 %vm59_vm0, %v6441_v43 }
 0x862   :  { %5715 = vmatprep.subr.bf16.mxu1 %v5714_v53 }
 0x864   :  { %5303 = vmatmul.mubr.msk.f32.vlgmr.msra.gmra.mrb[8].mxu1 %vm59_vm0, %v6450_v46 }
 0x865   :  { %5717 = vmatpush3.bf16.msra.mxu1 %v5714_v53  ;;  %5305 = vmatprep.mubr.msk.f32.mxu1 %vm59_vm0, %v6455_v47 }
 0x866   :  { %5719 = vmatprep.subr.bf16.mxu1 %v5718_v57 }
 0x868   :  { %5306 = vmatmul.mubr.msk.f32.gmra.mrb[10].mxu1 %vm59_vm0, %v6464_v48 }
 0x869   :  { %5721 = vmatpush3.bf16.msra.mxu1 %v5718_v57  ;;  %5316 = vmatprep.mubr.msk.f32.mxu1 %vm59_vm0, %v6469_v49 }
 0x86c   :  { %5317 = vmatmul.mubr.msk.f32.vlgmr.msra.gmra.mrb[8].mxu1 %vm59_vm0, %v6478_v50 }
 0x86d   :  { %5319 = vmatprep.mubr.msk.f32.mxu1 %vm59_vm0, %v6483_v51 }
 0x870   :  { %5320 = vmatmul.mubr.msk.f32.gmra.mrb[10].mxu1 %vm59_vm0, %v6492_v52 }
 0x871   :  { %5344 = vmatprep.mubr.msk.f32.mxu1 %vm59_vm0, %v6415_v23  ;;  %v4764_v23 = vld [vmem:[%s7476_s2 + $0x50] sm:$0xff] }
 0x93f   :  { %v5318_v62 = vpop.f32.mrb[8].mxu1 }
 0x940   :  { %v5930_v1 = vadd.f32 %v5318_v62, %v4763_v58  ;;  %v1679_v2 = vpop.f32.mrb[9].mxu1 }
 0x941   :  { %v5931_v4 = vadd.f32 %v4762_v59, %v1679_v2 }
 0x942   :  { %6074 = vtanh.f32 %v5930_v1  ;;  %v1703_v24 = vmul.f32 0.5, %v5930_v1 }
 0x943   :  { %6076 = vtanh.f32 %v5931_v4  ;;  %v5321_v56 = vpop.f32.mrb[10].mxu1  ;;  %v1702_v25 = vmul.f32 0.5, %v5931_v4 }
 0x944   :  { %v5932_v11 = vadd.f32 %v5321_v56, %v4765_v60  ;;  %v1689_v5 = vpop.f32.mrb[11].mxu1 }
 0x945   :  { %v5933_v12 = vadd.f32 %v4764_v23, %v1689_v5 }
 0x946   :  { %6078 = vtanh.f32 %v5932_v11  ;;  %v1705_v26 = vmul.f32 0.5, %v5932_v11 }
 0x947   :  { %6080 = vtanh.f32 %v5933_v12  ;;  %v1704_v27 = vmul.f32 0.5, %v5933_v12 }
 0x948   :  { %6082 = vtanh.f32 %v1703_v24 }
 0x949   :  { %6084 = vtanh.f32 %v1702_v25 }
 0x94a   :  { %6086 = vtanh.f32 %v1705_v26 }
 0x94b   :  { %6088 = vtanh.f32 %v1704_v27 }
 0x94c   :  { %v6075_v0 = vpop.eup %6074 }
 0x94d   :  { %v6077_v16 = vpop.eup %6076  ;;  %1732 = vrot.lane.b32.xlu1 %v6075_v0, %s6279_s15 }
 0x94e   :  { %1730 = vrot.lane.b32.xlu0 %v6077_v16, %s6279_s15 }
 0x950   :  { %v6079_v18 = vpop.eup %6078 }
 0x951   :  { %v6081_v21 = vpop.eup %6080  ;;  %1736 = vrot.lane.b32.xlu1 %v6079_v18, %s6279_s15 }
 0x952   :  { %1734 = vrot.lane.b32.xlu0 %v6081_v21, %s6279_s15  ;;  %v6083_v28 = vpop.eup %6082 }
 0x953   :  { %v6085_v29 = vpop.eup %6084  ;;  %v1711_v30 = vadd.f32 1.0, %v6083_v28 }
 0x954   :  { %v6087_v31 = vpop.eup %6086  ;;  %v1710_v32 = vadd.f32 1.0, %v6085_v29 }
 0x955   :  { %v6089_v33 = vpop.eup %6088  ;;  %v1713_v34 = vadd.f32 1.0, %v6087_v31  ;;  %v1715_v35 = vmul.f32 0.5, %v1711_v30 }
 0x956   :  { %v1712_v37 = vadd.f32 1.0, %v6089_v33  ;;  %v1714_v40 = vmul.f32 0.5, %v1710_v32 }
 0x957   :  { %v1717_v53 = vmul.f32 0.5, %v1713_v34  ;;  %v1723_v62 = vmul.f32 %v1715_v35, %v6636_v61 }
 0x958   :  { %v1716_v55 = vmul.f32 0.5, %v1712_v37  ;;  %v1722_v2 = vmul.f32 %v1714_v40, %v6638_v63 }
 0x959   :  { %v1725_v56 = vmul.f32 %v1717_v53, %v6644_v6 }
 0x95a   :  { %v1724_v5 = vmul.f32 %v1716_v55, %v6646_v10 }
 0x9bf   :  { %v1733_v39 = vpop.permute.xlu1 %1732 }
 0x9c0   :  { %v1743_v42 = vmul.f32 %v1733_v39, %v1715_v35  ;;  %v1731_v44 = vpop.permute.xlu0 %1730 }
 0x9c1   :  { %v1742_v45 = vmul.f32 %v1731_v44, %v1714_v40 }
 0x9c2   :  { %1752 = vrot.lane.b32.xlu1 %v1743_v42, %s6279_s15 }
 0x9c3   :  { %v1737_v54 = vpop.permute.xlu1 %1736  ;;  %1750 = vrot.lane.b32.xlu0 %v1742_v45, %s6279_s15 }
 0x9c4   :  { %v1745_v57 = vmul.f32 %v1737_v54, %v1717_v53  ;;  %v1735_v58 = vpop.permute.xlu0 %1734 }
 0x9c5   :  { %v1744_v59 = vmul.f32 %v1735_v58, %v1716_v55 }
 0x9c6   :  { %1756 = vrot.lane.b32.xlu1 %v1745_v57, %s6279_s15 }
 0x9c7   :  { %1754 = vrot.lane.b32.xlu0 %v1744_v59, %s6279_s15 }
 0xa34   :  { %v1753_v1 = vpop.permute.xlu1 %1752 }
 0xa35   :  { %v6736_v4 = vadd.f32 %v1753_v1, %v1723_v62  ;;  %v1751_v60 = vpop.permute.xlu0 %1750 }
 0xa36   :  { %v6738_v23 = vadd.f32 %v1751_v60, %v1722_v2 }
 0xa37   :  { %6090 = vtanh.f32 %v6736_v4 }
 0xa38   :  { %6092 = vtanh.f32 %v6738_v23  ;;  %v1757_v11 = vpop.permute.xlu1 %1756 }
 0xa39   :  { %v6744_v12 = vadd.f32 %v1757_v11, %v1725_v56  ;;  %v1755_v61 = vpop.permute.xlu0 %1754 }
 0xa3a   :  { %v6746_v0 = vadd.f32 %v1755_v61, %v1724_v5 }
 0xa3b   :  { %6094 = vtanh.f32 %v6744_v12 }
 0xa3c   :  { %6096 = vtanh.f32 %v6746_v0 }
 0xa41   :  { %v6091_v63 = vpop.eup %6090 }
 0xa42   :  { %v6093_v16 = vpop.eup %6092  ;;  %1776 = vrot.lane.b32.xlu1 %v6091_v63, %s6279_s15 }
 0xa43   :  { %1774 = vrot.lane.b32.xlu0 %v6093_v16, %s6279_s15 }
 0xa45   :  { %v6095_v6 = vpop.eup %6094 }
 0xa46   :  { %v6097_v18 = vpop.eup %6096  ;;  %1780 = vrot.lane.b32.xlu1 %v6095_v6, %s6279_s15 }
 0xa47   :  { %1778 = vrot.lane.b32.xlu0 %v6097_v18, %s6279_s15 }
 0xab4   :  { %v1777_v10 = vpop.permute.xlu1 %1776 }
 0xab5   :  { %v6754_v21 = vmul.f32 %v1777_v10, %v1715_v35  ;;  %v1775_v24 = vpop.permute.xlu0 %1774 }
 0xab6   :  { %v6756_v25 = vmul.f32 %v1775_v24, %v1714_v40 }
 0xab7   :  { %1801 = vrot.lane.b32.xlu1 %v6754_v21, %s6280_s4 }
 0xab8   :  { %v1781_v26 = vpop.permute.xlu1 %1780  ;;  %1799 = vrot.lane.b32.xlu0 %v6756_v25, %s6280_s4 }
 0xab9   :  { %v6762_v27 = vmul.f32 %v1781_v26, %v1717_v53  ;;  %v1779_v28 = vpop.permute.xlu0 %1778 }
 0xaba   :  { %v6764_v29 = vmul.f32 %v1779_v28, %v1716_v55 }
 0xabb   :  { %1805 = vrot.lane.b32.xlu1 %v6762_v27, %s6280_s4 }
 0xabc   :  { %1803 = vrot.lane.b32.xlu0 %v6764_v29, %s6280_s4 }
 0xb29   :  { %v1802_v31 = vpop.permute.xlu1 %1801 }
 0xb2a   :  { %v1800_v30 = vpop.permute.xlu0 %1799 }
 0xb2b   :  { %4778 = vmatmul.mubr.msk.f32.vlgmr.msra.gmra.mrb[36].mxu0 %vm59_vm0, %v1800_v30 }
 0xb2c   :  { %1885 = vmatprep.mubr.f32.mxu0 %v6278_v7  ;;  %5733 = vmatpush3.bf16.msra.mxu0 %v6368_v15 }
 0xb2d   :  { %5735 = vmatprep.subr.bf16.mxu0 %v6381_v19  ;;  %v1806_v33 = vpop.permute.xlu1 %1805 }
 0xb2e   :  { %v1804_v32 = vpop.permute.xlu0 %1803 }
 0xb2f   :  { %4779 = vmatmul.mubr.msk.f32.gmra.mrb[38].mxu0 %vm59_vm0, %v1802_v31 }
 0xb30   :  { %1891 = vmatprep.mubr.f32.mxu0 %v6278_v7  ;;  %5737 = vmatpush3.bf16.msra.mxu0 %v6381_v19 }
 0xb31   :  { %5763 = vmatprep.subr.bf16.mxu0 %v6335_v3 }
 0xb33   :  { %4780 = vmatmul.mubr.msk.f32.gmra.mrb[40].mxu0 %vm59_vm0, %v1804_v32 }
 0xb34   :  { %1897 = vmatprep.mubr.f32.mxu0 %v6278_v7 }
 0xb37   :  { %4781 = vmatmul.mubr.msk.f32.gmra.mrb[42].mxu0 %vm59_vm0, %v1806_v33 }
 0xb38   :  { %5330 = vmatprep.mubr.msk.f32.mxu0 %vm59_vm0, %v1800_v30 }
 0xb3b   :  { %5331 = vmatmul.mubr.msk.f32.vlgmr.msra.gmra.mrb[44].mxu0 %vm59_vm0, %v1802_v31 }
 0xb3c   :  { %5333 = vmatprep.mubr.msk.f32.mxu0 %vm59_vm0, %v1804_v32  ;;  %5765 = vmatpush1.bf16.msra.mxu0 %v6347_v8 }
 0xb3d   :  { %5767 = vmatprep.subr.bf16.mxu0 %v6349_v9 }
 0xb3f   :  { %5334 = vmatmul.mubr.msk.f32.gmra.mrb[46].mxu0 %vm59_vm0, %v1806_v33 }
 0xb40   :  { %5769 = vmatpush1.bf16.msra.mxu0 %v6365_v14  ;;  %2450 = vmatprep.mubr.f32.mxu0 %v6278_v7 }
 0xb41   :  { %5771 = vmatprep.subr.bf16.mxu0 %v6368_v15 }
 0xbfe   :  { %v1881_v34 = vpop.f32.mrb[36].mxu0 }
 0xbff   :  { %v1883_v35 = vpop.f32.mrb[37].mxu0 }
 0xc02   :  { %v1887_v37 = vpop.f32.mrb[38].mxu0 }
 0xc03   :  { %v5738_v39 = vpack.c.bf16 %v1887_v37, %v1881_v34  ;;  %v1889_v40 = vpop.f32.mrb[39].mxu0 }
 0xc04   :  { %v5746_v42 = vpack.c.bf16 %v1889_v40, %v1883_v35 }
 0xc05   :  { %5739 = vmatprep.subr.bf16.mxu1 %v5738_v39 }
 0xc06   :  { %v1893_v44 = vpop.f32.mrb[40].mxu0  ;;  %5741 = vmatpush3.bf16.msra.mxu1 %v5738_v39 }
 0xc07   :  { %v1895_v45 = vpop.f32.mrb[41].mxu0 }
 0xc0a   :  { %v1899_v53 = vpop.f32.mrb[42].mxu0 }
 0xc0b   :  { %v5742_v54 = vpack.c.bf16 %v1899_v53, %v1893_v44  ;;  %v1901_v55 = vpop.f32.mrb[43].mxu0 }
 0xc0c   :  { %v5750_v57 = vpack.c.bf16 %v1901_v55, %v1895_v45 }
 0xc0d   :  { %5743 = vmatprep.subr.bf16.mxu1 %v5742_v54 }
 0xc0e   :  { %v5332_v58 = vpop.f32.mrb[44].mxu0  ;;  %5745 = vmatpush3.bf16.msra.mxu1 %v5742_v54 }
 0xc0f   :  { %v1970_v59 = vpop.f32.mrb[45].mxu0  ;;  %5747 = vmatprep.subr.bf16.mxu1 %v5746_v42 }
 0xc10   :  { %v5754_v62 = vpack.c.bf16 %v5332_v58, %v1970_v59 }
 0xc11   :  { %5345 = vmatmul.mubr.msk.f32.vlgmr.msra.gmra.mrb[12].mxu1 %vm59_vm0, %v6422_v36  ;;  %v6815_v36 = vld [vmem:[%s7474_s0] sm:$0xff] }
 0xc12   :  { %v5335_v1 = vpop.f32.mrb[46].mxu0  ;;  %5749 = vmatpush3.bf16.msra.mxu1 %v5746_v42  ;;  %5347 = vmatprep.mubr.msk.f32.mxu1 %vm59_vm0, %v6427_v38  ;;  %v4787_v38 = vld [vmem:[%s7476_s2 + $0x68] sm:$0xff] }
 0xc13   :  { %v1980_v2 = vpop.f32.mrb[47].mxu0  ;;  %5751 = vmatprep.subr.bf16.mxu1 %v5750_v57 }
 0xc14   :  { %v5758_v60 = vpack.c.bf16 %v5335_v1, %v1980_v2 }
 0xc15   :  { %5348 = vmatmul.mubr.msk.f32.gmra.mrb[14].mxu1 %vm59_vm0, %v6436_v41  ;;  %v4786_v41 = vld [vmem:[%s7476_s2 + $0x60] sm:$0xff] }
 0xc16   :  { %5753 = vmatpush3.bf16.msra.mxu1 %v5750_v57  ;;  %5358 = vmatprep.mubr.msk.f32.mxu1 %vm59_vm0, %v6441_v43 }
 0xc17   :  { %5755 = vmatprep.subr.bf16.mxu1 %v5754_v62 }
 0xc19   :  { %5359 = vmatmul.mubr.msk.f32.vlgmr.msra.gmra.mrb[12].mxu1 %vm59_vm0, %v6450_v46 }
 0xc1a   :  { %5757 = vmatpush3.bf16.msra.mxu1 %v5754_v62  ;;  %5361 = vmatprep.mubr.msk.f32.mxu1 %vm59_vm0, %v6455_v47 }
 0xc1b   :  { %5759 = vmatprep.subr.bf16.mxu1 %v5758_v60 }
 0xc1d   :  { %5362 = vmatmul.mubr.msk.f32.gmra.mrb[14].mxu1 %vm59_vm0, %v6464_v48 }
 0xc1e   :  { %5761 = vmatpush3.bf16.msra.mxu1 %v5758_v60  ;;  %5372 = vmatprep.mubr.msk.f32.mxu1 %vm59_vm0, %v6469_v49  ;;  %v4789_v49 = vld [vmem:[%s7476_s2 + $0x78] sm:$0xff] }
 0xc21   :  { %5373 = vmatmul.mubr.msk.f32.vlgmr.msra.gmra.mrb[12].mxu1 %vm59_vm0, %v6478_v50  ;;  %v4788_v50 = vld [vmem:[%s7476_s2 + $0x70] sm:$0xff] }
 0xc22   :  { %5375 = vmatprep.mubr.msk.f32.mxu1 %vm59_vm0, %v6483_v51 }
 0xc25   :  { %5376 = vmatmul.mubr.msk.f32.gmra.mrb[14].mxu1 %vm59_vm0, %v6492_v52 }
 0xc26   :  { %5400 = vmatprep.mubr.msk.f32.mxu1 %vm59_vm0, %v6815_v36 }
 0xcf4   :  { %v5374_v43 = vpop.f32.mrb[12].mxu1 }
 0xcf5   :  { %v5934_v46 = vadd.f32 %v5374_v43, %v4787_v38  ;;  %v2238_v47 = vpop.f32.mrb[13].mxu1 }
 0xcf6   :  { %v5935_v48 = vadd.f32 %v4786_v41, %v2238_v47 }
 0xcf7   :  { %6098 = vtanh.f32 %v5934_v46  ;;  %v2262_v6 = vmul.f32 0.5, %v5934_v46 }
 0xcf8   :  { %6100 = vtanh.f32 %v5935_v48  ;;  %v5377_v51 = vpop.f32.mrb[14].mxu1  ;;  %v2261_v18 = vmul.f32 0.5, %v5935_v48 }
 0xcf9   :  { %v5936_v52 = vadd.f32 %v5377_v51, %v4789_v49  ;;  %v2248_v56 = vpop.f32.mrb[15].mxu1 }
 0xcfa   :  { %v5937_v11 = vadd.f32 %v4788_v50, %v2248_v56 }
 0xcfb   :  { %6102 = vtanh.f32 %v5936_v52  ;;  %v2264_v10 = vmul.f32 0.5, %v5936_v52 }
 0xcfc   :  { %6104 = vtanh.f32 %v5937_v11  ;;  %v2263_v24 = vmul.f32 0.5, %v5937_v11 }
 0xcfd   :  { %6106 = vtanh.f32 %v2262_v6 }
 0xcfe   :  { %6108 = vtanh.f32 %v2261_v18 }
 0xcff   :  { %6110 = vtanh.f32 %v2264_v10 }
 0xd00   :  { %6112 = vtanh.f32 %v2263_v24 }
 0xd01   :  { %v6099_v5 = vpop.eup %6098 }
 0xd02   :  { %v6101_v61 = vpop.eup %6100  ;;  %2291 = vrot.lane.b32.xlu1 %v6099_v5, %s6279_s15 }
 0xd03   :  { %2289 = vrot.lane.b32.xlu0 %v6101_v61, %s6279_s15 }
 0xd05   :  { %v6103_v63 = vpop.eup %6102 }
 0xd06   :  { %v6105_v16 = vpop.eup %6104  ;;  %2295 = vrot.lane.b32.xlu1 %v6103_v63, %s6279_s15 }
 0xd07   :  { %2293 = vrot.lane.b32.xlu0 %v6105_v16, %s6279_s15  ;;  %v6107_v26 = vpop.eup %6106 }
 0xd08   :  { %v6109_v28 = vpop.eup %6108  ;;  %v2270_v30 = vadd.f32 1.0, %v6107_v26 }
 0xd09   :  { %v6111_v31 = vpop.eup %6110  ;;  %v2269_v32 = vadd.f32 1.0, %v6109_v28 }
 0xd0a   :  { %v6113_v33 = vpop.eup %6112  ;;  %v2274_v34 = vmul.f32 0.5, %v2270_v30  ;;  %v2272_v35 = vadd.f32 1.0, %v6111_v31 }
 0xd0b   :  { %v2273_v39 = vmul.f32 0.5, %v2269_v32  ;;  %v2271_v40 = vadd.f32 1.0, %v6113_v33 }
 0xd0c   :  { %v2276_v53 = vmul.f32 0.5, %v2272_v35  ;;  %v2282_v62 = vmul.f32 %v2274_v34, %v6736_v4 }
 0xd0d   :  { %v2275_v55 = vmul.f32 0.5, %v2271_v40  ;;  %v2281_v2 = vmul.f32 %v2273_v39, %v6738_v23 }
 0xd0e   :  { %v2284_v43 = vmul.f32 %v2276_v53, %v6744_v12 }
 0xd0f   :  { %v2283_v47 = vmul.f32 %v2275_v55, %v6746_v0 }
 0xd74   :  { %v2292_v37 = vpop.permute.xlu1 %2291 }
 0xd75   :  { %v2302_v42 = vmul.f32 %v2292_v37, %v2274_v34  ;;  %v2290_v44 = vpop.permute.xlu0 %2289 }
 0xd76   :  { %v2301_v45 = vmul.f32 %v2290_v44, %v2273_v39 }
 0xd77   :  { %2311 = vrot.lane.b32.xlu1 %v2302_v42, %s6279_s15 }
 0xd78   :  { %v2296_v54 = vpop.permute.xlu1 %2295  ;;  %2309 = vrot.lane.b32.xlu0 %v2301_v45, %s6279_s15 }
 0xd79   :  { %v2304_v57 = vmul.f32 %v2296_v54, %v2276_v53  ;;  %v2294_v58 = vpop.permute.xlu0 %2293  ;;  %v6898_v54 = vld [vmem:[%s7474_s0 + $0x8] sm:$0xff] }
 0xd7a   :  { %v2303_v59 = vmul.f32 %v2294_v58, %v2275_v55 }
 0xd7b   :  { %2315 = vrot.lane.b32.xlu1 %v2304_v57, %s6279_s15  ;;  %v6905_v57 = vld [vmem:[%s7474_s0 + $0x10] sm:$0xff] }
 0xd7c   :  { %2313 = vrot.lane.b32.xlu0 %v2303_v59, %s6279_s15 }
 0xde9   :  { %v2312_v1 = vpop.permute.xlu1 %2311 }
 0xdea   :  { %v6841_v60 = vadd.f32 %v2312_v1, %v2282_v62  ;;  %v2310_v38 = vpop.permute.xlu0 %2309  ;;  %v6912_v62 = vld [vmem:[%s7474_s0 + $0x18] sm:$0xff]  ;;  %v6919_v1 = vld [vmem:[%s7474_s0 + $0x20] sm:$0xff] }
 0xdeb   :  { %v6843_v41 = vadd.f32 %v2310_v38, %v2281_v2  ;;  %v6926_v2 = vld [vmem:[%s7474_s0 + $0x28] sm:$0xff]  ;;  %v6933_v38 = vld [vmem:[%s7474_s0 + $0x30] sm:$0xff] }
 0xdec   :  { %6114 = vtanh.f32 %v6841_v60 }
 0xded   :  { %6116 = vtanh.f32 %v6843_v41  ;;  %v2316_v46 = vpop.permute.xlu1 %2315 }
 0xdee   :  { %v6849_v48 = vadd.f32 %v2316_v46, %v2284_v43  ;;  %v2314_v4 = vpop.permute.xlu0 %2313  ;;  %v6940_v43 = vld [vmem:[%s7474_s0 + $0x38] sm:$0xff]  ;;  %v6947_v46 = vld [vmem:[%s7474_s0 + $0x40] sm:$0xff] }
 0xdef   :  { %v6851_v49 = vadd.f32 %v2314_v4, %v2283_v47  ;;  %v6954_v47 = vld [vmem:[%s7474_s0 + $0x48] sm:$0xff]  ;;  %v6961_v4 = vld [vmem:[%s7474_s0 + $0x50] sm:$0xff] }
 0xdf0   :  { %6118 = vtanh.f32 %v6849_v48 }
 0xdf1   :  { %6120 = vtanh.f32 %v6851_v49 }
 0xdf6   :  { %v6115_v23 = vpop.eup %6114 }
 0xdf7   :  { %v6117_v50 = vpop.eup %6116  ;;  %2335 = vrot.lane.b32.xlu1 %v6115_v23, %s6279_s15  ;;  %v6968_v23 = vld [vmem:[%s7474_s0 + $0x58] sm:$0xff] }
 0xdf8   :  { %2333 = vrot.lane.b32.xlu0 %v6117_v50, %s6279_s15  ;;  %v4811_v50 = vld [vmem:[%s7476_s2 + $0x88] sm:$0xff] }
 0xdfa   :  { %v6119_v12 = vpop.eup %6118 }
 0xdfb   :  { %v6121_v51 = vpop.eup %6120  ;;  %2339 = vrot.lane.b32.xlu1 %v6119_v12, %s6279_s15  ;;  %v4810_v12 = vld [vmem:[%s7476_s2 + $0x80] sm:$0xff] }
 0xdfc   :  { %2337 = vrot.lane.b32.xlu0 %v6121_v51, %s6279_s15 }
 0xe69   :  { %v2336_v0 = vpop.permute.xlu1 %2335 }
 0xe6a   :  { %v6859_v52 = vmul.f32 %v2336_v0, %v2274_v34  ;;  %v2334_v56 = vpop.permute.xlu0 %2333 }
 0xe6b   :  { %v6861_v11 = vmul.f32 %v2334_v56, %v2273_v39 }
 0xe6c   :  { %2372 = vrot.lane.b32.xlu1 %v6859_v52, %s6280_s4 }
 0xe6d   :  { %v2340_v5 = vpop.permute.xlu1 %2339  ;;  %2370 = vrot.lane.b32.xlu0 %v6861_v11, %s6280_s4 }
 0xe6e   :  { %v6867_v61 = vmul.f32 %v2340_v5, %v2276_v53  ;;  %v2338_v63 = vpop.permute.xlu0 %2337 }
 0xe6f   :  { %v6869_v16 = vmul.f32 %v2338_v63, %v2275_v55  ;;  %v4813_v63 = vld [vmem:[%s7476_s2 + $0x98] sm:$0xff] }
 0xe70   :  { %2376 = vrot.lane.b32.xlu1 %v6867_v61, %s6280_s4 }
 0xe71   :  { %2374 = vrot.lane.b32.xlu0 %v6869_v16, %s6280_s4 }
 0xede   :  { %v2373_v18 = vpop.permute.xlu1 %2372 }
 0xedf   :  { %v2371_v6 = vpop.permute.xlu0 %2370 }
 0xee0   :  { %4802 = vmatmul.mubr.msk.f32.vlgmr.msra.gmra.mrb[48].mxu0 %vm59_vm0, %v2371_v6 }
 0xee1   :  { %2456 = vmatprep.mubr.f32.mxu0 %v6278_v7  ;;  %5773 = vmatpush3.bf16.msra.mxu0 %v6368_v15 }
 0xee2   :  { %5775 = vmatprep.subr.bf16.mxu0 %v6381_v19  ;;  %v2377_v24 = vpop.permute.xlu1 %2376 }
 0xee3   :  { %v2375_v10 = vpop.permute.xlu0 %2374 }
 0xee4   :  { %4803 = vmatmul.mubr.msk.f32.gmra.mrb[50].mxu0 %vm59_vm0, %v2373_v18 }
 0xee5   :  { %2462 = vmatprep.mubr.f32.mxu0 %v6278_v7  ;;  %5777 = vmatpush3.bf16.msra.mxu0 %v6381_v19 }
 0xee6   :  { %5803 = vmatprep.subr.bf16.mxu0 %v6335_v3 }
 0xee8   :  { %4804 = vmatmul.mubr.msk.f32.gmra.mrb[52].mxu0 %vm59_vm0, %v2375_v10 }
 0xee9   :  { %2468 = vmatprep.mubr.f32.mxu0 %v6278_v7 }
 0xeec   :  { %4805 = vmatmul.mubr.msk.f32.gmra.mrb[54].mxu0 %vm59_vm0, %v2377_v24 }
 0xeed   :  { %5386 = vmatprep.mubr.msk.f32.mxu0 %vm59_vm0, %v2371_v6  ;;  %v4812_v6 = vld [vmem:[%s7476_s2 + $0x90] sm:$0xff] }
 0xef0   :  { %5387 = vmatmul.mubr.msk.f32.vlgmr.msra.gmra.mrb[56].mxu0 %vm59_vm0, %v2373_v18 }
 0xef1   :  { %5389 = vmatprep.mubr.msk.f32.mxu0 %vm59_vm0, %v2375_v10  ;;  %5805 = vmatpush1.bf16.msra.mxu0 %v6347_v8 }
 0xef2   :  { %5807 = vmatprep.subr.bf16.mxu0 %v6349_v9 }
 0xef4   :  { %5390 = vmatmul.mubr.msk.f32.gmra.mrb[58].mxu0 %vm59_vm0, %v2377_v24 }
 0xef5   :  { %5809 = vmatpush1.bf16.msra.mxu0 %v6365_v14  ;;  %3012 = vmatprep.mubr.f32.mxu0 %v6278_v7 }
 0xef6   :  { %5811 = vmatprep.subr.bf16.mxu0 %v6368_v15 }
 0xfb3   :  { %v2452_v26 = vpop.f32.mrb[48].mxu0 }
 0xfb4   :  { %v2454_v28 = vpop.f32.mrb[49].mxu0 }
 0xfb7   :  { %v2458_v30 = vpop.f32.mrb[50].mxu0 }
 0xfb8   :  { %v5778_v31 = vpack.c.bf16 %v2458_v30, %v2452_v26  ;;  %v2460_v32 = vpop.f32.mrb[51].mxu0 }
 0xfb9   :  { %v5786_v33 = vpack.c.bf16 %v2460_v32, %v2454_v28 }
 0xfba   :  { %5779 = vmatprep.subr.bf16.mxu1 %v5778_v31 }
 0xfbb   :  { %v2464_v34 = vpop.f32.mrb[52].mxu0  ;;  %5781 = vmatpush3.bf16.msra.mxu1 %v5778_v31 }
 0xfbc   :  { %v2466_v35 = vpop.f32.mrb[53].mxu0 }
 0xfbf   :  { %v2470_v37 = vpop.f32.mrb[54].mxu0 }
 0xfc0   :  { %v5782_v39 = vpack.c.bf16 %v2470_v37, %v2464_v34  ;;  %v2472_v40 = vpop.f32.mrb[55].mxu0 }
 0xfc1   :  { %v5790_v42 = vpack.c.bf16 %v2472_v40, %v2466_v35 }
 0xfc2   :  { %5783 = vmatprep.subr.bf16.mxu1 %v5782_v39 }
 0xfc3   :  { %v5388_v44 = vpop.f32.mrb[56].mxu0  ;;  %5785 = vmatpush3.bf16.msra.mxu1 %v5782_v39 }
 0xfc4   :  { %v2541_v45 = vpop.f32.mrb[57].mxu0  ;;  %5787 = vmatprep.subr.bf16.mxu1 %v5786_v33 }
 0xfc5   :  { %v5794_v53 = vpack.c.bf16 %v5388_v44, %v2541_v45 }
 0xfc6   :  { %5401 = vmatmul.mubr.msk.f32.vlgmr.msra.gmra.mrb[16].mxu1 %vm59_vm0, %v6898_v54 }
 0xfc7   :  { %v5391_v55 = vpop.f32.mrb[58].mxu0  ;;  %5789 = vmatpush3.bf16.msra.mxu1 %v5786_v33  ;;  %5403 = vmatprep.mubr.msk.f32.mxu1 %vm59_vm0, %v6905_v57 }
 0xfc8   :  { %v2551_v58 = vpop.f32.mrb[59].mxu0  ;;  %5791 = vmatprep.subr.bf16.mxu1 %v5790_v42 }
 0xfc9   :  { %v5798_v59 = vpack.c.bf16 %v5391_v55, %v2551_v58 }
 0xfca   :  { %5404 = vmatmul.mubr.msk.f32.gmra.mrb[18].mxu1 %vm59_vm0, %v6912_v62 }
 0xfcb   :  { %5793 = vmatpush3.bf16.msra.mxu1 %v5790_v42  ;;  %5414 = vmatprep.mubr.msk.f32.mxu1 %vm59_vm0, %v6919_v1 }
 0xfcc   :  { %5795 = vmatprep.subr.bf16.mxu1 %v5794_v53 }
 0xfce   :  { %5415 = vmatmul.mubr.msk.f32.vlgmr.msra.gmra.mrb[16].mxu1 %vm59_vm0, %v6926_v2 }
 0xfcf   :  { %5797 = vmatpush3.bf16.msra.mxu1 %v5794_v53  ;;  %5417 = vmatprep.mubr.msk.f32.mxu1 %vm59_vm0, %v6933_v38 }
 0xfd0   :  { %5799 = vmatprep.subr.bf16.mxu1 %v5798_v59 }
 0xfd2   :  { %5418 = vmatmul.mubr.msk.f32.gmra.mrb[18].mxu1 %vm59_vm0, %v6940_v43 }
 0xfd3   :  { %5801 = vmatpush3.bf16.msra.mxu1 %v5798_v59  ;;  %5428 = vmatprep.mubr.msk.f32.mxu1 %vm59_vm0, %v6947_v46 }
 0xfd6   :  { %5429 = vmatmul.mubr.msk.f32.vlgmr.msra.gmra.mrb[16].mxu1 %vm59_vm0, %v6954_v47 }
 0xfd7   :  { %5431 = vmatprep.mubr.msk.f32.mxu1 %vm59_vm0, %v6961_v4 }
 0xfda   :  { %5432 = vmatmul.mubr.msk.f32.gmra.mrb[18].mxu1 %vm59_vm0, %v6968_v23 }
 0xfdb   :  { %5456 = vmatprep.mubr.msk.f32.mxu1 %vm59_vm0, %v6815_v36 }
0x10a9   :  { %v5430_v51 = vpop.f32.mrb[16].mxu1 }
0x10aa   :  { %v5938_v0 = vadd.f32 %v5430_v51, %v4811_v50  ;;  %v2809_v56 = vpop.f32.mrb[17].mxu1 }
0x10ab   :  { %v5939_v5 = vadd.f32 %v4810_v12, %v2809_v56 }
0x10ac   :  { %6122 = vtanh.f32 %v5938_v0  ;;  %v2833_v33 = vmul.f32 0.5, %v5938_v0 }
0x10ad   :  { %6124 = vtanh.f32 %v5939_v5  ;;  %v5433_v18 = vpop.f32.mrb[18].mxu1  ;;  %v2832_v34 = vmul.f32 0.5, %v5939_v5 }
0x10ae   :  { %v5940_v10 = vadd.f32 %v5433_v18, %v4813_v63  ;;  %v2819_v24 = vpop.f32.mrb[19].mxu1 }
0x10af   :  { %v5941_v26 = vadd.f32 %v4812_v6, %v2819_v24 }
0x10b0   :  { %6126 = vtanh.f32 %v5940_v10  ;;  %v2835_v35 = vmul.f32 0.5, %v5940_v10 }
0x10b1   :  { %6128 = vtanh.f32 %v5941_v26  ;;  %v2834_v37 = vmul.f32 0.5, %v5941_v26 }
0x10b2   :  { %6130 = vtanh.f32 %v2833_v33 }
0x10b3   :  { %6132 = vtanh.f32 %v2832_v34 }
0x10b4   :  { %6134 = vtanh.f32 %v2835_v35 }
0x10b5   :  { %6136 = vtanh.f32 %v2834_v37 }
0x10b6   :  { %v6123_v28 = vpop.eup %6122 }
0x10b7   :  { %v6125_v30 = vpop.eup %6124  ;;  %2862 = vrot.lane.b32.xlu1 %v6123_v28, %s6279_s15 }
0x10b8   :  { %2860 = vrot.lane.b32.xlu0 %v6125_v30, %s6279_s15 }
0x10ba   :  { %v6127_v31 = vpop.eup %6126 }
0x10bb   :  { %v6129_v32 = vpop.eup %6128  ;;  %2866 = vrot.lane.b32.xlu1 %v6127_v31, %s6279_s15 }
0x10bc   :  { %2864 = vrot.lane.b32.xlu0 %v6129_v32, %s6279_s15  ;;  %v6131_v39 = vpop.eup %6130 }
0x10bd   :  { %v6133_v40 = vpop.eup %6132  ;;  %v2841_v42 = vadd.f32 1.0, %v6131_v39 }
0x10be   :  { %v6135_v44 = vpop.eup %6134  ;;  %v2840_v45 = vadd.f32 1.0, %v6133_v40 }
0x10bf   :  { %v6137_v53 = vpop.eup %6136  ;;  %v2845_v55 = vmul.f32 0.5, %v2841_v42  ;;  %v2843_v58 = vadd.f32 1.0, %v6135_v44 }
0x10c0   :  { %v2844_v50 = vmul.f32 0.5, %v2840_v45  ;;  %v2842_v12 = vadd.f32 1.0, %v6137_v53 }
0x10c1   :  { %v2847_v5 = vmul.f32 0.5, %v2843_v58  ;;  %v2853_v26 = vmul.f32 %v2845_v55, %v6841_v60 }
0x10c2   :  { %v2846_v6 = vmul.f32 0.5, %v2842_v12  ;;  %v2852_v30 = vmul.f32 %v2844_v50, %v6843_v41 }
0x10c3   :  { %v2855_v34 = vmul.f32 %v2847_v5, %v6849_v48 }
0x10c4   :  { %v2854_v37 = vmul.f32 %v2846_v6, %v6851_v49 }
0x1129   :  { %v2863_v59 = vpop.permute.xlu1 %2862 }
0x112a   :  { %v2873_v51 = vmul.f32 %v2863_v59, %v2845_v55  ;;  %v2861_v0 = vpop.permute.xlu0 %2860 }
0x112b   :  { %v2872_v56 = vmul.f32 %v2861_v0, %v2844_v50 }
0x112c   :  { %2882 = vrot.lane.b32.xlu1 %v2873_v51, %s6279_s15 }
0x112d   :  { %v2867_v63 = vpop.permute.xlu1 %2866  ;;  %2880 = vrot.lane.b32.xlu0 %v2872_v56, %s6279_s15 }
0x112e   :  { %v2875_v18 = vmul.f32 %v2867_v63, %v2847_v5  ;;  %v2865_v10 = vpop.permute.xlu0 %2864 }
0x112f   :  { %v2874_v24 = vmul.f32 %v2865_v10, %v2846_v6 }
0x1130   :  { %2886 = vrot.lane.b32.xlu1 %v2875_v18, %s6279_s15 }
0x1131   :  { %2884 = vrot.lane.b32.xlu0 %v2874_v24, %s6279_s15 }
0x119e   :  { %v2883_v28 = vpop.permute.xlu1 %2882 }
0x119f   :  { %v6996_v31 = vadd.f32 %v2883_v28, %v2853_v26  ;;  %v2881_v32 = vpop.permute.xlu0 %2880 }
0x11a0   :  { %v6998_v33 = vadd.f32 %v2881_v32, %v2852_v30 }
0x11a1   :  { %6138 = vtanh.f32 %v6996_v31 }
0x11a2   :  { %6140 = vtanh.f32 %v6998_v33  ;;  %v2887_v35 = vpop.permute.xlu1 %2886 }
0x11a3   :  { %v7004_v39 = vadd.f32 %v2887_v35, %v2855_v34  ;;  %v2885_v60 = vpop.permute.xlu0 %2884 }
0x11a4   :  { %v7006_v40 = vadd.f32 %v2885_v60, %v2854_v37 }
0x11a5   :  { %6142 = vtanh.f32 %v7004_v39 }
0x11a6   :  { %6144 = vtanh.f32 %v7006_v40 }
0x11ab   :  { %v6139_v41 = vpop.eup %6138 }
0x11ac   :  { %v6141_v42 = vpop.eup %6140  ;;  %2906 = vrot.lane.b32.xlu1 %v6139_v41, %s6279_s15 }
0x11ad   :  { %2904 = vrot.lane.b32.xlu0 %v6141_v42, %s6279_s15 }
0x11af   :  { %v6143_v48 = vpop.eup %6142 }
0x11b0   :  { %v6145_v44 = vpop.eup %6144  ;;  %2910 = vrot.lane.b32.xlu1 %v6143_v48, %s6279_s15 }
0x11b1   :  { %2908 = vrot.lane.b32.xlu0 %v6145_v44, %s6279_s15 }
0x121e   :  { %v2907_v49 = vpop.permute.xlu1 %2906 }
0x121f   :  { %v2917_v45 = vmul.f32 %v2907_v49, %v2845_v55  ;;  %v2905_v53 = vpop.permute.xlu0 %2904 }
0x1220   :  { %v2916_v58 = vmul.f32 %v2905_v53, %v2844_v50  ;;  %v4834_v53 = vld [vmem:[%s7476_s2 + $0xa0] sm:$0xff] }
0x1221   :  { %2926 = vrot.lane.b32.xlu1 %v2917_v45, %s6280_s4  ;;  %v4835_v45 = vld [vmem:[%s7476_s2 + $0xa8] sm:$0xff] }
0x1222   :  { %v2911_v59 = vpop.permute.xlu1 %2910  ;;  %2924 = vrot.lane.b32.xlu0 %v2916_v58, %s6280_s4 }
0x1223   :  { %v2919_v12 = vmul.f32 %v2911_v59, %v2847_v5  ;;  %v2909_v51 = vpop.permute.xlu0 %2908 }
0x1224   :  { %v2918_v0 = vmul.f32 %v2909_v51, %v2846_v6 }
0x1225   :  { %2930 = vrot.lane.b32.xlu1 %v2919_v12, %s6280_s4 }
0x1226   :  { %2928 = vrot.lane.b32.xlu0 %v2918_v0, %s6280_s4  ;;  %v4837_v0 = vld [vmem:[%s7476_s2 + $0xb8] sm:$0xff] }
0x1293   :  { %v2927_v56 = vpop.permute.xlu1 %2926 }
0x1294   :  { %2937 = vst.msk [vmem:[%s7479_s5 + $0x18] sm:$0xff] %vm59_vm0, %v2927_v56  ;;  %v2925_v55 = vpop.permute.xlu0 %2924 }
0x1295   :  { %2936 = vst.msk [vmem:[%s7479_s5 + $0x8] sm:$0xff] %vm59_vm0, %v2925_v55  ;;  %4826 = vmatmul.mubr.msk.f32.vlgmr.msra.gmra.mrb[60].mxu0 %vm59_vm0, %v2925_v55 }
0x1296   :  { %3018 = vmatprep.mubr.f32.mxu0 %v6278_v7  ;;  %5813 = vmatpush3.bf16.msra.mxu0 %v6368_v15 }
0x1297   :  { %v2931_v50 = vpop.permute.xlu1 %2930  ;;  %5815 = vmatprep.subr.bf16.mxu0 %v6381_v19 }
0x1298   :  { %2939 = vst.msk [vmem:[%s7479_s5 + $0x38] sm:$0xff] %vm59_vm0, %v2931_v50  ;;  %v2929_v5 = vpop.permute.xlu0 %2928 }
0x1299   :  { %2938 = vst.msk [vmem:[%s7479_s5 + $0x28] sm:$0xff] %vm59_vm0, %v2929_v5  ;;  %4827 = vmatmul.mubr.msk.f32.gmra.mrb[62].mxu0 %vm59_vm0, %v2927_v56 }
0x129a   :  { %3024 = vmatprep.mubr.f32.mxu0 %v6278_v7  ;;  %5817 = vmatpush3.bf16.msra.mxu0 %v6381_v19 }
0x129b   :  { %5843 = vmatprep.subr.bf16.mxu0 %v6335_v3 }
0x129d   :  { %4828 = vmatmul.mubr.msk.f32.gmra.mrb[64].mxu0 %vm59_vm0, %v2929_v5 }
0x129e   :  { %3030 = vmatprep.mubr.f32.mxu0 %v6278_v7 }
0x12a1   :  { %4829 = vmatmul.mubr.msk.f32.gmra.mrb[66].mxu0 %vm59_vm0, %v2931_v50 }
0x12a2   :  { %5442 = vmatprep.mubr.msk.f32.mxu0 %vm59_vm0, %v2925_v55 }
0x12a5   :  { %5443 = vmatmul.mubr.msk.f32.vlgmr.msra.gmra.mrb[68].mxu0 %vm59_vm0, %v2927_v56  ;;  %v4836_v56 = vld [vmem:[%s7476_s2 + $0xb0] sm:$0xff] }
0x12a6   :  { %5445 = vmatprep.mubr.msk.f32.mxu0 %vm59_vm0, %v2929_v5  ;;  %5845 = vmatpush1.bf16.msra.mxu0 %v6347_v8 }
0x12a7   :  { %5847 = vmatprep.subr.bf16.mxu0 %v6349_v9 }
0x12a9   :  { %5446 = vmatmul.mubr.msk.f32.gmra.mrb[70].mxu0 %vm59_vm0, %v2931_v50 }
0x12aa   :  { %5849 = vmatpush1.bf16.msra.mxu0 %v6365_v14  ;;  %3582 = vmatprep.mubr.f32.mxu0 %v6278_v7 }
0x12ab   :  { %5851 = vmatprep.subr.bf16.mxu0 %v6368_v15 }
0x1368   :  { %v3014_v63 = vpop.f32.mrb[60].mxu0 }
0x1369   :  { %v3016_v6 = vpop.f32.mrb[61].mxu0 }
0x136c   :  { %v3020_v18 = vpop.f32.mrb[62].mxu0 }
0x136d   :  { %v5818_v10 = vpack.c.bf16 %v3020_v18, %v3014_v63  ;;  %v3022_v24 = vpop.f32.mrb[63].mxu0 }
0x136e   :  { %v5826_v26 = vpack.c.bf16 %v3022_v24, %v3016_v6 }
0x136f   :  { %5819 = vmatprep.subr.bf16.mxu1 %v5818_v10 }
0x1370   :  { %v3026_v28 = vpop.f32.mrb[64].mxu0  ;;  %5821 = vmatpush3.bf16.msra.mxu1 %v5818_v10 }
0x1371   :  { %v3028_v30 = vpop.f32.mrb[65].mxu0 }
0x1374   :  { %v3032_v32 = vpop.f32.mrb[66].mxu0 }
0x1375   :  { %v5822_v34 = vpack.c.bf16 %v3032_v32, %v3026_v28  ;;  %v3034_v35 = vpop.f32.mrb[67].mxu0 }
0x1376   :  { %v5830_v37 = vpack.c.bf16 %v3034_v35, %v3028_v30 }
0x1377   :  { %5823 = vmatprep.subr.bf16.mxu1 %v5822_v34 }
0x1378   :  { %v5444_v60 = vpop.f32.mrb[68].mxu0  ;;  %5825 = vmatpush3.bf16.msra.mxu1 %v5822_v34 }
0x1379   :  { %v3103_v41 = vpop.f32.mrb[69].mxu0  ;;  %5827 = vmatprep.subr.bf16.mxu1 %v5826_v26 }
0x137a   :  { %v5834_v42 = vpack.c.bf16 %v5444_v60, %v3103_v41 }
0x137b   :  { %5457 = vmatmul.mubr.msk.f32.vlgmr.msra.gmra.mrb[20].mxu1 %vm59_vm0, %v6898_v54 }
0x137c   :  { %v5447_v48 = vpop.f32.mrb[70].mxu0  ;;  %5829 = vmatpush3.bf16.msra.mxu1 %v5826_v26  ;;  %5459 = vmatprep.mubr.msk.f32.mxu1 %vm59_vm0, %v6905_v57 }
0x137d   :  { %v3113_v44 = vpop.f32.mrb[71].mxu0  ;;  %5831 = vmatprep.subr.bf16.mxu1 %v5830_v37 }
0x137e   :  { %v5838_v49 = vpack.c.bf16 %v5447_v48, %v3113_v44 }
0x137f   :  { %5460 = vmatmul.mubr.msk.f32.gmra.mrb[22].mxu1 %vm59_vm0, %v6912_v62 }
0x1380   :  { %5833 = vmatpush3.bf16.msra.mxu1 %v5830_v37  ;;  %5470 = vmatprep.mubr.msk.f32.mxu1 %vm59_vm0, %v6919_v1 }
0x1381   :  { %5835 = vmatprep.subr.bf16.mxu1 %v5834_v42 }
0x1383   :  { %5471 = vmatmul.mubr.msk.f32.vlgmr.msra.gmra.mrb[20].mxu1 %vm59_vm0, %v6926_v2 }
0x1384   :  { %5837 = vmatpush3.bf16.msra.mxu1 %v5834_v42  ;;  %5473 = vmatprep.mubr.msk.f32.mxu1 %vm59_vm0, %v6933_v38 }
0x1385   :  { %5839 = vmatprep.subr.bf16.mxu1 %v5838_v49 }
0x1387   :  { %5474 = vmatmul.mubr.msk.f32.gmra.mrb[22].mxu1 %vm59_vm0, %v6940_v43 }
0x1388   :  { %5841 = vmatpush3.bf16.msra.mxu1 %v5838_v49  ;;  %5484 = vmatprep.mubr.msk.f32.mxu1 %vm59_vm0, %v6947_v46 }
0x138b   :  { %5485 = vmatmul.mubr.msk.f32.vlgmr.msra.gmra.mrb[20].mxu1 %vm59_vm0, %v6954_v47 }
0x138c   :  { %5487 = vmatprep.mubr.msk.f32.mxu1 %vm59_vm0, %v6961_v4 }
0x138f   :  { %5488 = vmatmul.mubr.msk.f32.gmra.mrb[22].mxu1 %vm59_vm0, %v6968_v23 }
0x1390   :  { %5512 = vmatprep.mubr.msk.f32.mxu1 %vm59_vm0, %v6815_v36 }
0x145e   :  { %v5486_v58 = vpop.f32.mrb[20].mxu1 }
0x145f   :  { %v5942_v59 = vadd.f32 %v5486_v58, %v4835_v45  ;;  %v3371_v12 = vpop.f32.mrb[21].mxu1 }
0x1460   :  { %v5943_v51 = vadd.f32 %v4834_v53, %v3371_v12 }
0x1461   :  { %6146 = vtanh.f32 %v5942_v59  ;;  %v3395_v26 = vmul.f32 0.5, %v5942_v59 }
0x1462   :  { %6148 = vtanh.f32 %v5943_v51  ;;  %v5489_v55 = vpop.f32.mrb[22].mxu1  ;;  %v3394_v28 = vmul.f32 0.5, %v5943_v51 }
0x1463   :  { %v5944_v50 = vadd.f32 %v5489_v55, %v4837_v0  ;;  %v3381_v5 = vpop.f32.mrb[23].mxu1 }
0x1464   :  { %v5945_v63 = vadd.f32 %v4836_v56, %v3381_v5 }
0x1465   :  { %6150 = vtanh.f32 %v5944_v50  ;;  %v3397_v30 = vmul.f32 0.5, %v5944_v50 }
0x1466   :  { %6152 = vtanh.f32 %v5945_v63  ;;  %v3396_v32 = vmul.f32 0.5, %v5945_v63 }
0x1467   :  { %6154 = vtanh.f32 %v3395_v26 }
0x1468   :  { %6156 = vtanh.f32 %v3394_v28 }
0x1469   :  { %6158 = vtanh.f32 %v3397_v30 }
0x146a   :  { %6160 = vtanh.f32 %v3396_v32 }
0x146b   :  { %v6147_v6 = vpop.eup %6146 }
0x146c   :  { %v6149_v18 = vpop.eup %6148  ;;  %3424 = vrot.lane.b32.xlu1 %v6147_v6, %s6279_s15 }
0x146d   :  { %3422 = vrot.lane.b32.xlu0 %v6149_v18, %s6279_s15 }
0x146f   :  { %v6151_v10 = vpop.eup %6150 }
0x1470   :  { %v6153_v24 = vpop.eup %6152  ;;  %3428 = vrot.lane.b32.xlu1 %v6151_v10, %s6279_s15 }
0x1471   :  { %3426 = vrot.lane.b32.xlu0 %v6153_v24, %s6279_s15  ;;  %v6155_v34 = vpop.eup %6154 }
0x1472   :  { %v6157_v35 = vpop.eup %6156  ;;  %v3403_v37 = vadd.f32 1.0, %v6155_v34 }
0x1473   :  { %v6159_v60 = vpop.eup %6158  ;;  %v3402_v41 = vadd.f32 1.0, %v6157_v35 }
0x1474   :  { %v6161_v42 = vpop.eup %6160  ;;  %v3407_v48 = vmul.f32 0.5, %v3403_v37  ;;  %v3405_v44 = vadd.f32 1.0, %v6159_v60 }
0x1475   :  { %v3406_v45 = vmul.f32 0.5, %v3402_v41  ;;  %v3404_v53 = vadd.f32 1.0, %v6161_v42 }
0x1476   :  { %v3409_v51 = vmul.f32 0.5, %v3405_v44  ;;  %v3415_v63 = vmul.f32 %v3407_v48, %v6996_v31 }
0x1477   :  { %v3408_v56 = vmul.f32 0.5, %v3404_v53  ;;  %v3414_v18 = vmul.f32 %v3406_v45, %v6998_v33 }
0x1478   :  { %v3417_v28 = vmul.f32 %v3409_v51, %v7004_v39 }
0x1479   :  { %v3416_v32 = vmul.f32 %v3408_v56, %v7006_v40 }
0x14de   :  { %v3425_v49 = vpop.permute.xlu1 %3424 }
0x14df   :  { %v3435_v58 = vmul.f32 %v3425_v49, %v3407_v48  ;;  %v3423_v59 = vpop.permute.xlu0 %3422 }
0x14e0   :  { %v3434_v12 = vmul.f32 %v3423_v59, %v3406_v45 }
0x14e1   :  { %3444 = vrot.lane.b32.xlu1 %v3435_v58, %s6279_s15 }
0x14e2   :  { %v3429_v0 = vpop.permute.xlu1 %3428  ;;  %3442 = vrot.lane.b32.xlu0 %v3434_v12, %s6279_s15 }
0x14e3   :  { %v3437_v55 = vmul.f32 %v3429_v0, %v3409_v51  ;;  %v3427_v50 = vpop.permute.xlu0 %3426 }
0x14e4   :  { %v3436_v5 = vmul.f32 %v3427_v50, %v3408_v56 }
0x14e5   :  { %3448 = vrot.lane.b32.xlu1 %v3437_v55, %s6279_s15 }
0x14e6   :  { %3446 = vrot.lane.b32.xlu0 %v3436_v5, %s6279_s15 }
0x1553   :  { %v3445_v6 = vpop.permute.xlu1 %3444 }
0x1554   :  { %v7100_v10 = vadd.f32 %v3445_v6, %v3415_v63  ;;  %v3443_v24 = vpop.permute.xlu0 %3442 }
0x1555   :  { %v7102_v26 = vadd.f32 %v3443_v24, %v3414_v18 }
0x1556   :  { %6162 = vtanh.f32 %v7100_v10 }
0x1557   :  { %6164 = vtanh.f32 %v7102_v26  ;;  %v3449_v30 = vpop.permute.xlu1 %3448 }
0x1558   :  { %v7108_v34 = vadd.f32 %v3449_v30, %v3417_v28  ;;  %v3447_v31 = vpop.permute.xlu0 %3446 }
0x1559   :  { %v7110_v35 = vadd.f32 %v3447_v31, %v3416_v32 }
0x155a   :  { %6166 = vtanh.f32 %v7108_v34 }
0x155b   :  { %6168 = vtanh.f32 %v7110_v35 }
0x1560   :  { %v6163_v33 = vpop.eup %6162 }
0x1561   :  { %v6165_v37 = vpop.eup %6164  ;;  %3468 = vrot.lane.b32.xlu1 %v6163_v33, %s6279_s15 }
0x1562   :  { %3466 = vrot.lane.b32.xlu0 %v6165_v37, %s6279_s15  ;;  %v4859_v37 = vld [vmem:[%s7476_s2 + $0xc8] sm:$0xff] }
0x1564   :  { %v6167_v39 = vpop.eup %6166 }
0x1565   :  { %v6169_v60 = vpop.eup %6168  ;;  %3472 = vrot.lane.b32.xlu1 %v6167_v39, %s6279_s15  ;;  %v4858_v39 = vld [vmem:[%s7476_s2 + $0xc0] sm:$0xff] }
0x1566   :  { %3470 = vrot.lane.b32.xlu0 %v6169_v60, %s6279_s15 }
0x15d3   :  { %v3469_v40 = vpop.permute.xlu1 %3468 }
0x15d4   :  { %v7118_v41 = vmul.f32 %v3469_v40, %v3407_v48  ;;  %v3467_v42 = vpop.permute.xlu0 %3466 }
0x15d5   :  { %v7120_v44 = vmul.f32 %v3467_v42, %v3406_v45 }
0x15d6   :  { %3504 = vrot.lane.b32.xlu1 %v7118_v41, %s6280_s4 }
0x15d7   :  { %v3473_v49 = vpop.permute.xlu1 %3472  ;;  %3502 = vrot.lane.b32.xlu0 %v7120_v44, %s6280_s4 }
0x15d8   :  { %v7126_v53 = vmul.f32 %v3473_v49, %v3409_v51  ;;  %v3471_v58 = vpop.permute.xlu0 %3470 }
0x15d9   :  { %v7128_v59 = vmul.f32 %v3471_v58, %v3408_v56  ;;  %v4861_v58 = vld [vmem:[%s7476_s2 + $0xd8] sm:$0xff] }
0x15da   :  { %3508 = vrot.lane.b32.xlu1 %v7126_v53, %s6280_s4 }
0x15db   :  { %3506 = vrot.lane.b32.xlu0 %v7128_v59, %s6280_s4 }
0x1648   :  { %v3505_v45 = vpop.permute.xlu1 %3504 }
0x1649   :  { %v3503_v48 = vpop.permute.xlu0 %3502 }
0x164a   :  { %4850 = vmatmul.mubr.msk.f32.vlgmr.msra.gmra.mrb[72].mxu0 %vm59_vm0, %v3503_v48 }
0x164b   :  { %3588 = vmatprep.mubr.f32.mxu0 %v6278_v7  ;;  %5853 = vmatpush3.bf16.msra.mxu0 %v6368_v15 }
0x164c   :  { %5855 = vmatprep.subr.bf16.mxu0 %v6381_v19  ;;  %v3509_v51 = vpop.permute.xlu1 %3508 }
0x164d   :  { %v3507_v12 = vpop.permute.xlu0 %3506 }
0x164e   :  { %4851 = vmatmul.mubr.msk.f32.gmra.mrb[74].mxu0 %vm59_vm0, %v3505_v45 }
0x164f   :  { %3594 = vmatprep.mubr.f32.mxu0 %v6278_v7  ;;  %5857 = vmatpush3.bf16.msra.mxu0 %v6381_v19 }
0x1650   :  { %5883 = vmatprep.subr.bf16.mxu0 %v6335_v3 }
0x1652   :  { %4852 = vmatmul.mubr.msk.f32.gmra.mrb[76].mxu0 %vm59_vm0, %v3507_v12 }
0x1653   :  { %3600 = vmatprep.mubr.f32.mxu0 %v6278_v7 }
0x1656   :  { %4853 = vmatmul.mubr.msk.f32.gmra.mrb[78].mxu0 %vm59_vm0, %v3509_v51 }
0x1657   :  { %5498 = vmatprep.mubr.msk.f32.mxu0 %vm59_vm0, %v3503_v48 }
0x165a   :  { %5499 = vmatmul.mubr.msk.f32.vlgmr.msra.gmra.mrb[80].mxu0 %vm59_vm0, %v3505_v45 }
0x165b   :  { %5501 = vmatprep.mubr.msk.f32.mxu0 %vm59_vm0, %v3507_v12  ;;  %5885 = vmatpush1.bf16.msra.mxu0 %v6347_v8 }
0x165c   :  { %5887 = vmatprep.subr.bf16.mxu0 %v6349_v9 }
0x165e   :  { %5502 = vmatmul.mubr.msk.f32.gmra.mrb[82].mxu0 %vm59_vm0, %v3509_v51 }
0x165f   :  { %5889 = vmatpush1.bf16.msra.mxu0 %v6365_v14  ;;  %4140 = vmatprep.mubr.f32.mxu0 %v6278_v7 }
0x1660   :  { %5891 = vmatprep.subr.bf16.mxu0 %v6368_v15 }
0x171d   :  { %v3584_v3 = vpop.f32.mrb[72].mxu0 }
0x171e   :  { %v3586_v0 = vpop.f32.mrb[73].mxu0 }
0x1721   :  { %v3590_v56 = vpop.f32.mrb[74].mxu0 }
0x1722   :  { %v5858_v55 = vpack.c.bf16 %v3590_v56, %v3584_v3  ;;  %v3592_v50 = vpop.f32.mrb[75].mxu0 }
0x1723   :  { %v5866_v5 = vpack.c.bf16 %v3592_v50, %v3586_v0 }
0x1724   :  { %5859 = vmatprep.subr.bf16.mxu1 %v5858_v55 }
0x1725   :  { %v3596_v63 = vpop.f32.mrb[76].mxu0  ;;  %5861 = vmatpush3.bf16.msra.mxu1 %v5858_v55 }
0x1726   :  { %v3598_v8 = vpop.f32.mrb[77].mxu0 }
0x1729   :  { %v3602_v6 = vpop.f32.mrb[78].mxu0 }
0x172a   :  { %v5862_v9 = vpack.c.bf16 %v3602_v6, %v3596_v63  ;;  %v3604_v18 = vpop.f32.mrb[79].mxu0 }
0x172b   :  { %v5870_v24 = vpack.c.bf16 %v3604_v18, %v3598_v8 }
0x172c   :  { %5863 = vmatprep.subr.bf16.mxu1 %v5862_v9 }
0x172d   :  { %v5500_v14 = vpop.f32.mrb[80].mxu0  ;;  %5865 = vmatpush3.bf16.msra.mxu1 %v5862_v9 }
0x172e   :  { %v3673_v28 = vpop.f32.mrb[81].mxu0  ;;  %5867 = vmatprep.subr.bf16.mxu1 %v5866_v5 }
0x172f   :  { %v5874_v30 = vpack.c.bf16 %v5500_v14, %v3673_v28 }
0x1730   :  { %5513 = vmatmul.mubr.msk.f32.vlgmr.msra.gmra.mrb[24].mxu1 %vm59_vm0, %v6898_v54 }
0x1731   :  { %v5503_v32 = vpop.f32.mrb[82].mxu0  ;;  %5869 = vmatpush3.bf16.msra.mxu1 %v5866_v5  ;;  %5515 = vmatprep.mubr.msk.f32.mxu1 %vm59_vm0, %v6905_v57 }
0x1732   :  { %v3683_v31 = vpop.f32.mrb[83].mxu0  ;;  %5871 = vmatprep.subr.bf16.mxu1 %v5870_v24 }
0x1733   :  { %v5878_v33 = vpack.c.bf16 %v5503_v32, %v3683_v31 }
0x1734   :  { %5516 = vmatmul.mubr.msk.f32.gmra.mrb[26].mxu1 %vm59_vm0, %v6912_v62 }
0x1735   :  { %5873 = vmatpush3.bf16.msra.mxu1 %v5870_v24  ;;  %5526 = vmatprep.mubr.msk.f32.mxu1 %vm59_vm0, %v6919_v1 }
0x1736   :  { %5875 = vmatprep.subr.bf16.mxu1 %v5874_v30 }
0x1738   :  { %5527 = vmatmul.mubr.msk.f32.vlgmr.msra.gmra.mrb[24].mxu1 %vm59_vm0, %v6926_v2 }
0x1739   :  { %5877 = vmatpush3.bf16.msra.mxu1 %v5874_v30  ;;  %5529 = vmatprep.mubr.msk.f32.mxu1 %vm59_vm0, %v6933_v38 }
0x173a   :  { %5879 = vmatprep.subr.bf16.mxu1 %v5878_v33 }
0x173c   :  { %5530 = vmatmul.mubr.msk.f32.gmra.mrb[26].mxu1 %vm59_vm0, %v6940_v43 }
0x173d   :  { %5881 = vmatpush3.bf16.msra.mxu1 %v5878_v33  ;;  %5540 = vmatprep.mubr.msk.f32.mxu1 %vm59_vm0, %v6947_v46 }
0x1740   :  { %5541 = vmatmul.mubr.msk.f32.vlgmr.msra.gmra.mrb[24].mxu1 %vm59_vm0, %v6954_v47 }
0x1741   :  { %5543 = vmatprep.mubr.msk.f32.mxu1 %vm59_vm0, %v6961_v4 }
0x1744   :  { %5544 = vmatmul.mubr.msk.f32.gmra.mrb[26].mxu1 %vm59_vm0, %v6968_v23 }
0x1745   :  { %5568 = vmatprep.mubr.msk.f32.mxu1 %vm59_vm0, %v6815_v36  ;;  %v4860_v36 = vld [vmem:[%s7476_s2 + $0xd0] sm:$0xff] }
0x1813   :  { %v5542_v60 = vpop.f32.mrb[24].mxu1 }
0x1814   :  { %v5946_v40 = vadd.f32 %v5542_v60, %v4859_v37  ;;  %v3941_v42 = vpop.f32.mrb[25].mxu1 }
0x1815   :  { %v5947_v49 = vadd.f32 %v4858_v39, %v3941_v42 }
0x1816   :  { %6170 = vtanh.f32 %v5946_v40  ;;  %v3965_v50 = vmul.f32 0.5, %v5946_v40 }
0x1817   :  { %6172 = vtanh.f32 %v5947_v49  ;;  %v5545_v48 = vpop.f32.mrb[26].mxu1  ;;  %v3964_v5 = vmul.f32 0.5, %v5947_v49 }
0x1818   :  { %v5948_v45 = vadd.f32 %v5545_v48, %v4861_v58  ;;  %v3951_v12 = vpop.f32.mrb[27].mxu1 }
0x1819   :  { %v5949_v51 = vadd.f32 %v4860_v36, %v3951_v12 }
0x181a   :  { %6174 = vtanh.f32 %v5948_v45  ;;  %v3967_v63 = vmul.f32 0.5, %v5948_v45 }
0x181b   :  { %6176 = vtanh.f32 %v5949_v51  ;;  %v3966_v8 = vmul.f32 0.5, %v5949_v51 }
0x181c   :  { %6178 = vtanh.f32 %v3965_v50 }
0x181d   :  { %6180 = vtanh.f32 %v3964_v5 }
0x181e   :  { %6182 = vtanh.f32 %v3967_v63 }
0x181f   :  { %6184 = vtanh.f32 %v3966_v8 }
0x1820   :  { %v6171_v3 = vpop.eup %6170 }
0x1821   :  { %v6173_v0 = vpop.eup %6172  ;;  %3994 = vrot.lane.b32.xlu1 %v6171_v3, %s6279_s15 }
0x1822   :  { %3992 = vrot.lane.b32.xlu0 %v6173_v0, %s6279_s15 }
0x1824   :  { %v6175_v56 = vpop.eup %6174 }
0x1825   :  { %v6177_v55 = vpop.eup %6176  ;;  %3998 = vrot.lane.b32.xlu1 %v6175_v56, %s6279_s15 }
0x1826   :  { %3996 = vrot.lane.b32.xlu0 %v6177_v55, %s6279_s15  ;;  %v6179_v6 = vpop.eup %6178 }
0x1827   :  { %v6181_v9 = vpop.eup %6180  ;;  %v3973_v18 = vadd.f32 1.0, %v6179_v6 }
0x1828   :  { %v6183_v24 = vpop.eup %6182  ;;  %v3972_v14 = vadd.f32 1.0, %v6181_v9 }
0x1829   :  { %v6185_v28 = vpop.eup %6184  ;;  %v3977_v30 = vmul.f32 0.5, %v3973_v18  ;;  %v3975_v32 = vadd.f32 1.0, %v6183_v24 }
0x182a   :  { %v3976_v33 = vmul.f32 0.5, %v3972_v14  ;;  %v3974_v37 = vadd.f32 1.0, %v6185_v28 }
0x182b   :  { %v3979_v42 = vmul.f32 0.5, %v3975_v32  ;;  %v3985_v12 = vmul.f32 %v3977_v30, %v7100_v10 }
0x182c   :  { %v3978_v58 = vmul.f32 0.5, %v3974_v37  ;;  %v3984_v3 = vmul.f32 %v3976_v33, %v7102_v26 }
0x182d   :  { %v3987_v50 = vmul.f32 %v3979_v42, %v7108_v34 }
0x182e   :  { %v3986_v63 = vmul.f32 %v3978_v58, %v7110_v35 }
0x1893   :  { %v3995_v31 = vpop.permute.xlu1 %3994 }
0x1894   :  { %v4005_v39 = vmul.f32 %v3995_v31, %v3977_v30  ;;  %v3993_v60 = vpop.permute.xlu0 %3992 }
0x1895   :  { %v4004_v40 = vmul.f32 %v3993_v60, %v3976_v33 }
0x1896   :  { %4014 = vrot.lane.b32.xlu1 %v4005_v39, %s6279_s15 }
0x1897   :  { %v3999_v49 = vpop.permute.xlu1 %3998  ;;  %4012 = vrot.lane.b32.xlu0 %v4004_v40, %s6279_s15 }
0x1898   :  { %v4007_v36 = vmul.f32 %v3999_v49, %v3979_v42  ;;  %v3997_v48 = vpop.permute.xlu0 %3996 }
0x1899   :  { %v4006_v45 = vmul.f32 %v3997_v48, %v3978_v58 }
0x189a   :  { %4018 = vrot.lane.b32.xlu1 %v4007_v36, %s6279_s15 }
0x189b   :  { %4016 = vrot.lane.b32.xlu0 %v4006_v45, %s6279_s15 }
0x1908   :  { %v4015_v51 = vpop.permute.xlu1 %4014 }
0x1909   :  { %v7200_v0 = vadd.f32 %v4015_v51, %v3985_v12  ;;  %v4013_v56 = vpop.permute.xlu0 %4012 }
0x190a   :  { %v7202_v55 = vadd.f32 %v4013_v56, %v3984_v3 }
0x190b   :  { %6186 = vtanh.f32 %v7200_v0 }
0x190c   :  { %6188 = vtanh.f32 %v7202_v55  ;;  %v4019_v5 = vpop.permute.xlu1 %4018 }
0x190d   :  { %v7208_v8 = vadd.f32 %v4019_v5, %v3987_v50  ;;  %v4017_v10 = vpop.permute.xlu0 %4016 }
0x190e   :  { %v7210_v6 = vadd.f32 %v4017_v10, %v3986_v63 }
0x190f   :  { %6190 = vtanh.f32 %v7208_v8 }
0x1910   :  { %6192 = vtanh.f32 %v7210_v6 }
0x1915   :  { %v6187_v26 = vpop.eup %6186 }
0x1916   :  { %v6189_v9 = vpop.eup %6188  ;;  %4038 = vrot.lane.b32.xlu1 %v6187_v26, %s6279_s15 }
0x1917   :  { %4036 = vrot.lane.b32.xlu0 %v6189_v9, %s6279_s15 }
0x1919   :  { %v6191_v34 = vpop.eup %6190 }
0x191a   :  { %v6193_v18 = vpop.eup %6192  ;;  %4042 = vrot.lane.b32.xlu1 %v6191_v34, %s6279_s15 }
0x191b   :  { %4040 = vrot.lane.b32.xlu0 %v6193_v18, %s6279_s15 }
0x1988   :  { %v4039_v35 = vpop.permute.xlu1 %4038 }
0x1989   :  { %v7218_v24 = vmul.f32 %v4039_v35, %v3977_v30  ;;  %v4037_v14 = vpop.permute.xlu0 %4036 }
0x198a   :  { %v7220_v28 = vmul.f32 %v4037_v14, %v3976_v33 }
0x198b   :  { %4062 = vrot.lane.b32.xlu1 %v7218_v24, %s6280_s4 }
0x198c   :  { %v4043_v32 = vpop.permute.xlu1 %4042  ;;  %4060 = vrot.lane.b32.xlu0 %v7220_v28, %s6280_s4 }
0x198d   :  { %v7226_v31 = vmul.f32 %v4043_v32, %v3979_v42  ;;  %v4041_v37 = vpop.permute.xlu0 %4040 }
0x198e   :  { %v7228_v39 = vmul.f32 %v4041_v37, %v3978_v58 }
0x198f   :  { %4066 = vrot.lane.b32.xlu1 %v7226_v31, %s6280_s4 }
0x1990   :  { %4064 = vrot.lane.b32.xlu0 %v7228_v39, %s6280_s4 }
0x19fd   :  { %v4063_v33 = vpop.permute.xlu1 %4062 }
0x19fe   :  { %v4061_v30 = vpop.permute.xlu0 %4060 }
0x19ff   :  { %4874 = vmatmul.mubr.msk.f32.vlgmr.msra.gmra.mrb[84].mxu0 %vm59_vm0, %v4061_v30 }
0x1a00   :  { %4146 = vmatprep.mubr.f32.mxu0 %v6278_v7  ;;  %5893 = vmatpush3.bf16.msra.mxu0 %v6368_v15 }
0x1a01   :  { %5895 = vmatprep.subr.bf16.mxu0 %v6381_v19  ;;  %v4067_v40 = vpop.permute.xlu1 %4066 }
0x1a02   :  { %v4065_v60 = vpop.permute.xlu0 %4064 }
0x1a03   :  { %4875 = vmatmul.mubr.msk.f32.gmra.mrb[86].mxu0 %vm59_vm0, %v4063_v33 }
0x1a04   :  { %4152 = vmatprep.mubr.f32.mxu0 %v6278_v7  ;;  %5897 = vmatpush3.bf16.msra.mxu0 %v6381_v19 }
0x1a07   :  { %4876 = vmatmul.mubr.msk.f32.gmra.mrb[88].mxu0 %vm59_vm0, %v4065_v60 }
0x1a08   :  { %4158 = vmatprep.mubr.f32.mxu0 %v6278_v7 }
0x1a0b   :  { %4877 = vmatmul.mubr.msk.f32.gmra.mrb[90].mxu0 %vm59_vm0, %v4067_v40 }
0x1a0c   :  { %5554 = vmatprep.mubr.msk.f32.mxu0 %vm59_vm0, %v4061_v30 }
0x1a0f   :  { %5555 = vmatmul.mubr.msk.f32.vlgmr.msra.gmra.mrb[92].mxu0 %vm59_vm0, %v4063_v33 }
0x1a10   :  { %5557 = vmatprep.mubr.msk.f32.mxu0 %vm59_vm0, %v4065_v60 }
0x1a13   :  { %5558 = vmatmul.mubr.msk.f32.gmra.mrb[94].mxu0 %vm59_vm0, %v4067_v40 }
0x1ad2   :  { %v4142_v15 = vpop.f32.mrb[84].mxu0 }
0x1ad3   :  { %v4144_v42 = vpop.f32.mrb[85].mxu0 }
0x1ad6   :  { %v4148_v49 = vpop.f32.mrb[86].mxu0 }
0x1ad7   :  { %v5898_v19 = vpack.c.bf16 %v4148_v49, %v4142_v15  ;;  %v4150_v58 = vpop.f32.mrb[87].mxu0 }
0x1ad8   :  { %v5906_v36 = vpack.c.bf16 %v4150_v58, %v4144_v42 }
0x1ad9   :  { %5899 = vmatprep.subr.bf16.mxu1 %v5898_v19 }
0x1ada   :  { %v4154_v48 = vpop.f32.mrb[88].mxu0  ;;  %5901 = vmatpush3.bf16.msra.mxu1 %v5898_v19 }
0x1adb   :  { %v4156_v7 = vpop.f32.mrb[89].mxu0 }
0x1ade   :  { %v4160_v45 = vpop.f32.mrb[90].mxu0 }
0x1adf   :  { %v5902_v12 = vpack.c.bf16 %v4160_v45, %v4154_v48  ;;  %v4162_v51 = vpop.f32.mrb[91].mxu0 }
0x1ae0   :  { %v5910_v3 = vpack.c.bf16 %v4162_v51, %v4156_v7 }
0x1ae1   :  { %5903 = vmatprep.subr.bf16.mxu1 %v5902_v12 }
0x1ae2   :  { %v5556_v56 = vpop.f32.mrb[92].mxu0  ;;  %5905 = vmatpush3.bf16.msra.mxu1 %v5902_v12 }
0x1ae3   :  { %v4231_v50 = vpop.f32.mrb[93].mxu0  ;;  %5907 = vmatprep.subr.bf16.mxu1 %v5906_v36 }
0x1ae4   :  { %v5914_v5 = vpack.c.bf16 %v5556_v56, %v4231_v50 }
0x1ae5   :  { %5569 = vmatmul.mubr.msk.f32.vlgmr.msra.gmra.mrb[28].mxu1 %vm59_vm0, %v6898_v54  ;;  %v4883_v54 = vld [vmem:[%s7476_s2 + $0xe8] sm:$0xff] }
0x1ae6   :  { %v5559_v63 = vpop.f32.mrb[94].mxu0  ;;  %5909 = vmatpush3.bf16.msra.mxu1 %v5906_v36  ;;  %5571 = vmatprep.mubr.msk.f32.mxu1 %vm59_vm0, %v6905_v57  ;;  %v4882_v57 = vld [vmem:[%s7476_s2 + $0xe0] sm:$0xff] }
0x1ae7   :  { %v4241_v10 = vpop.f32.mrb[95].mxu0  ;;  %5911 = vmatprep.subr.bf16.mxu1 %v5910_v3 }
0x1ae8   :  { %v5918_v26 = vpack.c.bf16 %v5559_v63, %v4241_v10 }
0x1ae9   :  { %5572 = vmatmul.mubr.msk.f32.gmra.mrb[30].mxu1 %vm59_vm0, %v6912_v62 }
0x1aea   :  { %5913 = vmatpush3.bf16.msra.mxu1 %v5910_v3  ;;  %5582 = vmatprep.mubr.msk.f32.mxu1 %vm59_vm0, %v6919_v1 }
0x1aeb   :  { %5915 = vmatprep.subr.bf16.mxu1 %v5914_v5 }
0x1aed   :  { %5583 = vmatmul.mubr.msk.f32.vlgmr.msra.gmra.mrb[28].mxu1 %vm59_vm0, %v6926_v2 }
0x1aee   :  { %5917 = vmatpush3.bf16.msra.mxu1 %v5914_v5  ;;  %5585 = vmatprep.mubr.msk.f32.mxu1 %vm59_vm0, %v6933_v38 }
0x1aef   :  { %5919 = vmatprep.subr.bf16.mxu1 %v5918_v26 }
0x1af1   :  { %5586 = vmatmul.mubr.msk.f32.gmra.mrb[30].mxu1 %vm59_vm0, %v6940_v43  ;;  %v4885_v43 = vld [vmem:[%s7476_s2 + $0xf8] sm:$0xff] }
0x1af2   :  { %5921 = vmatpush3.bf16.msra.mxu1 %v5918_v26  ;;  %5596 = vmatprep.mubr.msk.f32.mxu1 %vm59_vm0, %v6947_v46  ;;  %v4884_v46 = vld [vmem:[%s7476_s2 + $0xf0] sm:$0xff]  ;;  %s6281_s2 = smov 96  }
0x1af5   :  { %5597 = vmatmul.mubr.msk.f32.vlgmr.msra.gmra.mrb[28].mxu1 %vm59_vm0, %v6954_v47 }
0x1af6   :  { %5599 = vmatprep.mubr.msk.f32.mxu1 %vm59_vm0, %v6961_v4 }
0x1af9   :  { %5600 = vmatmul.mubr.msk.f32.gmra.mrb[30].mxu1 %vm59_vm0, %v6968_v23 }
0x1bc8   :  { %v5598_v62 = vpop.f32.mrb[28].mxu1 }
0x1bc9   :  { %v5950_v1 = vadd.f32 %v5598_v62, %v4883_v54  ;;  %v4499_v2 = vpop.f32.mrb[29].mxu1 }
0x1bca   :  { %v5951_v38 = vadd.f32 %v4882_v57, %v4499_v2 }
0x1bcb   :  { %6194 = vtanh.f32 %v5950_v1  ;;  %v4523_v32 = vmul.f32 0.5, %v5950_v1 }
0x1bcc   :  { %6196 = vtanh.f32 %v5951_v38  ;;  %v5601_v47 = vpop.f32.mrb[30].mxu1  ;;  %v4522_v37 = vmul.f32 0.5, %v5951_v38 }
0x1bcd   :  { %v5952_v4 = vadd.f32 %v5601_v47, %v4885_v43  ;;  %v4509_v23 = vpop.f32.mrb[31].mxu1 }
0x1bce   :  { %v5953_v9 = vadd.f32 %v4884_v46, %v4509_v23 }
0x1bcf   :  { %6198 = vtanh.f32 %v5952_v4  ;;  %v4525_v30 = vmul.f32 0.5, %v5952_v4 }
0x1bd0   :  { %6200 = vtanh.f32 %v5953_v9  ;;  %v4524_v33 = vmul.f32 0.5, %v5953_v9 }
0x1bd1   :  { %6202 = vtanh.f32 %v4523_v32 }
0x1bd2   :  { %6204 = vtanh.f32 %v4522_v37 }
0x1bd3   :  { %6206 = vtanh.f32 %v4525_v30 }
0x1bd4   :  { %6208 = vtanh.f32 %v4524_v33 }
0x1bd5   :  { %v6195_v34 = vpop.eup %6194 }
0x1bd6   :  { %v6197_v18 = vpop.eup %6196  ;;  %4552 = vrot.lane.b32.xlu1 %v6195_v34, %s6279_s15 }
0x1bd7   :  { %4550 = vrot.lane.b32.xlu0 %v6197_v18, %s6279_s15 }
0x1bd9   :  { %v6199_v35 = vpop.eup %6198 }
0x1bda   :  { %v6201_v14 = vpop.eup %6200  ;;  %4556 = vrot.lane.b32.xlu1 %v6199_v35, %s6279_s15 }
0x1bdb   :  { %4554 = vrot.lane.b32.xlu0 %v6201_v14, %s6279_s15  ;;  %v6203_v60 = vpop.eup %6202 }
0x1bdc   :  { %v6205_v40 = vpop.eup %6204  ;;  %v4531_v15 = vadd.f32 1.0, %v6203_v60 }
0x1bdd   :  { %v6207_v42 = vpop.eup %6206  ;;  %v4530_v49 = vadd.f32 1.0, %v6205_v40 }
0x1bde   :  { %v6209_v19 = vpop.eup %6208  ;;  %v4535_v58 = vmul.f32 0.5, %v4531_v15  ;;  %v4533_v36 = vadd.f32 1.0, %v6207_v42 }
0x1bdf   :  { %v4534_v7 = vmul.f32 0.5, %v4530_v49  ;;  %v4532_v45 = vadd.f32 1.0, %v6209_v19 }
0x1be0   :  { %v7287_v56 = vmul.f32 0.5, %v4533_v36  ;;  %v4543_v54 = vmul.f32 %v4535_v58, %v7200_v0 }
0x1be1   :  { %v7290_v5 = vmul.f32 0.5, %v4532_v45  ;;  %v4542_v62 = vmul.f32 %v4534_v7, %v7202_v55 }
0x1be2   :  { %v4545_v43 = vmul.f32 %v7287_v56, %v7208_v8 }
0x1be3   :  { %v4544_v47 = vmul.f32 %v7290_v5, %v7210_v6 }
0x1c48   :  { %v4553_v48 = vpop.permute.xlu1 %4552 }
0x1c49   :  { %v4563_v12 = vmul.f32 %v4553_v48, %v4535_v58  ;;  %v4551_v51 = vpop.permute.xlu0 %4550 }
0x1c4a   :  { %v4562_v3 = vmul.f32 %v4551_v51, %v4534_v7 }
0x1c4b   :  { %4572 = vrot.lane.b32.xlu1 %v4563_v12, %s6279_s15 }
0x1c4c   :  { %v4557_v50 = vpop.permute.xlu1 %4556  ;;  %4570 = vrot.lane.b32.xlu0 %v4562_v3, %s6279_s15 }
0x1c4d   :  { %v4565_v63 = vmul.f32 %v4557_v50, %v7287_v56  ;;  %v4555_v10 = vpop.permute.xlu0 %4554 }
0x1c4e   :  { %v4564_v26 = vmul.f32 %v4555_v10, %v7290_v5 }
0x1c4f   :  { %4576 = vrot.lane.b32.xlu1 %v4565_v63, %s6279_s15 }
0x1c50   :  { %4574 = vrot.lane.b32.xlu0 %v4564_v26, %s6279_s15 }
0x1cbd   :  { %v4573_v57 = vpop.permute.xlu1 %4572 }
0x1cbe   :  { %v4583_v1 = vadd.f32 %v4573_v57, %v4543_v54  ;;  %v4571_v2 = vpop.permute.xlu0 %4570 }
0x1cbf   :  { %v4582_v38 = vadd.f32 %v4571_v2, %v4542_v62 }
0x1cc0   :  { %6210 = vtanh.f32 %v4583_v1 }
0x1cc1   :  { %6212 = vtanh.f32 %v4582_v38  ;;  %v4577_v46 = vpop.permute.xlu1 %4576 }
0x1cc2   :  { %v4585_v4 = vadd.f32 %v4577_v46, %v4545_v43  ;;  %v4575_v23 = vpop.permute.xlu0 %4574 }
0x1cc3   :  { %v4584_v9 = vadd.f32 %v4575_v23, %v4544_v47 }
0x1cc4   :  { %6214 = vtanh.f32 %v4585_v4 }
0x1cc5   :  { %6216 = vtanh.f32 %v4584_v9 }
0x1cca   :  { %v6211_v0 = vpop.eup %6210 }
0x1ccb   :  { %v6213_v34 = vpop.eup %6212  ;;  %4596 = vrot.lane.b32.xlu1 %v6211_v0, %s6279_s15 }
0x1ccc   :  { %4594 = vrot.lane.b32.xlu0 %v6213_v34, %s6279_s15 }
0x1cce   :  { %v6215_v55 = vpop.eup %6214 }
0x1ccf   :  { %v6217_v18 = vpop.eup %6216  ;;  %4600 = vrot.lane.b32.xlu1 %v6215_v55, %s6279_s15 }
0x1cd0   :  { %4598 = vrot.lane.b32.xlu0 %v6217_v18, %s6279_s15 }
0x1cd3   :  { %1225 = vrot.lane.b32.xlu1 %v6654_v13, %s6281_s2 }
0x1cd4   :  { %1223 = vrot.lane.b32.xlu0 %v6656_v17, %s6281_s2 }
0x1cd7   :  { %1229 = vrot.lane.b32.xlu1 %v6662_v20, %s6281_s2 }
0x1cd8   :  { %1227 = vrot.lane.b32.xlu0 %v6664_v22, %s6281_s2 }
0x1cdb   :  { %3488 = vrot.lane.b32.xlu1 %v7118_v41, %s6281_s2 }
0x1cdc   :  { %3486 = vrot.lane.b32.xlu0 %v7120_v44, %s6281_s2 }
0x1cdf   :  { %3492 = vrot.lane.b32.xlu1 %v7126_v53, %s6281_s2 }
0x1ce0   :  { %3490 = vrot.lane.b32.xlu0 %v7128_v59, %s6281_s2 }
0x1ce3   :  { %4652 = vrot.lane.b32.xlu1 %v4583_v1, %s6281_s2 }
0x1ce4   :  { %4650 = vrot.lane.b32.xlu0 %v4582_v38, %s6281_s2 }
0x1ce7   :  { %4656 = vrot.lane.b32.xlu1 %v4585_v4, %s6281_s2 }
0x1ce8   :  { %4654 = vrot.lane.b32.xlu0 %v4584_v9, %s6281_s2 }
0x1ceb   :  { %2355 = vrot.lane.b32.xlu1 %v6859_v52, %s6279_s15 }
0x1cec   :  { %2353 = vrot.lane.b32.xlu0 %v6861_v11, %s6279_s15 }
0x1cef   :  { %2359 = vrot.lane.b32.xlu1 %v6867_v61, %s6279_s15 }
0x1cf0   :  { %2357 = vrot.lane.b32.xlu0 %v6869_v16, %s6279_s15 }
0x1d3d   :  { %v4597_v13 = vpop.permute.xlu1 %4596 }
0x1d3e   :  { %v4607_v17 = vmul.f32 %v4597_v13, %v4535_v58  ;;  %v4595_v20 = vpop.permute.xlu0 %4594 }
0x1d3f   :  { %v4606_v22 = vmul.f32 %v4595_v20, %v4534_v7 }
0x1d40   :  { %4632 = vrot.lane.b32.xlu1 %v4607_v17, %s6280_s4 }
0x1d41   :  { %v4601_v41 = vpop.permute.xlu1 %4600  ;;  %4630 = vrot.lane.b32.xlu0 %v4606_v22, %s6280_s4 }
0x1d42   :  { %v4599_v44 = vpop.permute.xlu0 %4598  ;;  %v4609_v11 = vmul.f32 %v4601_v41, %v7287_v56 }
0x1d43   :  { %v4608_v16 = vmul.f32 %v4599_v44, %v7290_v5 }
0x1d44   :  { %4616 = vrot.lane.b32.xlu1 %v4607_v17, %s6279_s15 }
0x1d45   :  { %v1226_v52 = vpop.permute.xlu1 %1225  ;;  %4614 = vrot.lane.b32.xlu0 %v4606_v22, %s6279_s15 }
0x1d46   :  { %1237 = vst.msk [vmem:[%s7479_s5 + $0x10] sm:$0xff] %vm1235_vm1, %v1226_v52  ;;  %v1224_v61 = vpop.permute.xlu0 %1223 }
0x1d47   :  { %1236 = vst.msk [vmem:[%s7479_s5] sm:$0xff] %vm1235_vm1, %v1224_v61 }
0x1d48   :  { %1792 = vst.msk [vmem:[%s7479_s5 + $0x10] sm:$0xff] %vm1790_vm2, %v6754_v21  ;;  %4636 = vrot.lane.b32.xlu1 %v4609_v11, %s6280_s4  ;;  %1791 = vst.msk [vmem:[%s7479_s5] sm:$0xff] %vm1790_vm2, %v6756_v25 }
0x1d49   :  { %v1230_v53 = vpop.permute.xlu1 %1229  ;;  %4634 = vrot.lane.b32.xlu0 %v4608_v16, %s6280_s4 }
0x1d4a   :  { %1239 = vst.msk [vmem:[%s7479_s5 + $0x30] sm:$0xff] %vm1235_vm1, %v1230_v53  ;;  %v1228_v59 = vpop.permute.xlu0 %1227 }
0x1d4b   :  { %1238 = vst.msk [vmem:[%s7479_s5 + $0x20] sm:$0xff] %vm1235_vm1, %v1228_v59 }
0x1d4c   :  { %1794 = vst.msk [vmem:[%s7479_s5 + $0x30] sm:$0xff] %vm1790_vm2, %v6762_v27  ;;  %4620 = vrot.lane.b32.xlu1 %v4609_v11, %s6279_s15  ;;  %1793 = vst.msk [vmem:[%s7479_s5 + $0x20] sm:$0xff] %vm1790_vm2, %v6764_v29 }
0x1d4d   :  { %v3489_v21 = vpop.permute.xlu1 %3488  ;;  %4618 = vrot.lane.b32.xlu0 %v4608_v16, %s6279_s15 }
0x1d4e   :  { %3499 = vst.msk [vmem:[%s7479_s5 + $0x18] sm:$0xff] %vm1235_vm1, %v3489_v21  ;;  %v3487_v25 = vpop.permute.xlu0 %3486 }
0x1d4f   :  { %3498 = vst.msk [vmem:[%s7479_s5 + $0x8] sm:$0xff] %vm1235_vm1, %v3487_v25 }
0x1d50   :  { %4053 = vst.msk [vmem:[%s7479_s5 + $0x18] sm:$0xff] %vm1790_vm2, %v7218_v24  ;;  %4052 = vst.msk [vmem:[%s7479_s5 + $0x8] sm:$0xff] %vm1790_vm2, %v7220_v28 }
0x1d51   :  { %v3493_v27 = vpop.permute.xlu1 %3492 }
0x1d52   :  { %3501 = vst.msk [vmem:[%s7479_s5 + $0x38] sm:$0xff] %vm1235_vm1, %v3493_v27  ;;  %v3491_v29 = vpop.permute.xlu0 %3490 }
0x1d53   :  { %3500 = vst.msk [vmem:[%s7479_s5 + $0x28] sm:$0xff] %vm1235_vm1, %v3491_v29 }
0x1d54   :  { %4055 = vst.msk [vmem:[%s7479_s5 + $0x38] sm:$0xff] %vm1790_vm2, %v7226_v31  ;;  %4054 = vst.msk [vmem:[%s7479_s5 + $0x28] sm:$0xff] %vm1790_vm2, %v7228_v39 }
0x1d55   :  { %v4653_v8 = vpop.permute.xlu1 %4652 }
0x1d56   :  { %4663 = vst.msk [vmem:[#allocation4 + $0x8] sm:$0xff] %vm59_vm0, %v4653_v8  ;;  %v4651_v6 = vpop.permute.xlu0 %4650 }
0x1d57   :  { %4662 = vst.msk [vmem:[#allocation4] sm:$0xff] %vm59_vm0, %v4651_v6 }
0x1d59   :  { %v4657_v24 = vpop.permute.xlu1 %4656 }
0x1d5a   :  { %4665 = vst.msk [vmem:[#allocation4 + $0x18] sm:$0xff] %vm59_vm0, %v4657_v24  ;;  %v4655_v28 = vpop.permute.xlu0 %4654 }
0x1d5b   :  { %4664 = vst.msk [vmem:[#allocation4 + $0x10] sm:$0xff] %vm59_vm0, %v4655_v28 }
0x1d5c   :  { %6241 = shalt.err (!%p6238_p4)
}
0x1d5d   :  { %s6242_s30 = scalar_lea.hbm %s7481_s7, 512 }
0x1d5e   :  { %p6243_p5 = scmp.ne.s32.totalorder %s7481_s7, %s6242_s30  ;;  %p6246_p6 = scmp.lt.u32.totalorder %s6242_s30, %s7481_s7 }
0x1d60   :  { %p6248_p7 = pnand %p6246_p6, %p6243_p5 }
0x1d62   :  { %6251 = shalt.err (!%p6248_p7)
}
0x1d63   :  { %s6283_s4 = smov 128   ;;  %s6284_s0 = smov 8   ;;  %v2356_v31 = vpop.permute.xlu1 %2355  ;;  %v2354_v39 = vpop.permute.xlu0 %2353 }
0x1d64   :  { %4691 = dma.vmem_to_hbm [thread:$0]  %s4686_s27, 512, %s7481_s7, [#allocation5], %s6283_s4, %s6283_s4, %s6284_s0  }
0x1d65   :  { %2367 = vst.msk [vmem:[%s7479_s5 + $0x10] sm:$0xff] %vm2365_vm3, %v2356_v31  ;;  %2366 = vst.msk [vmem:[%s7479_s5] sm:$0xff] %vm2365_vm3, %v2354_v39  ;;  %s6285_s2 = smov [#allocation2]  }
0x1d66   :  { %s4673_s22 = sshll.u32 %s6285_s2, 4  ;;  %s4674_s22 = int_to_ptr.vmem [resolvable:$true] %s4673_s22 }
0x1d67   :  { %v2360_v35 = vpop.permute.xlu1 %2359  ;;  %v2358_v14 = vpop.permute.xlu0 %2357  ;;  %s6252_s25 = scalar_lea.vmem %s4674_s22, 512  ;;  %p6257_p9 = scmp.lt.s32.totalorder %s4674_s22, %s4674_s22 }
0x1d68   :  { %2369 = vst.msk [vmem:[%s7479_s5 + $0x30] sm:$0xff] %vm2365_vm3, %v2360_v35  ;;  %2368 = vst.msk [vmem:[%s7479_s5 + $0x20] sm:$0xff] %vm2365_vm3, %v2358_v14  ;;  %p6253_p8 = scmp.ne.s32.totalorder %s4674_s22, %s6252_s25  ;;  %p6258_p10 = scmp.lt.s32.totalorder %s6252_s25, %s6252_s25 }
0x1d6a   :  { %p6259_p11 = por %p6258_p10, %p6257_p9 }
0x1d6c   :  { %p6260_p12 = pnand %p6259_p11, %p6253_p8 }
0x1db2   :  { %v4633_v32 = vpop.permute.xlu1 %4632 }
0x1db3   :  { %4643 = vst.msk [vmem:[#allocation2 + $0x8] sm:$0xff] %vm59_vm0, %v4633_v32  ;;  %v4631_v37 = vpop.permute.xlu0 %4630 }
0x1db4   :  { %4642 = vst.msk [vmem:[#allocation2] sm:$0xff] %vm59_vm0, %v4631_v37 }
0x1db6   :  { %v4617_v30 = vpop.permute.xlu1 %4616 }
0x1db7   :  { %4627 = vst.msk [vmem:[%s7479_s5 + $0x18] sm:$0xff] %vm2365_vm3, %v4617_v30  ;;  %v4615_v33 = vpop.permute.xlu0 %4614 }
0x1db8   :  { %4626 = vst.msk [vmem:[%s7479_s5 + $0x8] sm:$0xff] %vm2365_vm3, %v4615_v33 }
0x1dba   :  { %v4637_v60 = vpop.permute.xlu1 %4636 }
0x1dbb   :  { %4645 = vst.msk [vmem:[#allocation2 + $0x18] sm:$0xff] %vm59_vm0, %v4637_v60  ;;  %v4635_v40 = vpop.permute.xlu0 %4634 }
0x1dbc   :  { %4644 = vst.msk [vmem:[#allocation2 + $0x10] sm:$0xff] %vm59_vm0, %v4635_v40 }
0x1dbd   :  { %6263 = shalt.err (!%p6260_p12)
}
0x1dbe   :  { %s6264_s28 = scalar_lea.hbm %s7480_s6, 512 }
0x1dbf   :  { %p6265_p13 = scmp.ne.s32.totalorder %s7480_s6, %s6264_s28  ;;  %p6268_p0 = scmp.lt.u32.totalorder %s6264_s28, %s7480_s6 }
0x1dc1   :  { %p6270_p1 = pnand %p6268_p0, %p6265_p13 }
0x1dc3   :  { %6273 = shalt.err (!%p6270_p1)
}
0x1dc4   :  { %4679 = dma.vmem_to_hbm [thread:$0]  %s4674_s22, 512, %s7480_s6, [#allocation3], %s6283_s4, %s6283_s4, %s6284_s0   ;;  %v4621_v15 = vpop.permute.xlu1 %4620  ;;  %v4619_v42 = vpop.permute.xlu0 %4618 }
0x1dc5   :  { %4629 = vst.msk [vmem:[%s7479_s5 + $0x38] sm:$0xff] %vm2365_vm3, %v4621_v15  ;;  %4628 = vst.msk [vmem:[%s7479_s5 + $0x28] sm:$0xff] %vm2365_vm3, %v4619_v42 }
0x1dc6   :  { %6274 = dma.done.wait [#allocation3], 512  }
0x1dc7   :  { %6275 = vsyncadd [#allocation3], 4294966784 }
0x1dc8   :  { %6276 = dma.done.wait [#allocation5], 512  }
0x1dc9   :  { %6277 = vsyncadd [#allocation5], 4294966784 }
0x1dca   :  { %4700 = vsyncpa [#allocation3], 1 }
0x1dcb   :  { %4701 = vsyncpa [#allocation5], 1 }

// kernel: encoder_forward_pallas.3
= control target key start
LH: loop header
LB: loop body
LE: loop exit
PB: predicated region body
PF: predicated region fallthrough
CT: control target
= control target key end

     0   :  { %13 = vsyncpa [#allocation3], 0  ;;  %v6314_v7 = vmov 0.0   ;;  %s7446_s0 = inlined_call_operand.vmem [shape: f32[3,32,32], index: 0, kind: input, shape index: {}]   ;;  %s7447_s1 = inlined_call_operand.vmem [shape: f32[32,384], index: 1, kind: input, shape index: {}]   ;;  %s7448_s2 = inlined_call_operand.vmem [shape: f32[8,32,128], index: 2, kind: input, shape index: {}]   ;;  %s7449_s3 = inlined_call_operand.vmem [shape: f32[32,32], index: 3, kind: input, shape index: {}]   ;;  %s7450_s4 = inlined_call_operand.vmem [shape: f32[32,32], index: 4, kind: input, shape index: {}]   ;;  %s7451_s5 = inlined_call_operand.hbm [shape: f32[32,256], index: 5, kind: output, shape index: {0}]   ;;  %s7452_s6 = inlined_call_operand.hbm [shape: f32[32,32], index: 6, kind: output, shape index: {1}]   ;;  %s7453_s7 = inlined_call_operand.hbm [shape: f32[32,32], index: 7, kind: output, shape index: {2}]  }
   0x1   :  { %v26_v0 = vld [vmem:[%s7447_s1 + $0x8] sm:$0xff]  ;;  %v29_v1 = vld [vmem:[%s7447_s1 + $0x20] sm:$0xff]  ;;  %v28_v4 = vld [vmem:[%s7447_s1 + $0x18] sm:$0xff]  ;;  %136 = vmatprep.mubr.f32.mxu0 %v6314_v7 }
   0x2   :  { %v25_v2 = vld [vmem:[%s7447_s1] sm:$0xff]  ;;  %v6374_v3 = vpack.c.bf16 %v29_v1, %v26_v0  ;;  %v32_v5 = vld [vmem:[%s7447_s1 + $0x38] sm:$0xff]  ;;  %v35_v6 = vld [vmem:[%s7447_s1 + $0x50] sm:$0xff] }
   0x3   :  { %v6386_v8 = vpack.c.bf16 %v28_v4, %v25_v2  ;;  %v6388_v9 = vpack.c.bf16 %v35_v6, %v32_v5  ;;  %v31_v10 = vld [vmem:[%s7447_s1 + $0x30] sm:$0xff]  ;;  %v34_v11 = vld [vmem:[%s7447_s1 + $0x48] sm:$0xff] }
   0x4   :  { %5614 = vmatprep.subr.bf16.mxu0 %v6374_v3  ;;  %v27_v12 = vld [vmem:[%s7447_s1 + $0x10] sm:$0xff]  ;;  %v30_v13 = vld [vmem:[%s7447_s1 + $0x28] sm:$0xff]  ;;  %v6404_v14 = vpack.c.bf16 %v34_v11, %v31_v10 }
   0x5   :  { %5616 = vmatpush1.bf16.msra.mxu0 %v6386_v8  ;;  %v6407_v15 = vpack.c.bf16 %v30_v13, %v27_v12 }
   0x6   :  { %5618 = vmatprep.subr.bf16.mxu0 %v6388_v9 }
   0x7   :  { %14 = vsyncpa [#allocation5], 0  ;;  %v33_v16 = vld [vmem:[%s7447_s1 + $0x40] sm:$0xff]  ;;  %v36_v17 = vld [vmem:[%s7447_s1 + $0x58] sm:$0xff]  ;;  %vm59_vm0 = vcmask 261120   ;;  %s6315_s15 = smov 32  }
   0x8   :  { %v51_v18 = vld [vmem:[%s7449_s3] sm:$0xff]  ;;  %v6420_v19 = vpack.c.bf16 %v36_v17, %v33_v16  ;;  %v52_v20 = vld [vmem:[%s7449_s3 + $0x8] sm:$0xff]  ;;  %v53_v21 = vld [vmem:[%s7449_s3 + $0x10] sm:$0xff]  ;;  %vm1235_vm1 = vcmask 523520   ;;  %vm1790_vm2 = vcmask 785920   ;;  %vm2365_vm3 = vcmask 1048320  }
   0x9   :  { %5620 = vmatpush1.bf16.msra.mxu0 %v6404_v14  ;;  %v54_v22 = vld [vmem:[%s7449_s3 + $0x18] sm:$0xff]  ;;  %v6454_v23 = vld [vmem:[%s7446_s0] sm:$0xff]  ;;  %v6461_v36 = vld [vmem:[%s7446_s0 + $0x8] sm:$0xff]  ;;  %s6319_s29 = smov [#allocation2]  }
   0xa   :  { %5622 = vmatprep.subr.bf16.mxu0 %v6407_v15  ;;  %5187 = vmatprep.mubr.msk.f32.mxu1 %vm59_vm0, %v6454_v23  ;;  %v6466_v38 = vld [vmem:[%s7446_s0 + $0x10] sm:$0xff]  ;;  %v6475_v41 = vld [vmem:[%s7446_s0 + $0x18] sm:$0xff]  ;;  %v6480_v43 = vld [vmem:[%s7446_s0 + $0x20] sm:$0xff]  ;;  %s4671_s30 = sshll.u32 %s6319_s29, 4  ;;  %s7393_s30 = int_to_ptr.vmem [resolvable:$true] %s4671_s30 }
   0xb   :  { %v6489_v46 = vld [vmem:[%s7446_s0 + $0x28] sm:$0xff]  ;;  %v6494_v47 = vld [vmem:[%s7446_s0 + $0x30] sm:$0xff]  ;;  %v6503_v48 = vld [vmem:[%s7446_s0 + $0x38] sm:$0xff] }
   0xc   :  { %4721 = vmatmul.mubr.msk.f32.vlgmr.msra.gmra.mrb[0].mxu0 %vm59_vm0, %v51_v18  ;;  %v6508_v49 = vld [vmem:[%s7446_s0 + $0x40] sm:$0xff]  ;;  %v6517_v50 = vld [vmem:[%s7446_s0 + $0x48] sm:$0xff]  ;;  %v6522_v51 = vld [vmem:[%s7446_s0 + $0x50] sm:$0xff] }
   0xd   :  { %142 = vmatprep.mubr.f32.mxu0 %v6314_v7  ;;  %5624 = vmatpush3.bf16.msra.mxu0 %v6407_v15  ;;  %v6531_v52 = vld [vmem:[%s7446_s0 + $0x58] sm:$0xff]  ;;  %v246_v53 = vld [vmem:[%s7448_s2] sm:$0xff]  ;;  %v247_v54 = vld [vmem:[%s7448_s2 + $0x8] sm:$0xff] }
   0xe   :  { %5626 = vmatprep.subr.bf16.mxu0 %v6420_v19  ;;  %v248_v59 = vld [vmem:[%s7448_s2 + $0x10] sm:$0xff]  ;;  %v249_v61 = vld [vmem:[%s7448_s2 + $0x18] sm:$0xff]  ;;  %v55_v5 = vld [vmem:[%s7450_s4] sm:$0xff] }
   0xf   :  { %v56_v10 = vld [vmem:[%s7450_s4 + $0x8] sm:$0xff]  ;;  %v57_v11 = vld [vmem:[%s7450_s4 + $0x10] sm:$0xff]  ;;  %v58_v12 = vld [vmem:[%s7450_s4 + $0x18] sm:$0xff]  ;;  %s6316_s4 = smov 64  }
  0x10   :  { %4722 = vmatmul.mubr.msk.f32.gmra.mrb[2].mxu0 %vm59_vm0, %v52_v20 }
  0x11   :  { %148 = vmatprep.mubr.f32.mxu0 %v6314_v7  ;;  %5628 = vmatpush3.bf16.msra.mxu0 %v6420_v19 }
  0x12   :  { %5654 = vmatprep.subr.bf16.mxu0 %v6374_v3 }
  0x14   :  { %4723 = vmatmul.mubr.msk.f32.gmra.mrb[4].mxu0 %vm59_vm0, %v53_v21 }
  0x15   :  { %154 = vmatprep.mubr.f32.mxu0 %v6314_v7 }
  0x18   :  { %4724 = vmatmul.mubr.msk.f32.gmra.mrb[6].mxu0 %vm59_vm0, %v54_v22 }
  0x19   :  { %5173 = vmatprep.mubr.msk.f32.mxu0 %vm59_vm0, %v51_v18 }
  0x1c   :  { %5174 = vmatmul.mubr.msk.f32.vlgmr.msra.gmra.mrb[8].mxu0 %vm59_vm0, %v52_v20 }
  0x1d   :  { %5176 = vmatprep.mubr.msk.f32.mxu0 %vm59_vm0, %v53_v21  ;;  %5656 = vmatpush1.bf16.msra.mxu0 %v6386_v8 }
  0x1e   :  { %5658 = vmatprep.subr.bf16.mxu0 %v6388_v9 }
  0x20   :  { %5177 = vmatmul.mubr.msk.f32.gmra.mrb[10].mxu0 %vm59_vm0, %v54_v22 }
  0x21   :  { %5660 = vmatpush1.bf16.msra.mxu0 %v6404_v14  ;;  %749 = vmatprep.mubr.f32.mxu0 %v6314_v7 }
  0x22   :  { %5662 = vmatprep.subr.bf16.mxu0 %v6407_v15 }
  0xdf   :  { %v138_v24 = vpop.f32.mrb[0].mxu0 }
  0xe0   :  { %v140_v25 = vpop.f32.mrb[1].mxu0 }
  0xe3   :  { %v144_v26 = vpop.f32.mrb[2].mxu0 }
  0xe4   :  { %v5629_v27 = vpack.c.bf16 %v144_v26, %v138_v24  ;;  %v146_v28 = vpop.f32.mrb[3].mxu0 }
  0xe5   :  { %v5637_v29 = vpack.c.bf16 %v146_v28, %v140_v25 }
  0xe6   :  { %5630 = vmatprep.subr.bf16.mxu1 %v5629_v27 }
  0xe7   :  { %v150_v30 = vpop.f32.mrb[4].mxu0  ;;  %5632 = vmatpush3.bf16.msra.mxu1 %v5629_v27 }
  0xe8   :  { %v152_v31 = vpop.f32.mrb[5].mxu0 }
  0xeb   :  { %v156_v32 = vpop.f32.mrb[6].mxu0 }
  0xec   :  { %v5633_v33 = vpack.c.bf16 %v156_v32, %v150_v30  ;;  %v158_v34 = vpop.f32.mrb[7].mxu0 }
  0xed   :  { %v5641_v35 = vpack.c.bf16 %v158_v34, %v152_v31 }
  0xee   :  { %5634 = vmatprep.subr.bf16.mxu1 %v5633_v33 }
  0xef   :  { %5636 = vmatpush3.bf16.msra.mxu1 %v5633_v33  ;;  %v5175_v37 = vpop.f32.mrb[8].mxu0 }
  0xf0   :  { %5638 = vmatprep.subr.bf16.mxu1 %v5637_v29  ;;  %v227_v39 = vpop.f32.mrb[9].mxu0 }
  0xf1   :  { %v5645_v40 = vpack.c.bf16 %v5175_v37, %v227_v39 }
  0xf2   :  { %5188 = vmatmul.mubr.msk.f32.vlgmr.msra.gmra.mrb[0].mxu1 %vm59_vm0, %v6461_v36 }
  0xf3   :  { %5640 = vmatpush3.bf16.msra.mxu1 %v5637_v29  ;;  %5190 = vmatprep.mubr.msk.f32.mxu1 %vm59_vm0, %v6466_v38  ;;  %v5178_v42 = vpop.f32.mrb[10].mxu0 }
  0xf4   :  { %5642 = vmatprep.subr.bf16.mxu1 %v5641_v35  ;;  %v237_v44 = vpop.f32.mrb[11].mxu0 }
  0xf5   :  { %v5649_v45 = vpack.c.bf16 %v5178_v42, %v237_v44 }
  0xf6   :  { %5191 = vmatmul.mubr.msk.f32.gmra.mrb[2].mxu1 %vm59_vm0, %v6475_v41 }
  0xf7   :  { %5644 = vmatpush3.bf16.msra.mxu1 %v5641_v35  ;;  %5201 = vmatprep.mubr.msk.f32.mxu1 %vm59_vm0, %v6480_v43 }
  0xf8   :  { %5646 = vmatprep.subr.bf16.mxu1 %v5645_v40 }
  0xfa   :  { %5202 = vmatmul.mubr.msk.f32.vlgmr.msra.gmra.mrb[0].mxu1 %vm59_vm0, %v6489_v46 }
  0xfb   :  { %5648 = vmatpush3.bf16.msra.mxu1 %v5645_v40  ;;  %5204 = vmatprep.mubr.msk.f32.mxu1 %vm59_vm0, %v6494_v47 }
  0xfc   :  { %5650 = vmatprep.subr.bf16.mxu1 %v5649_v45 }
  0xfe   :  { %5205 = vmatmul.mubr.msk.f32.gmra.mrb[2].mxu1 %vm59_vm0, %v6503_v48 }
  0xff   :  { %5652 = vmatpush3.bf16.msra.mxu1 %v5649_v45  ;;  %5215 = vmatprep.mubr.msk.f32.mxu1 %vm59_vm0, %v6508_v49 }
 0x102   :  { %5216 = vmatmul.mubr.msk.f32.vlgmr.msra.gmra.mrb[0].mxu1 %vm59_vm0, %v6517_v50 }
 0x103   :  { %5218 = vmatprep.mubr.msk.f32.mxu1 %vm59_vm0, %v6522_v51 }
 0x106   :  { %5219 = vmatmul.mubr.msk.f32.gmra.mrb[2].mxu1 %vm59_vm0, %v6531_v52 }
 0x107   :  { %5243 = vmatprep.mubr.msk.f32.mxu1 %vm59_vm0, %v6454_v23 }
 0x1d5   :  { %v5217_v55 = vpop.f32.mrb[0].mxu1 }
 0x1d6   :  { %v530_v56 = vpop.f32.mrb[1].mxu1  ;;  %v5933_v58 = vadd.f32 %v5217_v55, %v247_v54 }
 0x1d7   :  { %v5934_v57 = vadd.f32 %v530_v56, %v246_v53 }
 0x1d8   :  { %v554_v16 = vmul.f32 0.5, %v5933_v58 }
 0x1d9   :  { %6040 = vtanh.f32 %v5934_v57  ;;  %v5220_v60 = vpop.f32.mrb[2].mxu1  ;;  %v553_v13 = vmul.f32 0.5, %v5934_v57 }
 0x1da   :  { %v540_v62 = vpop.f32.mrb[3].mxu1  ;;  %6042 = vtanh.f32 %v5933_v58  ;;  %v5935_v0 = vadd.f32 %v5220_v60, %v249_v61 }
 0x1db   :  { %v5936_v63 = vadd.f32 %v540_v62, %v248_v59 }
 0x1dc   :  { %v556_v18 = vmul.f32 0.5, %v5935_v0 }
 0x1dd   :  { %6044 = vtanh.f32 %v5936_v63  ;;  %v555_v17 = vmul.f32 0.5, %v5936_v63 }
 0x1de   :  { %6046 = vtanh.f32 %v5935_v0 }
 0x1df   :  { %6048 = vtanh.f32 %v553_v13 }
 0x1e0   :  { %6050 = vtanh.f32 %v554_v16 }
 0x1e1   :  { %6052 = vtanh.f32 %v555_v17 }
 0x1e2   :  { %6054 = vtanh.f32 %v556_v18 }
 0x1e3   :  { %v6041_v1 = vpop.eup %6040 }
 0x1e4   :  { %597 = vrot.lane.b32.xlu0 %v6041_v1, %s6315_s15  ;;  %v6043_v2 = vpop.eup %6042 }
 0x1e7   :  { %v6045_v4 = vpop.eup %6044 }
 0x1e8   :  { %599 = vrot.lane.b32.xlu0 %v6043_v2, %s6315_s15  ;;  %601 = vrot.lane.b32.xlu1 %v6045_v4, %s6315_s15  ;;  %v6047_v6 = vpop.eup %6046 }
 0x1e9   :  { %v6049_v20 = vpop.eup %6048 }
 0x1ea   :  { %v561_v21 = vadd.f32 1.0, %v6049_v20  ;;  %v6051_v22 = vpop.eup %6050 }
 0x1eb   :  { %v562_v24 = vadd.f32 1.0, %v6051_v22  ;;  %v6053_v26 = vpop.eup %6052 }
 0x1ec   :  { %577 = vrot.lane.b32.xlu0 %v55_v5, %s6315_s15  ;;  %603 = vrot.lane.b32.xlu1 %v6047_v6, %s6315_s15  ;;  %v565_v25 = vmul.f32 0.5, %v561_v21  ;;  %v563_v29 = vadd.f32 1.0, %v6053_v26  ;;  %v6055_v31 = vpop.eup %6054 }
 0x1ed   :  { %v566_v30 = vmul.f32 0.5, %v562_v24  ;;  %v564_v35 = vadd.f32 1.0, %v6055_v31 }
 0x1ee   :  { %v567_v37 = vmul.f32 0.5, %v563_v29 }
 0x1ef   :  { %v568_v42 = vmul.f32 0.5, %v564_v35 }
 0x1f0   :  { %579 = vrot.lane.b32.xlu0 %v56_v10, %s6315_s15 }
 0x1f4   :  { %581 = vrot.lane.b32.xlu0 %v57_v11, %s6315_s15 }
 0x1f8   :  { %583 = vrot.lane.b32.xlu0 %v58_v12, %s6315_s15 }
 0x256   :  { %v598_v27 = vpop.permute.xlu0 %597 }
 0x257   :  { %v609_v28 = vmul.f32 %v598_v27, %v565_v25 }
 0x259   :  { %617 = vrot.lane.b32.xlu1 %v609_v28, %s6315_s15 }
 0x25a   :  { %v600_v32 = vpop.permute.xlu0 %599  ;;  %v602_v33 = vpop.permute.xlu1 %601 }
 0x25b   :  { %v610_v34 = vmul.f32 %v600_v32, %v566_v30  ;;  %v611_v39 = vmul.f32 %v602_v33, %v567_v37 }
 0x25d   :  { %619 = vrot.lane.b32.xlu1 %v610_v34, %s6315_s15 }
 0x25e   :  { %v604_v40 = vpop.permute.xlu1 %603  ;;  %v578_v45 = vpop.permute.xlu0 %577 }
 0x25f   :  { %v612_v44 = vmul.f32 %v604_v40, %v568_v42  ;;  %v589_v54 = vmul.f32 %v578_v45, %v565_v25 }
 0x261   :  { %621 = vrot.lane.b32.xlu1 %v611_v39, %s6315_s15 }
 0x262   :  { %v580_v53 = vpop.permute.xlu0 %579 }
 0x263   :  { %v590_v58 = vmul.f32 %v580_v53, %v566_v30 }
 0x265   :  { %623 = vrot.lane.b32.xlu1 %v612_v44, %s6315_s15 }
 0x266   :  { %v582_v57 = vpop.permute.xlu0 %581 }
 0x267   :  { %v591_v61 = vmul.f32 %v582_v57, %v567_v37 }
 0x26a   :  { %v584_v62 = vpop.permute.xlu0 %583 }
 0x26b   :  { %v592_v1 = vmul.f32 %v584_v62, %v568_v42 }
 0x2cb   :  { %v618_v55 = vpop.permute.xlu1 %617 }
 0x2cc   :  { %v6573_v56 = vadd.f32 %v618_v55, %v589_v54 }
 0x2ce   :  { %6056 = vtanh.f32 %v6573_v56 }
 0x2cf   :  { %v620_v59 = vpop.permute.xlu1 %619 }
 0x2d0   :  { %v6576_v60 = vadd.f32 %v620_v59, %v590_v58  ;;  %v4750_v58 = vld [vmem:[%s7448_s2 + $0x28] sm:$0xff]  ;;  %v4749_v59 = vld [vmem:[%s7448_s2 + $0x20] sm:$0xff] }
 0x2d2   :  { %6058 = vtanh.f32 %v6576_v60 }
 0x2d3   :  { %v622_v63 = vpop.permute.xlu1 %621 }
 0x2d4   :  { %v6579_v0 = vadd.f32 %v622_v63, %v591_v61 }
 0x2d6   :  { %6060 = vtanh.f32 %v6579_v0 }
 0x2d7   :  { %v624_v2 = vpop.permute.xlu1 %623 }
 0x2d8   :  { %v6057_v4 = vpop.eup %6056  ;;  %v6582_v5 = vadd.f32 %v624_v2, %v592_v1  ;;  %v4752_v2 = vld [vmem:[%s7448_s2 + $0x38] sm:$0xff] }
 0x2d9   :  { %641 = vrot.lane.b32.xlu0 %v6057_v4, %s6315_s15  ;;  %v4751_v4 = vld [vmem:[%s7448_s2 + $0x30] sm:$0xff] }
 0x2da   :  { %6062 = vtanh.f32 %v6582_v5 }
 0x2dc   :  { %v6059_v6 = vpop.eup %6058 }
 0x2dd   :  { %643 = vrot.lane.b32.xlu1 %v6059_v6, %s6315_s15 }
 0x2e0   :  { %v6061_v10 = vpop.eup %6060 }
 0x2e1   :  { %645 = vrot.lane.b32.xlu0 %v6061_v10, %s6315_s15 }
 0x2e4   :  { %v6063_v11 = vpop.eup %6062 }
 0x2e5   :  { %647 = vrot.lane.b32.xlu1 %v6063_v11, %s6315_s15 }
 0x34b   :  { %v642_v12 = vpop.permute.xlu0 %641 }
 0x34c   :  { %v653_v13 = vmul.f32 %v642_v12, %v565_v25 }
 0x34e   :  { %661 = vrot.lane.b32.xlu0 %v653_v13, %s6316_s4 }
 0x34f   :  { %v644_v16 = vpop.permute.xlu1 %643 }
 0x350   :  { %v654_v17 = vmul.f32 %v644_v16, %v566_v30 }
 0x352   :  { %663 = vrot.lane.b32.xlu1 %v654_v17, %s6316_s4 }
 0x353   :  { %v646_v18 = vpop.permute.xlu0 %645 }
 0x354   :  { %v655_v20 = vmul.f32 %v646_v18, %v567_v37 }
 0x356   :  { %665 = vrot.lane.b32.xlu0 %v655_v20, %s6316_s4 }
 0x357   :  { %v648_v21 = vpop.permute.xlu1 %647 }
 0x358   :  { %v656_v22 = vmul.f32 %v648_v21, %v568_v42 }
 0x35a   :  { %667 = vrot.lane.b32.xlu1 %v656_v22, %s6316_s4 }
 0x3c0   :  { %v662_v24 = vpop.permute.xlu0 %661 }
 0x3c1   :  { %673 = vst.msk [vmem:[#allocation2] sm:$0xff] %vm59_vm0, %v662_v24  ;;  %4741 = vmatmul.mubr.msk.f32.vlgmr.msra.gmra.mrb[12].mxu0 %vm59_vm0, %v662_v24 }
 0x3c2   :  { %755 = vmatprep.mubr.f32.mxu0 %v6314_v7  ;;  %5664 = vmatpush3.bf16.msra.mxu0 %v6407_v15 }
 0x3c3   :  { %5666 = vmatprep.subr.bf16.mxu0 %v6420_v19 }
 0x3c4   :  { %v664_v25 = vpop.permute.xlu1 %663 }
 0x3c5   :  { %674 = vst.msk [vmem:[#allocation2 + $0x10] sm:$0xff] %vm59_vm0, %v664_v25  ;;  %4742 = vmatmul.mubr.msk.f32.gmra.mrb[14].mxu0 %vm59_vm0, %v664_v25 }
 0x3c6   :  { %761 = vmatprep.mubr.f32.mxu0 %v6314_v7  ;;  %5668 = vmatpush3.bf16.msra.mxu0 %v6420_v19 }
 0x3c7   :  { %5694 = vmatprep.subr.bf16.mxu0 %v6374_v3 }
 0x3c8   :  { %v666_v26 = vpop.permute.xlu0 %665 }
 0x3c9   :  { %675 = vst.msk [vmem:[#allocation2 + $0x20] sm:$0xff] %vm59_vm0, %v666_v26  ;;  %4743 = vmatmul.mubr.msk.f32.gmra.mrb[16].mxu0 %vm59_vm0, %v666_v26 }
 0x3ca   :  { %767 = vmatprep.mubr.f32.mxu0 %v6314_v7 }
 0x3cc   :  { %v668_v27 = vpop.permute.xlu1 %667 }
 0x3cd   :  { %676 = vst.msk [vmem:[#allocation2 + $0x30] sm:$0xff] %vm59_vm0, %v668_v27  ;;  %4744 = vmatmul.mubr.msk.f32.gmra.mrb[18].mxu0 %vm59_vm0, %v668_v27 }
 0x3ce   :  { %5229 = vmatprep.mubr.msk.f32.mxu0 %vm59_vm0, %v662_v24 }
 0x3d1   :  { %5230 = vmatmul.mubr.msk.f32.vlgmr.msra.gmra.mrb[20].mxu0 %vm59_vm0, %v664_v25 }
 0x3d2   :  { %5232 = vmatprep.mubr.msk.f32.mxu0 %vm59_vm0, %v666_v26  ;;  %5696 = vmatpush1.bf16.msra.mxu0 %v6386_v8 }
 0x3d3   :  { %5698 = vmatprep.subr.bf16.mxu0 %v6388_v9 }
 0x3d5   :  { %5233 = vmatmul.mubr.msk.f32.gmra.mrb[22].mxu0 %vm59_vm0, %v668_v27 }
 0x3d6   :  { %5700 = vmatpush1.bf16.msra.mxu0 %v6404_v14  ;;  %1320 = vmatprep.mubr.f32.mxu0 %v6314_v7 }
 0x3d7   :  { %5702 = vmatprep.subr.bf16.mxu0 %v6407_v15 }
 0x494   :  { %v751_v28 = vpop.f32.mrb[12].mxu0 }
 0x495   :  { %v753_v29 = vpop.f32.mrb[13].mxu0 }
 0x498   :  { %v757_v30 = vpop.f32.mrb[14].mxu0 }
 0x499   :  { %v5669_v31 = vpack.c.bf16 %v757_v30, %v751_v28  ;;  %v759_v32 = vpop.f32.mrb[15].mxu0 }
 0x49a   :  { %v5677_v33 = vpack.c.bf16 %v759_v32, %v753_v29 }
 0x49b   :  { %5670 = vmatprep.subr.bf16.mxu1 %v5669_v31 }
 0x49c   :  { %v763_v34 = vpop.f32.mrb[16].mxu0  ;;  %5672 = vmatpush3.bf16.msra.mxu1 %v5669_v31 }
 0x49d   :  { %v765_v35 = vpop.f32.mrb[17].mxu0 }
 0x4a0   :  { %v769_v37 = vpop.f32.mrb[18].mxu0 }
 0x4a1   :  { %v5673_v39 = vpack.c.bf16 %v769_v37, %v763_v34  ;;  %v771_v40 = vpop.f32.mrb[19].mxu0 }
 0x4a2   :  { %v5681_v42 = vpack.c.bf16 %v771_v40, %v765_v35 }
 0x4a3   :  { %5674 = vmatprep.subr.bf16.mxu1 %v5673_v39 }
 0x4a4   :  { %v5231_v44 = vpop.f32.mrb[20].mxu0  ;;  %5676 = vmatpush3.bf16.msra.mxu1 %v5673_v39 }
 0x4a5   :  { %v840_v45 = vpop.f32.mrb[21].mxu0  ;;  %5678 = vmatprep.subr.bf16.mxu1 %v5677_v33 }
 0x4a6   :  { %v5685_v53 = vpack.c.bf16 %v5231_v44, %v840_v45 }
 0x4a7   :  { %5244 = vmatmul.mubr.msk.f32.vlgmr.msra.gmra.mrb[4].mxu1 %vm59_vm0, %v6461_v36 }
 0x4a8   :  { %v5234_v54 = vpop.f32.mrb[22].mxu0  ;;  %5680 = vmatpush3.bf16.msra.mxu1 %v5677_v33  ;;  %5246 = vmatprep.mubr.msk.f32.mxu1 %vm59_vm0, %v6466_v38 }
 0x4a9   :  { %v850_v55 = vpop.f32.mrb[23].mxu0  ;;  %5682 = vmatprep.subr.bf16.mxu1 %v5681_v42 }
 0x4aa   :  { %v5689_v57 = vpack.c.bf16 %v5234_v54, %v850_v55 }
 0x4ab   :  { %5247 = vmatmul.mubr.msk.f32.gmra.mrb[6].mxu1 %vm59_vm0, %v6475_v41 }
 0x4ac   :  { %5684 = vmatpush3.bf16.msra.mxu1 %v5681_v42  ;;  %5257 = vmatprep.mubr.msk.f32.mxu1 %vm59_vm0, %v6480_v43 }
 0x4ad   :  { %5686 = vmatprep.subr.bf16.mxu1 %v5685_v53 }
 0x4af   :  { %5258 = vmatmul.mubr.msk.f32.vlgmr.msra.gmra.mrb[4].mxu1 %vm59_vm0, %v6489_v46 }
 0x4b0   :  { %5688 = vmatpush3.bf16.msra.mxu1 %v5685_v53  ;;  %5260 = vmatprep.mubr.msk.f32.mxu1 %vm59_vm0, %v6494_v47 }
 0x4b1   :  { %5690 = vmatprep.subr.bf16.mxu1 %v5689_v57 }
 0x4b3   :  { %5261 = vmatmul.mubr.msk.f32.gmra.mrb[6].mxu1 %vm59_vm0, %v6503_v48 }
 0x4b4   :  { %5692 = vmatpush3.bf16.msra.mxu1 %v5689_v57  ;;  %5271 = vmatprep.mubr.msk.f32.mxu1 %vm59_vm0, %v6508_v49 }
 0x4b7   :  { %5272 = vmatmul.mubr.msk.f32.vlgmr.msra.gmra.mrb[4].mxu1 %vm59_vm0, %v6517_v50 }
 0x4b8   :  { %5274 = vmatprep.mubr.msk.f32.mxu1 %vm59_vm0, %v6522_v51 }
 0x4bb   :  { %5275 = vmatmul.mubr.msk.f32.gmra.mrb[6].mxu1 %vm59_vm0, %v6531_v52 }
 0x4bc   :  { %5299 = vmatprep.mubr.msk.f32.mxu1 %vm59_vm0, %v6454_v23 }
 0x58a   :  { %v5273_v61 = vpop.f32.mrb[4].mxu1 }
 0x58b   :  { %v5937_v62 = vadd.f32 %v5273_v61, %v4750_v58  ;;  %v1108_v63 = vpop.f32.mrb[5].mxu1 }
 0x58c   :  { %v5938_v1 = vadd.f32 %v4749_v59, %v1108_v63 }
 0x58d   :  { %6064 = vtanh.f32 %v5937_v62  ;;  %v1132_v20 = vmul.f32 0.5, %v5937_v62 }
 0x58e   :  { %6066 = vtanh.f32 %v5938_v1  ;;  %v5276_v6 = vpop.f32.mrb[6].mxu1  ;;  %v1131_v21 = vmul.f32 0.5, %v5938_v1 }
 0x58f   :  { %v5939_v10 = vadd.f32 %v5276_v6, %v4752_v2  ;;  %v1118_v11 = vpop.f32.mrb[7].mxu1 }
 0x590   :  { %v5940_v12 = vadd.f32 %v4751_v4, %v1118_v11 }
 0x591   :  { %6068 = vtanh.f32 %v5939_v10  ;;  %v1134_v22 = vmul.f32 0.5, %v5939_v10 }
 0x592   :  { %6070 = vtanh.f32 %v5940_v12  ;;  %v1133_v24 = vmul.f32 0.5, %v5940_v12 }
 0x593   :  { %6072 = vtanh.f32 %v1132_v20 }
 0x594   :  { %6074 = vtanh.f32 %v1131_v21 }
 0x595   :  { %6076 = vtanh.f32 %v1134_v22 }
 0x596   :  { %6078 = vtanh.f32 %v1133_v24 }
 0x597   :  { %v6065_v13 = vpop.eup %6064 }
 0x598   :  { %v6067_v16 = vpop.eup %6066  ;;  %1161 = vrot.lane.b32.xlu1 %v6065_v13, %s6315_s15 }
 0x599   :  { %1159 = vrot.lane.b32.xlu0 %v6067_v16, %s6315_s15 }
 0x59b   :  { %v6069_v17 = vpop.eup %6068 }
 0x59c   :  { %v6071_v18 = vpop.eup %6070  ;;  %1165 = vrot.lane.b32.xlu1 %v6069_v17, %s6315_s15 }
 0x59d   :  { %1163 = vrot.lane.b32.xlu0 %v6071_v18, %s6315_s15  ;;  %v6073_v25 = vpop.eup %6072 }
 0x59e   :  { %v6075_v26 = vpop.eup %6074  ;;  %v1140_v27 = vadd.f32 1.0, %v6073_v25 }
 0x59f   :  { %v6077_v28 = vpop.eup %6076  ;;  %v1139_v29 = vadd.f32 1.0, %v6075_v26 }
 0x5a0   :  { %v6079_v30 = vpop.eup %6078  ;;  %v1142_v31 = vadd.f32 1.0, %v6077_v28  ;;  %v1144_v32 = vmul.f32 0.5, %v1140_v27 }
 0x5a1   :  { %v1141_v33 = vadd.f32 1.0, %v6079_v30  ;;  %v1143_v35 = vmul.f32 0.5, %v1139_v29 }
 0x5a2   :  { %v1146_v42 = vmul.f32 0.5, %v1142_v31  ;;  %v1152_v57 = vmul.f32 %v1144_v32, %v6576_v60 }
 0x5a3   :  { %v1145_v45 = vmul.f32 0.5, %v1141_v33  ;;  %v1151_v59 = vmul.f32 %v1143_v35, %v6573_v56 }
 0x5a4   :  { %v1154_v1 = vmul.f32 %v1146_v42, %v6582_v5 }
 0x5a5   :  { %v1153_v4 = vmul.f32 %v1145_v45, %v6579_v0 }
 0x60a   :  { %v1162_v34 = vpop.permute.xlu1 %1161 }
 0x60b   :  { %v1172_v37 = vmul.f32 %v1162_v34, %v1144_v32  ;;  %v1160_v39 = vpop.permute.xlu0 %1159 }
 0x60c   :  { %v1171_v40 = vmul.f32 %v1160_v39, %v1143_v35 }
 0x60d   :  { %1181 = vrot.lane.b32.xlu1 %v1172_v37, %s6315_s15 }
 0x60e   :  { %v1166_v44 = vpop.permute.xlu1 %1165  ;;  %1179 = vrot.lane.b32.xlu0 %v1171_v40, %s6315_s15 }
 0x60f   :  { %v1174_v53 = vmul.f32 %v1166_v44, %v1146_v42  ;;  %v1164_v54 = vpop.permute.xlu0 %1163 }
 0x610   :  { %v1173_v55 = vmul.f32 %v1164_v54, %v1145_v45 }
 0x611   :  { %1185 = vrot.lane.b32.xlu1 %v1174_v53, %s6315_s15 }
 0x612   :  { %1183 = vrot.lane.b32.xlu0 %v1173_v55, %s6315_s15 }
 0x67f   :  { %v1182_v58 = vpop.permute.xlu1 %1181 }
 0x680   :  { %v6663_v61 = vadd.f32 %v1182_v58, %v1152_v57  ;;  %v1180_v62 = vpop.permute.xlu0 %1179  ;;  %v4774_v58 = vld [vmem:[%s7448_s2 + $0x48] sm:$0xff] }
 0x681   :  { %v6665_v63 = vadd.f32 %v1180_v62, %v1151_v59  ;;  %v4773_v59 = vld [vmem:[%s7448_s2 + $0x40] sm:$0xff] }
 0x682   :  { %6080 = vtanh.f32 %v6663_v61 }
 0x683   :  { %6082 = vtanh.f32 %v6665_v63  ;;  %v1186_v2 = vpop.permute.xlu1 %1185 }
 0x684   :  { %v6671_v6 = vadd.f32 %v1186_v2, %v1154_v1  ;;  %v1184_v60 = vpop.permute.xlu0 %1183 }
 0x685   :  { %v6673_v10 = vadd.f32 %v1184_v60, %v1153_v4  ;;  %v4776_v60 = vld [vmem:[%s7448_s2 + $0x58] sm:$0xff] }
 0x686   :  { %6084 = vtanh.f32 %v6671_v6 }
 0x687   :  { %6086 = vtanh.f32 %v6673_v10 }
 0x68c   :  { %v6081_v56 = vpop.eup %6080 }
 0x68d   :  { %v6083_v11 = vpop.eup %6082  ;;  %1205 = vrot.lane.b32.xlu1 %v6081_v56, %s6315_s15 }
 0x68e   :  { %1203 = vrot.lane.b32.xlu0 %v6083_v11, %s6315_s15 }
 0x690   :  { %v6085_v5 = vpop.eup %6084 }
 0x691   :  { %v6087_v12 = vpop.eup %6086  ;;  %1209 = vrot.lane.b32.xlu1 %v6085_v5, %s6315_s15 }
 0x692   :  { %1207 = vrot.lane.b32.xlu0 %v6087_v12, %s6315_s15 }
 0x6ff   :  { %v1206_v0 = vpop.permute.xlu1 %1205 }
 0x700   :  { %v6681_v13 = vmul.f32 %v1206_v0, %v1144_v32  ;;  %v1204_v16 = vpop.permute.xlu0 %1203 }
 0x701   :  { %v6683_v17 = vmul.f32 %v1204_v16, %v1143_v35 }
 0x702   :  { %1242 = vrot.lane.b32.xlu1 %v6681_v13, %s6316_s4 }
 0x703   :  { %v1210_v18 = vpop.permute.xlu1 %1209  ;;  %1240 = vrot.lane.b32.xlu0 %v6683_v17, %s6316_s4 }
 0x704   :  { %v6689_v20 = vmul.f32 %v1210_v18, %v1146_v42  ;;  %v1208_v21 = vpop.permute.xlu0 %1207 }
 0x705   :  { %v6691_v22 = vmul.f32 %v1208_v21, %v1145_v45 }
 0x706   :  { %1246 = vrot.lane.b32.xlu1 %v6689_v20, %s6316_s4 }
 0x707   :  { %1244 = vrot.lane.b32.xlu0 %v6691_v22, %s6316_s4 }
 0x774   :  { %v1243_v25 = vpop.permute.xlu1 %1242 }
 0x775   :  { %v1241_v24 = vpop.permute.xlu0 %1240 }
 0x776   :  { %4765 = vmatmul.mubr.msk.f32.vlgmr.msra.gmra.mrb[24].mxu0 %vm59_vm0, %v1241_v24 }
 0x777   :  { %1326 = vmatprep.mubr.f32.mxu0 %v6314_v7  ;;  %5704 = vmatpush3.bf16.msra.mxu0 %v6407_v15 }
 0x778   :  { %5706 = vmatprep.subr.bf16.mxu0 %v6420_v19  ;;  %v1247_v27 = vpop.permute.xlu1 %1246 }
 0x779   :  { %v1245_v26 = vpop.permute.xlu0 %1244 }
 0x77a   :  { %4766 = vmatmul.mubr.msk.f32.gmra.mrb[26].mxu0 %vm59_vm0, %v1243_v25 }
 0x77b   :  { %1332 = vmatprep.mubr.f32.mxu0 %v6314_v7  ;;  %5708 = vmatpush3.bf16.msra.mxu0 %v6420_v19 }
 0x77c   :  { %5734 = vmatprep.subr.bf16.mxu0 %v6374_v3 }
 0x77e   :  { %4767 = vmatmul.mubr.msk.f32.gmra.mrb[28].mxu0 %vm59_vm0, %v1245_v26 }
 0x77f   :  { %1338 = vmatprep.mubr.f32.mxu0 %v6314_v7 }
 0x782   :  { %4768 = vmatmul.mubr.msk.f32.gmra.mrb[30].mxu0 %vm59_vm0, %v1247_v27 }
 0x783   :  { %5285 = vmatprep.mubr.msk.f32.mxu0 %vm59_vm0, %v1241_v24 }
 0x786   :  { %5286 = vmatmul.mubr.msk.f32.vlgmr.msra.gmra.mrb[32].mxu0 %vm59_vm0, %v1243_v25 }
 0x787   :  { %5288 = vmatprep.mubr.msk.f32.mxu0 %vm59_vm0, %v1245_v26  ;;  %5736 = vmatpush1.bf16.msra.mxu0 %v6386_v8 }
 0x788   :  { %5738 = vmatprep.subr.bf16.mxu0 %v6388_v9 }
 0x78a   :  { %5289 = vmatmul.mubr.msk.f32.gmra.mrb[34].mxu0 %vm59_vm0, %v1247_v27 }
 0x78b   :  { %5740 = vmatpush1.bf16.msra.mxu0 %v6404_v14  ;;  %1879 = vmatprep.mubr.f32.mxu0 %v6314_v7 }
 0x78c   :  { %5742 = vmatprep.subr.bf16.mxu0 %v6407_v15 }
 0x849   :  { %v1322_v28 = vpop.f32.mrb[24].mxu0 }
 0x84a   :  { %v1324_v29 = vpop.f32.mrb[25].mxu0 }
 0x84d   :  { %v1328_v30 = vpop.f32.mrb[26].mxu0 }
 0x84e   :  { %v5709_v31 = vpack.c.bf16 %v1328_v30, %v1322_v28  ;;  %v1330_v32 = vpop.f32.mrb[27].mxu0 }
 0x84f   :  { %v5717_v33 = vpack.c.bf16 %v1330_v32, %v1324_v29 }
 0x850   :  { %5710 = vmatprep.subr.bf16.mxu1 %v5709_v31 }
 0x851   :  { %v1334_v34 = vpop.f32.mrb[28].mxu0  ;;  %5712 = vmatpush3.bf16.msra.mxu1 %v5709_v31 }
 0x852   :  { %v1336_v35 = vpop.f32.mrb[29].mxu0 }
 0x855   :  { %v1340_v37 = vpop.f32.mrb[30].mxu0 }
 0x856   :  { %v5713_v39 = vpack.c.bf16 %v1340_v37, %v1334_v34  ;;  %v1342_v40 = vpop.f32.mrb[31].mxu0 }
 0x857   :  { %v5721_v42 = vpack.c.bf16 %v1342_v40, %v1336_v35 }
 0x858   :  { %5714 = vmatprep.subr.bf16.mxu1 %v5713_v39 }
 0x859   :  { %v5287_v44 = vpop.f32.mrb[32].mxu0  ;;  %5716 = vmatpush3.bf16.msra.mxu1 %v5713_v39 }
 0x85a   :  { %v1411_v45 = vpop.f32.mrb[33].mxu0  ;;  %5718 = vmatprep.subr.bf16.mxu1 %v5717_v33 }
 0x85b   :  { %v5725_v53 = vpack.c.bf16 %v5287_v44, %v1411_v45 }
 0x85c   :  { %5300 = vmatmul.mubr.msk.f32.vlgmr.msra.gmra.mrb[8].mxu1 %vm59_vm0, %v6461_v36 }
 0x85d   :  { %v5290_v54 = vpop.f32.mrb[34].mxu0  ;;  %5720 = vmatpush3.bf16.msra.mxu1 %v5717_v33  ;;  %5302 = vmatprep.mubr.msk.f32.mxu1 %vm59_vm0, %v6466_v38 }
 0x85e   :  { %v1421_v55 = vpop.f32.mrb[35].mxu0  ;;  %5722 = vmatprep.subr.bf16.mxu1 %v5721_v42 }
 0x85f   :  { %v5729_v57 = vpack.c.bf16 %v5290_v54, %v1421_v55 }
 0x860   :  { %5303 = vmatmul.mubr.msk.f32.gmra.mrb[10].mxu1 %vm59_vm0, %v6475_v41 }
 0x861   :  { %5724 = vmatpush3.bf16.msra.mxu1 %v5721_v42  ;;  %5313 = vmatprep.mubr.msk.f32.mxu1 %vm59_vm0, %v6480_v43 }
 0x862   :  { %5726 = vmatprep.subr.bf16.mxu1 %v5725_v53 }
 0x864   :  { %5314 = vmatmul.mubr.msk.f32.vlgmr.msra.gmra.mrb[8].mxu1 %vm59_vm0, %v6489_v46 }
 0x865   :  { %5728 = vmatpush3.bf16.msra.mxu1 %v5725_v53  ;;  %5316 = vmatprep.mubr.msk.f32.mxu1 %vm59_vm0, %v6494_v47 }
 0x866   :  { %5730 = vmatprep.subr.bf16.mxu1 %v5729_v57 }
 0x868   :  { %5317 = vmatmul.mubr.msk.f32.gmra.mrb[10].mxu1 %vm59_vm0, %v6503_v48 }
 0x869   :  { %5732 = vmatpush3.bf16.msra.mxu1 %v5729_v57  ;;  %5327 = vmatprep.mubr.msk.f32.mxu1 %vm59_vm0, %v6508_v49 }
 0x86c   :  { %5328 = vmatmul.mubr.msk.f32.vlgmr.msra.gmra.mrb[8].mxu1 %vm59_vm0, %v6517_v50 }
 0x86d   :  { %5330 = vmatprep.mubr.msk.f32.mxu1 %vm59_vm0, %v6522_v51 }
 0x870   :  { %5331 = vmatmul.mubr.msk.f32.gmra.mrb[10].mxu1 %vm59_vm0, %v6531_v52 }
 0x871   :  { %5355 = vmatprep.mubr.msk.f32.mxu1 %vm59_vm0, %v6454_v23  ;;  %v4775_v23 = vld [vmem:[%s7448_s2 + $0x50] sm:$0xff] }
 0x93f   :  { %v5329_v62 = vpop.f32.mrb[8].mxu1 }
 0x940   :  { %v5941_v1 = vadd.f32 %v5329_v62, %v4774_v58  ;;  %v1679_v2 = vpop.f32.mrb[9].mxu1 }
 0x941   :  { %v5942_v4 = vadd.f32 %v4773_v59, %v1679_v2 }
 0x942   :  { %6088 = vtanh.f32 %v5941_v1  ;;  %v1703_v24 = vmul.f32 0.5, %v5941_v1 }
 0x943   :  { %6090 = vtanh.f32 %v5942_v4  ;;  %v5332_v56 = vpop.f32.mrb[10].mxu1  ;;  %v1702_v25 = vmul.f32 0.5, %v5942_v4 }
 0x944   :  { %v5943_v11 = vadd.f32 %v5332_v56, %v4776_v60  ;;  %v1689_v5 = vpop.f32.mrb[11].mxu1 }
 0x945   :  { %v5944_v12 = vadd.f32 %v4775_v23, %v1689_v5 }
 0x946   :  { %6092 = vtanh.f32 %v5943_v11  ;;  %v1705_v26 = vmul.f32 0.5, %v5943_v11 }
 0x947   :  { %6094 = vtanh.f32 %v5944_v12  ;;  %v1704_v27 = vmul.f32 0.5, %v5944_v12 }
 0x948   :  { %6096 = vtanh.f32 %v1703_v24 }
 0x949   :  { %6098 = vtanh.f32 %v1702_v25 }
 0x94a   :  { %6100 = vtanh.f32 %v1705_v26 }
 0x94b   :  { %6102 = vtanh.f32 %v1704_v27 }
 0x94c   :  { %v6089_v0 = vpop.eup %6088 }
 0x94d   :  { %v6091_v16 = vpop.eup %6090  ;;  %1732 = vrot.lane.b32.xlu1 %v6089_v0, %s6315_s15 }
 0x94e   :  { %1730 = vrot.lane.b32.xlu0 %v6091_v16, %s6315_s15 }
 0x950   :  { %v6093_v18 = vpop.eup %6092 }
 0x951   :  { %v6095_v21 = vpop.eup %6094  ;;  %1736 = vrot.lane.b32.xlu1 %v6093_v18, %s6315_s15 }
 0x952   :  { %1734 = vrot.lane.b32.xlu0 %v6095_v21, %s6315_s15  ;;  %v6097_v28 = vpop.eup %6096 }
 0x953   :  { %v6099_v29 = vpop.eup %6098  ;;  %v1711_v30 = vadd.f32 1.0, %v6097_v28 }
 0x954   :  { %v6101_v31 = vpop.eup %6100  ;;  %v1710_v32 = vadd.f32 1.0, %v6099_v29 }
 0x955   :  { %v6103_v33 = vpop.eup %6102  ;;  %v1713_v34 = vadd.f32 1.0, %v6101_v31  ;;  %v1715_v35 = vmul.f32 0.5, %v1711_v30 }
 0x956   :  { %v1712_v37 = vadd.f32 1.0, %v6103_v33  ;;  %v1714_v40 = vmul.f32 0.5, %v1710_v32 }
 0x957   :  { %v1717_v53 = vmul.f32 0.5, %v1713_v34  ;;  %v1723_v62 = vmul.f32 %v1715_v35, %v6663_v61 }
 0x958   :  { %v1716_v55 = vmul.f32 0.5, %v1712_v37  ;;  %v1722_v2 = vmul.f32 %v1714_v40, %v6665_v63 }
 0x959   :  { %v1725_v56 = vmul.f32 %v1717_v53, %v6671_v6 }
 0x95a   :  { %v1724_v5 = vmul.f32 %v1716_v55, %v6673_v10 }
 0x9bf   :  { %v1733_v39 = vpop.permute.xlu1 %1732 }
 0x9c0   :  { %v1743_v42 = vmul.f32 %v1733_v39, %v1715_v35  ;;  %v1731_v44 = vpop.permute.xlu0 %1730 }
 0x9c1   :  { %v1742_v45 = vmul.f32 %v1731_v44, %v1714_v40 }
 0x9c2   :  { %1752 = vrot.lane.b32.xlu1 %v1743_v42, %s6315_s15 }
 0x9c3   :  { %v1737_v54 = vpop.permute.xlu1 %1736  ;;  %1750 = vrot.lane.b32.xlu0 %v1742_v45, %s6315_s15 }
 0x9c4   :  { %v1745_v57 = vmul.f32 %v1737_v54, %v1717_v53  ;;  %v1735_v58 = vpop.permute.xlu0 %1734 }
 0x9c5   :  { %v1744_v59 = vmul.f32 %v1735_v58, %v1716_v55 }
 0x9c6   :  { %1756 = vrot.lane.b32.xlu1 %v1745_v57, %s6315_s15 }
 0x9c7   :  { %1754 = vrot.lane.b32.xlu0 %v1744_v59, %s6315_s15 }
 0xa34   :  { %v1753_v1 = vpop.permute.xlu1 %1752 }
 0xa35   :  { %v6763_v4 = vadd.f32 %v1753_v1, %v1723_v62  ;;  %v1751_v60 = vpop.permute.xlu0 %1750 }
 0xa36   :  { %v6765_v23 = vadd.f32 %v1751_v60, %v1722_v2 }
 0xa37   :  { %6104 = vtanh.f32 %v6763_v4 }
 0xa38   :  { %6106 = vtanh.f32 %v6765_v23  ;;  %v1757_v11 = vpop.permute.xlu1 %1756 }
 0xa39   :  { %v6771_v12 = vadd.f32 %v1757_v11, %v1725_v56  ;;  %v1755_v61 = vpop.permute.xlu0 %1754 }
 0xa3a   :  { %v6773_v0 = vadd.f32 %v1755_v61, %v1724_v5 }
 0xa3b   :  { %6108 = vtanh.f32 %v6771_v12 }
 0xa3c   :  { %6110 = vtanh.f32 %v6773_v0 }
 0xa41   :  { %v6105_v63 = vpop.eup %6104 }
 0xa42   :  { %v6107_v16 = vpop.eup %6106  ;;  %1776 = vrot.lane.b32.xlu1 %v6105_v63, %s6315_s15 }
 0xa43   :  { %1774 = vrot.lane.b32.xlu0 %v6107_v16, %s6315_s15 }
 0xa45   :  { %v6109_v6 = vpop.eup %6108 }
 0xa46   :  { %v6111_v18 = vpop.eup %6110  ;;  %1780 = vrot.lane.b32.xlu1 %v6109_v6, %s6315_s15 }
 0xa47   :  { %1778 = vrot.lane.b32.xlu0 %v6111_v18, %s6315_s15 }
 0xab4   :  { %v1777_v10 = vpop.permute.xlu1 %1776 }
 0xab5   :  { %v6781_v21 = vmul.f32 %v1777_v10, %v1715_v35  ;;  %v1775_v24 = vpop.permute.xlu0 %1774 }
 0xab6   :  { %v6783_v25 = vmul.f32 %v1775_v24, %v1714_v40 }
 0xab7   :  { %1801 = vrot.lane.b32.xlu1 %v6781_v21, %s6316_s4 }
 0xab8   :  { %v1781_v26 = vpop.permute.xlu1 %1780  ;;  %1799 = vrot.lane.b32.xlu0 %v6783_v25, %s6316_s4 }
 0xab9   :  { %v6789_v27 = vmul.f32 %v1781_v26, %v1717_v53  ;;  %v1779_v28 = vpop.permute.xlu0 %1778 }
 0xaba   :  { %v6791_v29 = vmul.f32 %v1779_v28, %v1716_v55 }
 0xabb   :  { %1805 = vrot.lane.b32.xlu1 %v6789_v27, %s6316_s4 }
 0xabc   :  { %1803 = vrot.lane.b32.xlu0 %v6791_v29, %s6316_s4 }
 0xb29   :  { %v1802_v31 = vpop.permute.xlu1 %1801 }
 0xb2a   :  { %v1800_v30 = vpop.permute.xlu0 %1799 }
 0xb2b   :  { %4789 = vmatmul.mubr.msk.f32.vlgmr.msra.gmra.mrb[36].mxu0 %vm59_vm0, %v1800_v30 }
 0xb2c   :  { %1885 = vmatprep.mubr.f32.mxu0 %v6314_v7  ;;  %5744 = vmatpush3.bf16.msra.mxu0 %v6407_v15 }
 0xb2d   :  { %5746 = vmatprep.subr.bf16.mxu0 %v6420_v19  ;;  %v1806_v33 = vpop.permute.xlu1 %1805 }
 0xb2e   :  { %v1804_v32 = vpop.permute.xlu0 %1803 }
 0xb2f   :  { %4790 = vmatmul.mubr.msk.f32.gmra.mrb[38].mxu0 %vm59_vm0, %v1802_v31 }
 0xb30   :  { %1891 = vmatprep.mubr.f32.mxu0 %v6314_v7  ;;  %5748 = vmatpush3.bf16.msra.mxu0 %v6420_v19 }
 0xb31   :  { %5774 = vmatprep.subr.bf16.mxu0 %v6374_v3 }
 0xb33   :  { %4791 = vmatmul.mubr.msk.f32.gmra.mrb[40].mxu0 %vm59_vm0, %v1804_v32 }
 0xb34   :  { %1897 = vmatprep.mubr.f32.mxu0 %v6314_v7 }
 0xb37   :  { %4792 = vmatmul.mubr.msk.f32.gmra.mrb[42].mxu0 %vm59_vm0, %v1806_v33 }
 0xb38   :  { %5341 = vmatprep.mubr.msk.f32.mxu0 %vm59_vm0, %v1800_v30 }
 0xb3b   :  { %5342 = vmatmul.mubr.msk.f32.vlgmr.msra.gmra.mrb[44].mxu0 %vm59_vm0, %v1802_v31 }
 0xb3c   :  { %5344 = vmatprep.mubr.msk.f32.mxu0 %vm59_vm0, %v1804_v32  ;;  %5776 = vmatpush1.bf16.msra.mxu0 %v6386_v8 }
 0xb3d   :  { %5778 = vmatprep.subr.bf16.mxu0 %v6388_v9 }
 0xb3f   :  { %5345 = vmatmul.mubr.msk.f32.gmra.mrb[46].mxu0 %vm59_vm0, %v1806_v33 }
 0xb40   :  { %5780 = vmatpush1.bf16.msra.mxu0 %v6404_v14  ;;  %2450 = vmatprep.mubr.f32.mxu0 %v6314_v7 }
 0xb41   :  { %5782 = vmatprep.subr.bf16.mxu0 %v6407_v15 }
 0xbfe   :  { %v1881_v34 = vpop.f32.mrb[36].mxu0 }
 0xbff   :  { %v1883_v35 = vpop.f32.mrb[37].mxu0 }
 0xc02   :  { %v1887_v37 = vpop.f32.mrb[38].mxu0 }
 0xc03   :  { %v5749_v39 = vpack.c.bf16 %v1887_v37, %v1881_v34  ;;  %v1889_v40 = vpop.f32.mrb[39].mxu0 }
 0xc04   :  { %v5757_v42 = vpack.c.bf16 %v1889_v40, %v1883_v35 }
 0xc05   :  { %5750 = vmatprep.subr.bf16.mxu1 %v5749_v39 }
 0xc06   :  { %v1893_v44 = vpop.f32.mrb[40].mxu0  ;;  %5752 = vmatpush3.bf16.msra.mxu1 %v5749_v39 }
 0xc07   :  { %v1895_v45 = vpop.f32.mrb[41].mxu0 }
 0xc0a   :  { %v1899_v53 = vpop.f32.mrb[42].mxu0 }
 0xc0b   :  { %v5753_v54 = vpack.c.bf16 %v1899_v53, %v1893_v44  ;;  %v1901_v55 = vpop.f32.mrb[43].mxu0 }
 0xc0c   :  { %v5761_v57 = vpack.c.bf16 %v1901_v55, %v1895_v45 }
 0xc0d   :  { %5754 = vmatprep.subr.bf16.mxu1 %v5753_v54 }
 0xc0e   :  { %v5343_v58 = vpop.f32.mrb[44].mxu0  ;;  %5756 = vmatpush3.bf16.msra.mxu1 %v5753_v54 }
 0xc0f   :  { %v1970_v59 = vpop.f32.mrb[45].mxu0  ;;  %5758 = vmatprep.subr.bf16.mxu1 %v5757_v42 }
 0xc10   :  { %v5765_v62 = vpack.c.bf16 %v5343_v58, %v1970_v59 }
 0xc11   :  { %5356 = vmatmul.mubr.msk.f32.vlgmr.msra.gmra.mrb[12].mxu1 %vm59_vm0, %v6461_v36  ;;  %v6842_v36 = vld [vmem:[%s7446_s0] sm:$0xff] }
 0xc12   :  { %v5346_v1 = vpop.f32.mrb[46].mxu0  ;;  %5760 = vmatpush3.bf16.msra.mxu1 %v5757_v42  ;;  %5358 = vmatprep.mubr.msk.f32.mxu1 %vm59_vm0, %v6466_v38  ;;  %v4798_v38 = vld [vmem:[%s7448_s2 + $0x68] sm:$0xff] }
 0xc13   :  { %v1980_v2 = vpop.f32.mrb[47].mxu0  ;;  %5762 = vmatprep.subr.bf16.mxu1 %v5761_v57 }
 0xc14   :  { %v5769_v60 = vpack.c.bf16 %v5346_v1, %v1980_v2 }
 0xc15   :  { %5359 = vmatmul.mubr.msk.f32.gmra.mrb[14].mxu1 %vm59_vm0, %v6475_v41  ;;  %v4797_v41 = vld [vmem:[%s7448_s2 + $0x60] sm:$0xff] }
 0xc16   :  { %5764 = vmatpush3.bf16.msra.mxu1 %v5761_v57  ;;  %5369 = vmatprep.mubr.msk.f32.mxu1 %vm59_vm0, %v6480_v43 }
 0xc17   :  { %5766 = vmatprep.subr.bf16.mxu1 %v5765_v62 }
 0xc19   :  { %5370 = vmatmul.mubr.msk.f32.vlgmr.msra.gmra.mrb[12].mxu1 %vm59_vm0, %v6489_v46 }
 0xc1a   :  { %5768 = vmatpush3.bf16.msra.mxu1 %v5765_v62  ;;  %5372 = vmatprep.mubr.msk.f32.mxu1 %vm59_vm0, %v6494_v47 }
 0xc1b   :  { %5770 = vmatprep.subr.bf16.mxu1 %v5769_v60 }
 0xc1d   :  { %5373 = vmatmul.mubr.msk.f32.gmra.mrb[14].mxu1 %vm59_vm0, %v6503_v48 }
 0xc1e   :  { %5772 = vmatpush3.bf16.msra.mxu1 %v5769_v60  ;;  %5383 = vmatprep.mubr.msk.f32.mxu1 %vm59_vm0, %v6508_v49  ;;  %v4800_v49 = vld [vmem:[%s7448_s2 + $0x78] sm:$0xff] }
 0xc21   :  { %5384 = vmatmul.mubr.msk.f32.vlgmr.msra.gmra.mrb[12].mxu1 %vm59_vm0, %v6517_v50  ;;  %v4799_v50 = vld [vmem:[%s7448_s2 + $0x70] sm:$0xff] }
 0xc22   :  { %5386 = vmatprep.mubr.msk.f32.mxu1 %vm59_vm0, %v6522_v51 }
 0xc25   :  { %5387 = vmatmul.mubr.msk.f32.gmra.mrb[14].mxu1 %vm59_vm0, %v6531_v52 }
 0xc26   :  { %5411 = vmatprep.mubr.msk.f32.mxu1 %vm59_vm0, %v6842_v36 }
 0xcf4   :  { %v5385_v43 = vpop.f32.mrb[12].mxu1 }
 0xcf5   :  { %v5945_v46 = vadd.f32 %v5385_v43, %v4798_v38  ;;  %v2238_v47 = vpop.f32.mrb[13].mxu1 }
 0xcf6   :  { %v5946_v48 = vadd.f32 %v4797_v41, %v2238_v47 }
 0xcf7   :  { %6112 = vtanh.f32 %v5945_v46  ;;  %v2262_v6 = vmul.f32 0.5, %v5945_v46 }
 0xcf8   :  { %6114 = vtanh.f32 %v5946_v48  ;;  %v5388_v51 = vpop.f32.mrb[14].mxu1  ;;  %v2261_v18 = vmul.f32 0.5, %v5946_v48 }
 0xcf9   :  { %v5947_v52 = vadd.f32 %v5388_v51, %v4800_v49  ;;  %v2248_v56 = vpop.f32.mrb[15].mxu1 }
 0xcfa   :  { %v5948_v11 = vadd.f32 %v4799_v50, %v2248_v56 }
 0xcfb   :  { %6116 = vtanh.f32 %v5947_v52  ;;  %v2264_v10 = vmul.f32 0.5, %v5947_v52 }
 0xcfc   :  { %6118 = vtanh.f32 %v5948_v11  ;;  %v2263_v24 = vmul.f32 0.5, %v5948_v11 }
 0xcfd   :  { %6120 = vtanh.f32 %v2262_v6 }
 0xcfe   :  { %6122 = vtanh.f32 %v2261_v18 }
 0xcff   :  { %6124 = vtanh.f32 %v2264_v10 }
 0xd00   :  { %6126 = vtanh.f32 %v2263_v24 }
 0xd01   :  { %v6113_v5 = vpop.eup %6112 }
 0xd02   :  { %v6115_v61 = vpop.eup %6114  ;;  %2291 = vrot.lane.b32.xlu1 %v6113_v5, %s6315_s15 }
 0xd03   :  { %2289 = vrot.lane.b32.xlu0 %v6115_v61, %s6315_s15 }
 0xd05   :  { %v6117_v63 = vpop.eup %6116 }
 0xd06   :  { %v6119_v16 = vpop.eup %6118  ;;  %2295 = vrot.lane.b32.xlu1 %v6117_v63, %s6315_s15 }
 0xd07   :  { %2293 = vrot.lane.b32.xlu0 %v6119_v16, %s6315_s15  ;;  %v6121_v26 = vpop.eup %6120 }
 0xd08   :  { %v6123_v28 = vpop.eup %6122  ;;  %v2270_v30 = vadd.f32 1.0, %v6121_v26 }
 0xd09   :  { %v6125_v31 = vpop.eup %6124  ;;  %v2269_v32 = vadd.f32 1.0, %v6123_v28 }
 0xd0a   :  { %v6127_v33 = vpop.eup %6126  ;;  %v2274_v34 = vmul.f32 0.5, %v2270_v30  ;;  %v2272_v35 = vadd.f32 1.0, %v6125_v31 }
 0xd0b   :  { %v2273_v39 = vmul.f32 0.5, %v2269_v32  ;;  %v2271_v40 = vadd.f32 1.0, %v6127_v33 }
 0xd0c   :  { %v2276_v53 = vmul.f32 0.5, %v2272_v35  ;;  %v2282_v62 = vmul.f32 %v2274_v34, %v6763_v4 }
 0xd0d   :  { %v2275_v55 = vmul.f32 0.5, %v2271_v40  ;;  %v2281_v2 = vmul.f32 %v2273_v39, %v6765_v23 }
 0xd0e   :  { %v2284_v43 = vmul.f32 %v2276_v53, %v6771_v12 }
 0xd0f   :  { %v2283_v47 = vmul.f32 %v2275_v55, %v6773_v0 }
 0xd74   :  { %v2292_v37 = vpop.permute.xlu1 %2291 }
 0xd75   :  { %v2302_v42 = vmul.f32 %v2292_v37, %v2274_v34  ;;  %v2290_v44 = vpop.permute.xlu0 %2289 }
 0xd76   :  { %v2301_v45 = vmul.f32 %v2290_v44, %v2273_v39 }
 0xd77   :  { %2311 = vrot.lane.b32.xlu1 %v2302_v42, %s6315_s15 }
 0xd78   :  { %v2296_v54 = vpop.permute.xlu1 %2295  ;;  %2309 = vrot.lane.b32.xlu0 %v2301_v45, %s6315_s15 }
 0xd79   :  { %v2304_v57 = vmul.f32 %v2296_v54, %v2276_v53  ;;  %v2294_v58 = vpop.permute.xlu0 %2293  ;;  %v6925_v54 = vld [vmem:[%s7446_s0 + $0x8] sm:$0xff] }
 0xd7a   :  { %v2303_v59 = vmul.f32 %v2294_v58, %v2275_v55 }
 0xd7b   :  { %2315 = vrot.lane.b32.xlu1 %v2304_v57, %s6315_s15  ;;  %v6932_v57 = vld [vmem:[%s7446_s0 + $0x10] sm:$0xff] }
 0xd7c   :  { %2313 = vrot.lane.b32.xlu0 %v2303_v59, %s6315_s15 }
 0xde9   :  { %v2312_v1 = vpop.permute.xlu1 %2311 }
 0xdea   :  { %v6868_v60 = vadd.f32 %v2312_v1, %v2282_v62  ;;  %v2310_v38 = vpop.permute.xlu0 %2309  ;;  %v6939_v62 = vld [vmem:[%s7446_s0 + $0x18] sm:$0xff]  ;;  %v6946_v1 = vld [vmem:[%s7446_s0 + $0x20] sm:$0xff] }
 0xdeb   :  { %v6870_v41 = vadd.f32 %v2310_v38, %v2281_v2  ;;  %v6953_v2 = vld [vmem:[%s7446_s0 + $0x28] sm:$0xff]  ;;  %v6960_v38 = vld [vmem:[%s7446_s0 + $0x30] sm:$0xff] }
 0xdec   :  { %6128 = vtanh.f32 %v6868_v60 }
 0xded   :  { %6130 = vtanh.f32 %v6870_v41  ;;  %v2316_v46 = vpop.permute.xlu1 %2315 }
 0xdee   :  { %v6876_v48 = vadd.f32 %v2316_v46, %v2284_v43  ;;  %v2314_v4 = vpop.permute.xlu0 %2313  ;;  %v6967_v43 = vld [vmem:[%s7446_s0 + $0x38] sm:$0xff]  ;;  %v6974_v46 = vld [vmem:[%s7446_s0 + $0x40] sm:$0xff] }
 0xdef   :  { %v6878_v49 = vadd.f32 %v2314_v4, %v2283_v47  ;;  %v6981_v47 = vld [vmem:[%s7446_s0 + $0x48] sm:$0xff]  ;;  %v6988_v4 = vld [vmem:[%s7446_s0 + $0x50] sm:$0xff] }
 0xdf0   :  { %6132 = vtanh.f32 %v6876_v48 }
 0xdf1   :  { %6134 = vtanh.f32 %v6878_v49 }
 0xdf6   :  { %v6129_v23 = vpop.eup %6128 }
 0xdf7   :  { %v6131_v50 = vpop.eup %6130  ;;  %2335 = vrot.lane.b32.xlu1 %v6129_v23, %s6315_s15  ;;  %v6995_v23 = vld [vmem:[%s7446_s0 + $0x58] sm:$0xff] }
 0xdf8   :  { %2333 = vrot.lane.b32.xlu0 %v6131_v50, %s6315_s15  ;;  %v4822_v50 = vld [vmem:[%s7448_s2 + $0x88] sm:$0xff] }
 0xdfa   :  { %v6133_v12 = vpop.eup %6132 }
 0xdfb   :  { %v6135_v51 = vpop.eup %6134  ;;  %2339 = vrot.lane.b32.xlu1 %v6133_v12, %s6315_s15  ;;  %v4821_v12 = vld [vmem:[%s7448_s2 + $0x80] sm:$0xff] }
 0xdfc   :  { %2337 = vrot.lane.b32.xlu0 %v6135_v51, %s6315_s15 }
 0xe69   :  { %v2336_v0 = vpop.permute.xlu1 %2335 }
 0xe6a   :  { %v6886_v52 = vmul.f32 %v2336_v0, %v2274_v34  ;;  %v2334_v56 = vpop.permute.xlu0 %2333 }
 0xe6b   :  { %v6888_v11 = vmul.f32 %v2334_v56, %v2273_v39 }
 0xe6c   :  { %2372 = vrot.lane.b32.xlu1 %v6886_v52, %s6316_s4 }
 0xe6d   :  { %v2340_v5 = vpop.permute.xlu1 %2339  ;;  %2370 = vrot.lane.b32.xlu0 %v6888_v11, %s6316_s4 }
 0xe6e   :  { %v6894_v61 = vmul.f32 %v2340_v5, %v2276_v53  ;;  %v2338_v63 = vpop.permute.xlu0 %2337 }
 0xe6f   :  { %v6896_v16 = vmul.f32 %v2338_v63, %v2275_v55  ;;  %v4824_v63 = vld [vmem:[%s7448_s2 + $0x98] sm:$0xff] }
 0xe70   :  { %2376 = vrot.lane.b32.xlu1 %v6894_v61, %s6316_s4 }
 0xe71   :  { %2374 = vrot.lane.b32.xlu0 %v6896_v16, %s6316_s4 }
 0xede   :  { %v2373_v18 = vpop.permute.xlu1 %2372 }
 0xedf   :  { %v2371_v6 = vpop.permute.xlu0 %2370 }
 0xee0   :  { %4813 = vmatmul.mubr.msk.f32.vlgmr.msra.gmra.mrb[48].mxu0 %vm59_vm0, %v2371_v6 }
 0xee1   :  { %2456 = vmatprep.mubr.f32.mxu0 %v6314_v7  ;;  %5784 = vmatpush3.bf16.msra.mxu0 %v6407_v15 }
 0xee2   :  { %5786 = vmatprep.subr.bf16.mxu0 %v6420_v19  ;;  %v2377_v24 = vpop.permute.xlu1 %2376 }
 0xee3   :  { %v2375_v10 = vpop.permute.xlu0 %2374 }
 0xee4   :  { %4814 = vmatmul.mubr.msk.f32.gmra.mrb[50].mxu0 %vm59_vm0, %v2373_v18 }
 0xee5   :  { %2462 = vmatprep.mubr.f32.mxu0 %v6314_v7  ;;  %5788 = vmatpush3.bf16.msra.mxu0 %v6420_v19 }
 0xee6   :  { %5814 = vmatprep.subr.bf16.mxu0 %v6374_v3 }
 0xee8   :  { %4815 = vmatmul.mubr.msk.f32.gmra.mrb[52].mxu0 %vm59_vm0, %v2375_v10 }
 0xee9   :  { %2468 = vmatprep.mubr.f32.mxu0 %v6314_v7 }
 0xeec   :  { %4816 = vmatmul.mubr.msk.f32.gmra.mrb[54].mxu0 %vm59_vm0, %v2377_v24 }
 0xeed   :  { %5397 = vmatprep.mubr.msk.f32.mxu0 %vm59_vm0, %v2371_v6  ;;  %v4823_v6 = vld [vmem:[%s7448_s2 + $0x90] sm:$0xff] }
 0xef0   :  { %5398 = vmatmul.mubr.msk.f32.vlgmr.msra.gmra.mrb[56].mxu0 %vm59_vm0, %v2373_v18 }
 0xef1   :  { %5400 = vmatprep.mubr.msk.f32.mxu0 %vm59_vm0, %v2375_v10  ;;  %5816 = vmatpush1.bf16.msra.mxu0 %v6386_v8 }
 0xef2   :  { %5818 = vmatprep.subr.bf16.mxu0 %v6388_v9 }
 0xef4   :  { %5401 = vmatmul.mubr.msk.f32.gmra.mrb[58].mxu0 %vm59_vm0, %v2377_v24 }
 0xef5   :  { %5820 = vmatpush1.bf16.msra.mxu0 %v6404_v14  ;;  %3012 = vmatprep.mubr.f32.mxu0 %v6314_v7 }
 0xef6   :  { %5822 = vmatprep.subr.bf16.mxu0 %v6407_v15 }
 0xfb3   :  { %v2452_v26 = vpop.f32.mrb[48].mxu0 }
 0xfb4   :  { %v2454_v28 = vpop.f32.mrb[49].mxu0 }
 0xfb7   :  { %v2458_v30 = vpop.f32.mrb[50].mxu0 }
 0xfb8   :  { %v5789_v31 = vpack.c.bf16 %v2458_v30, %v2452_v26  ;;  %v2460_v32 = vpop.f32.mrb[51].mxu0 }
 0xfb9   :  { %v5797_v33 = vpack.c.bf16 %v2460_v32, %v2454_v28 }
 0xfba   :  { %5790 = vmatprep.subr.bf16.mxu1 %v5789_v31 }
 0xfbb   :  { %v2464_v34 = vpop.f32.mrb[52].mxu0  ;;  %5792 = vmatpush3.bf16.msra.mxu1 %v5789_v31 }
 0xfbc   :  { %v2466_v35 = vpop.f32.mrb[53].mxu0 }
 0xfbf   :  { %v2470_v37 = vpop.f32.mrb[54].mxu0 }
 0xfc0   :  { %v5793_v39 = vpack.c.bf16 %v2470_v37, %v2464_v34  ;;  %v2472_v40 = vpop.f32.mrb[55].mxu0 }
 0xfc1   :  { %v5801_v42 = vpack.c.bf16 %v2472_v40, %v2466_v35 }
 0xfc2   :  { %5794 = vmatprep.subr.bf16.mxu1 %v5793_v39 }
 0xfc3   :  { %v5399_v44 = vpop.f32.mrb[56].mxu0  ;;  %5796 = vmatpush3.bf16.msra.mxu1 %v5793_v39 }
 0xfc4   :  { %v2541_v45 = vpop.f32.mrb[57].mxu0  ;;  %5798 = vmatprep.subr.bf16.mxu1 %v5797_v33 }
 0xfc5   :  { %v5805_v53 = vpack.c.bf16 %v5399_v44, %v2541_v45 }
 0xfc6   :  { %5412 = vmatmul.mubr.msk.f32.vlgmr.msra.gmra.mrb[16].mxu1 %vm59_vm0, %v6925_v54 }
 0xfc7   :  { %v5402_v55 = vpop.f32.mrb[58].mxu0  ;;  %5800 = vmatpush3.bf16.msra.mxu1 %v5797_v33  ;;  %5414 = vmatprep.mubr.msk.f32.mxu1 %vm59_vm0, %v6932_v57 }
 0xfc8   :  { %v2551_v58 = vpop.f32.mrb[59].mxu0  ;;  %5802 = vmatprep.subr.bf16.mxu1 %v5801_v42 }
 0xfc9   :  { %v5809_v59 = vpack.c.bf16 %v5402_v55, %v2551_v58 }
 0xfca   :  { %5415 = vmatmul.mubr.msk.f32.gmra.mrb[18].mxu1 %vm59_vm0, %v6939_v62 }
 0xfcb   :  { %5804 = vmatpush3.bf16.msra.mxu1 %v5801_v42  ;;  %5425 = vmatprep.mubr.msk.f32.mxu1 %vm59_vm0, %v6946_v1 }
 0xfcc   :  { %5806 = vmatprep.subr.bf16.mxu1 %v5805_v53 }
 0xfce   :  { %5426 = vmatmul.mubr.msk.f32.vlgmr.msra.gmra.mrb[16].mxu1 %vm59_vm0, %v6953_v2 }
 0xfcf   :  { %5808 = vmatpush3.bf16.msra.mxu1 %v5805_v53  ;;  %5428 = vmatprep.mubr.msk.f32.mxu1 %vm59_vm0, %v6960_v38 }
 0xfd0   :  { %5810 = vmatprep.subr.bf16.mxu1 %v5809_v59 }
 0xfd2   :  { %5429 = vmatmul.mubr.msk.f32.gmra.mrb[18].mxu1 %vm59_vm0, %v6967_v43 }
 0xfd3   :  { %5812 = vmatpush3.bf16.msra.mxu1 %v5809_v59  ;;  %5439 = vmatprep.mubr.msk.f32.mxu1 %vm59_vm0, %v6974_v46 }
 0xfd6   :  { %5440 = vmatmul.mubr.msk.f32.vlgmr.msra.gmra.mrb[16].mxu1 %vm59_vm0, %v6981_v47 }
 0xfd7   :  { %5442 = vmatprep.mubr.msk.f32.mxu1 %vm59_vm0, %v6988_v4 }
 0xfda   :  { %5443 = vmatmul.mubr.msk.f32.gmra.mrb[18].mxu1 %vm59_vm0, %v6995_v23 }
 0xfdb   :  { %5467 = vmatprep.mubr.msk.f32.mxu1 %vm59_vm0, %v6842_v36 }
0x10a9   :  { %v5441_v51 = vpop.f32.mrb[16].mxu1 }
0x10aa   :  { %v5949_v0 = vadd.f32 %v5441_v51, %v4822_v50  ;;  %v2809_v56 = vpop.f32.mrb[17].mxu1 }
0x10ab   :  { %v5950_v5 = vadd.f32 %v4821_v12, %v2809_v56 }
0x10ac   :  { %6136 = vtanh.f32 %v5949_v0  ;;  %v2833_v33 = vmul.f32 0.5, %v5949_v0 }
0x10ad   :  { %6138 = vtanh.f32 %v5950_v5  ;;  %v5444_v18 = vpop.f32.mrb[18].mxu1  ;;  %v2832_v34 = vmul.f32 0.5, %v5950_v5 }
0x10ae   :  { %v5951_v10 = vadd.f32 %v5444_v18, %v4824_v63  ;;  %v2819_v24 = vpop.f32.mrb[19].mxu1 }
0x10af   :  { %v5952_v26 = vadd.f32 %v4823_v6, %v2819_v24 }
0x10b0   :  { %6140 = vtanh.f32 %v5951_v10  ;;  %v2835_v35 = vmul.f32 0.5, %v5951_v10 }
0x10b1   :  { %6142 = vtanh.f32 %v5952_v26  ;;  %v2834_v37 = vmul.f32 0.5, %v5952_v26 }
0x10b2   :  { %6144 = vtanh.f32 %v2833_v33 }
0x10b3   :  { %6146 = vtanh.f32 %v2832_v34 }
0x10b4   :  { %6148 = vtanh.f32 %v2835_v35 }
0x10b5   :  { %6150 = vtanh.f32 %v2834_v37 }
0x10b6   :  { %v6137_v28 = vpop.eup %6136 }
0x10b7   :  { %v6139_v30 = vpop.eup %6138  ;;  %2862 = vrot.lane.b32.xlu1 %v6137_v28, %s6315_s15 }
0x10b8   :  { %2860 = vrot.lane.b32.xlu0 %v6139_v30, %s6315_s15 }
0x10ba   :  { %v6141_v31 = vpop.eup %6140 }
0x10bb   :  { %v6143_v32 = vpop.eup %6142  ;;  %2866 = vrot.lane.b32.xlu1 %v6141_v31, %s6315_s15 }
0x10bc   :  { %2864 = vrot.lane.b32.xlu0 %v6143_v32, %s6315_s15  ;;  %v6145_v39 = vpop.eup %6144 }
0x10bd   :  { %v6147_v40 = vpop.eup %6146  ;;  %v2841_v42 = vadd.f32 1.0, %v6145_v39 }
0x10be   :  { %v6149_v44 = vpop.eup %6148  ;;  %v2840_v45 = vadd.f32 1.0, %v6147_v40 }
0x10bf   :  { %v6151_v53 = vpop.eup %6150  ;;  %v2845_v55 = vmul.f32 0.5, %v2841_v42  ;;  %v2843_v58 = vadd.f32 1.0, %v6149_v44 }
0x10c0   :  { %v2844_v50 = vmul.f32 0.5, %v2840_v45  ;;  %v2842_v12 = vadd.f32 1.0, %v6151_v53 }
0x10c1   :  { %v2847_v5 = vmul.f32 0.5, %v2843_v58  ;;  %v2853_v26 = vmul.f32 %v2845_v55, %v6868_v60 }
0x10c2   :  { %v2846_v6 = vmul.f32 0.5, %v2842_v12  ;;  %v2852_v30 = vmul.f32 %v2844_v50, %v6870_v41 }
0x10c3   :  { %v2855_v34 = vmul.f32 %v2847_v5, %v6876_v48 }
0x10c4   :  { %v2854_v37 = vmul.f32 %v2846_v6, %v6878_v49 }
0x1129   :  { %v2863_v59 = vpop.permute.xlu1 %2862 }
0x112a   :  { %v2873_v51 = vmul.f32 %v2863_v59, %v2845_v55  ;;  %v2861_v0 = vpop.permute.xlu0 %2860 }
0x112b   :  { %v2872_v56 = vmul.f32 %v2861_v0, %v2844_v50 }
0x112c   :  { %2882 = vrot.lane.b32.xlu1 %v2873_v51, %s6315_s15 }
0x112d   :  { %v2867_v63 = vpop.permute.xlu1 %2866  ;;  %2880 = vrot.lane.b32.xlu0 %v2872_v56, %s6315_s15 }
0x112e   :  { %v2875_v18 = vmul.f32 %v2867_v63, %v2847_v5  ;;  %v2865_v10 = vpop.permute.xlu0 %2864 }
0x112f   :  { %v2874_v24 = vmul.f32 %v2865_v10, %v2846_v6 }
0x1130   :  { %2886 = vrot.lane.b32.xlu1 %v2875_v18, %s6315_s15 }
0x1131   :  { %2884 = vrot.lane.b32.xlu0 %v2874_v24, %s6315_s15 }
0x119e   :  { %v2883_v28 = vpop.permute.xlu1 %2882 }
0x119f   :  { %v7023_v31 = vadd.f32 %v2883_v28, %v2853_v26  ;;  %v2881_v32 = vpop.permute.xlu0 %2880 }
0x11a0   :  { %v7025_v33 = vadd.f32 %v2881_v32, %v2852_v30 }
0x11a1   :  { %6152 = vtanh.f32 %v7023_v31 }
0x11a2   :  { %6154 = vtanh.f32 %v7025_v33  ;;  %v2887_v35 = vpop.permute.xlu1 %2886 }
0x11a3   :  { %v7031_v39 = vadd.f32 %v2887_v35, %v2855_v34  ;;  %v2885_v60 = vpop.permute.xlu0 %2884 }
0x11a4   :  { %v7033_v40 = vadd.f32 %v2885_v60, %v2854_v37 }
0x11a5   :  { %6156 = vtanh.f32 %v7031_v39 }
0x11a6   :  { %6158 = vtanh.f32 %v7033_v40 }
0x11ab   :  { %v6153_v41 = vpop.eup %6152 }
0x11ac   :  { %v6155_v42 = vpop.eup %6154  ;;  %2906 = vrot.lane.b32.xlu1 %v6153_v41, %s6315_s15 }
0x11ad   :  { %2904 = vrot.lane.b32.xlu0 %v6155_v42, %s6315_s15 }
0x11af   :  { %v6157_v48 = vpop.eup %6156 }
0x11b0   :  { %v6159_v44 = vpop.eup %6158  ;;  %2910 = vrot.lane.b32.xlu1 %v6157_v48, %s6315_s15 }
0x11b1   :  { %2908 = vrot.lane.b32.xlu0 %v6159_v44, %s6315_s15 }
0x121e   :  { %v2907_v49 = vpop.permute.xlu1 %2906 }
0x121f   :  { %v2917_v45 = vmul.f32 %v2907_v49, %v2845_v55  ;;  %v2905_v53 = vpop.permute.xlu0 %2904 }
0x1220   :  { %v2916_v58 = vmul.f32 %v2905_v53, %v2844_v50  ;;  %v4845_v53 = vld [vmem:[%s7448_s2 + $0xa0] sm:$0xff] }
0x1221   :  { %2926 = vrot.lane.b32.xlu1 %v2917_v45, %s6316_s4  ;;  %v4846_v45 = vld [vmem:[%s7448_s2 + $0xa8] sm:$0xff] }
0x1222   :  { %v2911_v59 = vpop.permute.xlu1 %2910  ;;  %2924 = vrot.lane.b32.xlu0 %v2916_v58, %s6316_s4 }
0x1223   :  { %v2919_v12 = vmul.f32 %v2911_v59, %v2847_v5  ;;  %v2909_v51 = vpop.permute.xlu0 %2908 }
0x1224   :  { %v2918_v0 = vmul.f32 %v2909_v51, %v2846_v6 }
0x1225   :  { %2930 = vrot.lane.b32.xlu1 %v2919_v12, %s6316_s4 }
0x1226   :  { %2928 = vrot.lane.b32.xlu0 %v2918_v0, %s6316_s4  ;;  %v4848_v0 = vld [vmem:[%s7448_s2 + $0xb8] sm:$0xff] }
0x1293   :  { %v2927_v56 = vpop.permute.xlu1 %2926 }
0x1294   :  { %2937 = vst.msk [vmem:[#allocation2 + $0x18] sm:$0xff] %vm59_vm0, %v2927_v56  ;;  %v2925_v63 = vpop.permute.xlu0 %2924 }
0x1295   :  { %2936 = vst.msk [vmem:[#allocation2 + $0x8] sm:$0xff] %vm59_vm0, %v2925_v63  ;;  %4837 = vmatmul.mubr.msk.f32.vlgmr.msra.gmra.mrb[60].mxu0 %vm59_vm0, %v2925_v63 }
0x1296   :  { %3018 = vmatprep.mubr.f32.mxu0 %v6314_v7  ;;  %5824 = vmatpush3.bf16.msra.mxu0 %v6407_v15 }
0x1297   :  { %v2931_v55 = vpop.permute.xlu1 %2930  ;;  %5826 = vmatprep.subr.bf16.mxu0 %v6420_v19 }
0x1298   :  { %2939 = vst.msk [vmem:[#allocation2 + $0x38] sm:$0xff] %vm59_vm0, %v2931_v55  ;;  %v2929_v50 = vpop.permute.xlu0 %2928 }
0x1299   :  { %2938 = vst.msk [vmem:[#allocation2 + $0x28] sm:$0xff] %vm59_vm0, %v2929_v50  ;;  %4838 = vmatmul.mubr.msk.f32.gmra.mrb[62].mxu0 %vm59_vm0, %v2927_v56 }
0x129a   :  { %3024 = vmatprep.mubr.f32.mxu0 %v6314_v7  ;;  %5828 = vmatpush3.bf16.msra.mxu0 %v6420_v19 }
0x129b   :  { %5854 = vmatprep.subr.bf16.mxu0 %v6374_v3 }
0x129d   :  { %4839 = vmatmul.mubr.msk.f32.gmra.mrb[64].mxu0 %vm59_vm0, %v2929_v50 }
0x129e   :  { %3030 = vmatprep.mubr.f32.mxu0 %v6314_v7 }
0x12a1   :  { %4840 = vmatmul.mubr.msk.f32.gmra.mrb[66].mxu0 %vm59_vm0, %v2931_v55 }
0x12a2   :  { %5453 = vmatprep.mubr.msk.f32.mxu0 %vm59_vm0, %v2925_v63 }
0x12a5   :  { %5454 = vmatmul.mubr.msk.f32.vlgmr.msra.gmra.mrb[68].mxu0 %vm59_vm0, %v2927_v56  ;;  %v4847_v56 = vld [vmem:[%s7448_s2 + $0xb0] sm:$0xff] }
0x12a6   :  { %5456 = vmatprep.mubr.msk.f32.mxu0 %vm59_vm0, %v2929_v50  ;;  %5856 = vmatpush1.bf16.msra.mxu0 %v6386_v8 }
0x12a7   :  { %5858 = vmatprep.subr.bf16.mxu0 %v6388_v9 }
0x12a9   :  { %5457 = vmatmul.mubr.msk.f32.gmra.mrb[70].mxu0 %vm59_vm0, %v2931_v55 }
0x12aa   :  { %5860 = vmatpush1.bf16.msra.mxu0 %v6404_v14  ;;  %3582 = vmatprep.mubr.f32.mxu0 %v6314_v7 }
0x12ab   :  { %5862 = vmatprep.subr.bf16.mxu0 %v6407_v15 }
0x1368   :  { %v3014_v5 = vpop.f32.mrb[60].mxu0 }
0x1369   :  { %v3016_v6 = vpop.f32.mrb[61].mxu0 }
0x136c   :  { %v3020_v18 = vpop.f32.mrb[62].mxu0 }
0x136d   :  { %v5829_v10 = vpack.c.bf16 %v3020_v18, %v3014_v5  ;;  %v3022_v24 = vpop.f32.mrb[63].mxu0 }
0x136e   :  { %v5837_v26 = vpack.c.bf16 %v3022_v24, %v3016_v6 }
0x136f   :  { %5830 = vmatprep.subr.bf16.mxu1 %v5829_v10 }
0x1370   :  { %v3026_v28 = vpop.f32.mrb[64].mxu0  ;;  %5832 = vmatpush3.bf16.msra.mxu1 %v5829_v10 }
0x1371   :  { %v3028_v30 = vpop.f32.mrb[65].mxu0 }
0x1374   :  { %v3032_v32 = vpop.f32.mrb[66].mxu0 }
0x1375   :  { %v5833_v34 = vpack.c.bf16 %v3032_v32, %v3026_v28  ;;  %v3034_v35 = vpop.f32.mrb[67].mxu0 }
0x1376   :  { %v5841_v37 = vpack.c.bf16 %v3034_v35, %v3028_v30 }
0x1377   :  { %5834 = vmatprep.subr.bf16.mxu1 %v5833_v34 }
0x1378   :  { %v5455_v60 = vpop.f32.mrb[68].mxu0  ;;  %5836 = vmatpush3.bf16.msra.mxu1 %v5833_v34 }
0x1379   :  { %v3103_v41 = vpop.f32.mrb[69].mxu0  ;;  %5838 = vmatprep.subr.bf16.mxu1 %v5837_v26 }
0x137a   :  { %v5845_v42 = vpack.c.bf16 %v5455_v60, %v3103_v41 }
0x137b   :  { %5468 = vmatmul.mubr.msk.f32.vlgmr.msra.gmra.mrb[20].mxu1 %vm59_vm0, %v6925_v54 }
0x137c   :  { %v5458_v48 = vpop.f32.mrb[70].mxu0  ;;  %5840 = vmatpush3.bf16.msra.mxu1 %v5837_v26  ;;  %5470 = vmatprep.mubr.msk.f32.mxu1 %vm59_vm0, %v6932_v57 }
0x137d   :  { %v3113_v44 = vpop.f32.mrb[71].mxu0  ;;  %5842 = vmatprep.subr.bf16.mxu1 %v5841_v37 }
0x137e   :  { %v5849_v49 = vpack.c.bf16 %v5458_v48, %v3113_v44 }
0x137f   :  { %5471 = vmatmul.mubr.msk.f32.gmra.mrb[22].mxu1 %vm59_vm0, %v6939_v62 }
0x1380   :  { %5844 = vmatpush3.bf16.msra.mxu1 %v5841_v37  ;;  %5481 = vmatprep.mubr.msk.f32.mxu1 %vm59_vm0, %v6946_v1 }
0x1381   :  { %5846 = vmatprep.subr.bf16.mxu1 %v5845_v42 }
0x1383   :  { %5482 = vmatmul.mubr.msk.f32.vlgmr.msra.gmra.mrb[20].mxu1 %vm59_vm0, %v6953_v2 }
0x1384   :  { %5848 = vmatpush3.bf16.msra.mxu1 %v5845_v42  ;;  %5484 = vmatprep.mubr.msk.f32.mxu1 %vm59_vm0, %v6960_v38 }
0x1385   :  { %5850 = vmatprep.subr.bf16.mxu1 %v5849_v49 }
0x1387   :  { %5485 = vmatmul.mubr.msk.f32.gmra.mrb[22].mxu1 %vm59_vm0, %v6967_v43 }
0x1388   :  { %5852 = vmatpush3.bf16.msra.mxu1 %v5849_v49  ;;  %5495 = vmatprep.mubr.msk.f32.mxu1 %vm59_vm0, %v6974_v46 }
0x138b   :  { %5496 = vmatmul.mubr.msk.f32.vlgmr.msra.gmra.mrb[20].mxu1 %vm59_vm0, %v6981_v47 }
0x138c   :  { %5498 = vmatprep.mubr.msk.f32.mxu1 %vm59_vm0, %v6988_v4 }
0x138f   :  { %5499 = vmatmul.mubr.msk.f32.gmra.mrb[22].mxu1 %vm59_vm0, %v6995_v23 }
0x1390   :  { %5523 = vmatprep.mubr.msk.f32.mxu1 %vm59_vm0, %v6842_v36 }
0x145e   :  { %v5497_v58 = vpop.f32.mrb[20].mxu1 }
0x145f   :  { %v5953_v59 = vadd.f32 %v5497_v58, %v4846_v45  ;;  %v3371_v12 = vpop.f32.mrb[21].mxu1 }
0x1460   :  { %v5954_v51 = vadd.f32 %v4845_v53, %v3371_v12 }
0x1461   :  { %6160 = vtanh.f32 %v5953_v59  ;;  %v3395_v26 = vmul.f32 0.5, %v5953_v59 }
0x1462   :  { %6162 = vtanh.f32 %v5954_v51  ;;  %v5500_v63 = vpop.f32.mrb[22].mxu1  ;;  %v3394_v28 = vmul.f32 0.5, %v5954_v51 }
0x1463   :  { %v5955_v55 = vadd.f32 %v5500_v63, %v4848_v0  ;;  %v3381_v50 = vpop.f32.mrb[23].mxu1 }
0x1464   :  { %v5956_v5 = vadd.f32 %v4847_v56, %v3381_v50 }
0x1465   :  { %6164 = vtanh.f32 %v5955_v55  ;;  %v3397_v30 = vmul.f32 0.5, %v5955_v55 }
0x1466   :  { %6166 = vtanh.f32 %v5956_v5  ;;  %v3396_v32 = vmul.f32 0.5, %v5956_v5 }
0x1467   :  { %6168 = vtanh.f32 %v3395_v26 }
0x1468   :  { %6170 = vtanh.f32 %v3394_v28 }
0x1469   :  { %6172 = vtanh.f32 %v3397_v30 }
0x146a   :  { %6174 = vtanh.f32 %v3396_v32 }
0x146b   :  { %v6161_v6 = vpop.eup %6160 }
0x146c   :  { %v6163_v18 = vpop.eup %6162  ;;  %3424 = vrot.lane.b32.xlu1 %v6161_v6, %s6315_s15 }
0x146d   :  { %3422 = vrot.lane.b32.xlu0 %v6163_v18, %s6315_s15 }
0x146f   :  { %v6165_v10 = vpop.eup %6164 }
0x1470   :  { %v6167_v24 = vpop.eup %6166  ;;  %3428 = vrot.lane.b32.xlu1 %v6165_v10, %s6315_s15 }
0x1471   :  { %3426 = vrot.lane.b32.xlu0 %v6167_v24, %s6315_s15  ;;  %v6169_v34 = vpop.eup %6168 }
0x1472   :  { %v6171_v35 = vpop.eup %6170  ;;  %v3403_v37 = vadd.f32 1.0, %v6169_v34 }
0x1473   :  { %v6173_v60 = vpop.eup %6172  ;;  %v3402_v41 = vadd.f32 1.0, %v6171_v35 }
0x1474   :  { %v6175_v42 = vpop.eup %6174  ;;  %v3407_v48 = vmul.f32 0.5, %v3403_v37  ;;  %v3405_v44 = vadd.f32 1.0, %v6173_v60 }
0x1475   :  { %v3406_v45 = vmul.f32 0.5, %v3402_v41  ;;  %v3404_v53 = vadd.f32 1.0, %v6175_v42 }
0x1476   :  { %v3409_v51 = vmul.f32 0.5, %v3405_v44  ;;  %v3415_v5 = vmul.f32 %v3407_v48, %v7023_v31 }
0x1477   :  { %v3408_v56 = vmul.f32 0.5, %v3404_v53  ;;  %v3414_v18 = vmul.f32 %v3406_v45, %v7025_v33 }
0x1478   :  { %v3417_v28 = vmul.f32 %v3409_v51, %v7031_v39 }
0x1479   :  { %v3416_v32 = vmul.f32 %v3408_v56, %v7033_v40 }
0x14de   :  { %v3425_v49 = vpop.permute.xlu1 %3424 }
0x14df   :  { %v3435_v58 = vmul.f32 %v3425_v49, %v3407_v48  ;;  %v3423_v59 = vpop.permute.xlu0 %3422 }
0x14e0   :  { %v3434_v12 = vmul.f32 %v3423_v59, %v3406_v45 }
0x14e1   :  { %3444 = vrot.lane.b32.xlu1 %v3435_v58, %s6315_s15 }
0x14e2   :  { %v3429_v0 = vpop.permute.xlu1 %3428  ;;  %3442 = vrot.lane.b32.xlu0 %v3434_v12, %s6315_s15 }
0x14e3   :  { %v3437_v63 = vmul.f32 %v3429_v0, %v3409_v51  ;;  %v3427_v55 = vpop.permute.xlu0 %3426 }
0x14e4   :  { %v3436_v50 = vmul.f32 %v3427_v55, %v3408_v56 }
0x14e5   :  { %3448 = vrot.lane.b32.xlu1 %v3437_v63, %s6315_s15 }
0x14e6   :  { %3446 = vrot.lane.b32.xlu0 %v3436_v50, %s6315_s15 }
0x1553   :  { %v3445_v6 = vpop.permute.xlu1 %3444 }
0x1554   :  { %v7115_v10 = vadd.f32 %v3445_v6, %v3415_v5  ;;  %v3443_v24 = vpop.permute.xlu0 %3442 }
0x1555   :  { %v7117_v26 = vadd.f32 %v3443_v24, %v3414_v18 }
0x1556   :  { %6176 = vtanh.f32 %v7115_v10 }
0x1557   :  { %6178 = vtanh.f32 %v7117_v26  ;;  %v3449_v30 = vpop.permute.xlu1 %3448 }
0x1558   :  { %v7123_v34 = vadd.f32 %v3449_v30, %v3417_v28  ;;  %v3447_v31 = vpop.permute.xlu0 %3446 }
0x1559   :  { %v7125_v35 = vadd.f32 %v3447_v31, %v3416_v32 }
0x155a   :  { %6180 = vtanh.f32 %v7123_v34 }
0x155b   :  { %6182 = vtanh.f32 %v7125_v35 }
0x1560   :  { %v6177_v33 = vpop.eup %6176 }
0x1561   :  { %v6179_v37 = vpop.eup %6178  ;;  %3468 = vrot.lane.b32.xlu1 %v6177_v33, %s6315_s15 }
0x1562   :  { %3466 = vrot.lane.b32.xlu0 %v6179_v37, %s6315_s15  ;;  %v4870_v37 = vld [vmem:[%s7448_s2 + $0xc8] sm:$0xff] }
0x1564   :  { %v6181_v39 = vpop.eup %6180 }
0x1565   :  { %v6183_v60 = vpop.eup %6182  ;;  %3472 = vrot.lane.b32.xlu1 %v6181_v39, %s6315_s15  ;;  %v4869_v39 = vld [vmem:[%s7448_s2 + $0xc0] sm:$0xff] }
0x1566   :  { %3470 = vrot.lane.b32.xlu0 %v6183_v60, %s6315_s15 }
0x15d3   :  { %v3469_v40 = vpop.permute.xlu1 %3468 }
0x15d4   :  { %v7133_v41 = vmul.f32 %v3469_v40, %v3407_v48  ;;  %v3467_v42 = vpop.permute.xlu0 %3466 }
0x15d5   :  { %v7135_v44 = vmul.f32 %v3467_v42, %v3406_v45 }
0x15d6   :  { %3504 = vrot.lane.b32.xlu1 %v7133_v41, %s6316_s4 }
0x15d7   :  { %v3473_v49 = vpop.permute.xlu1 %3472  ;;  %3502 = vrot.lane.b32.xlu0 %v7135_v44, %s6316_s4 }
0x15d8   :  { %v7141_v53 = vmul.f32 %v3473_v49, %v3409_v51  ;;  %v3471_v58 = vpop.permute.xlu0 %3470 }
0x15d9   :  { %v7143_v59 = vmul.f32 %v3471_v58, %v3408_v56  ;;  %v4872_v58 = vld [vmem:[%s7448_s2 + $0xd8] sm:$0xff] }
0x15da   :  { %3508 = vrot.lane.b32.xlu1 %v7141_v53, %s6316_s4 }
0x15db   :  { %3506 = vrot.lane.b32.xlu0 %v7143_v59, %s6316_s4 }
0x1648   :  { %v3505_v45 = vpop.permute.xlu1 %3504 }
0x1649   :  { %v3503_v48 = vpop.permute.xlu0 %3502 }
0x164a   :  { %4861 = vmatmul.mubr.msk.f32.vlgmr.msra.gmra.mrb[72].mxu0 %vm59_vm0, %v3503_v48 }
0x164b   :  { %3588 = vmatprep.mubr.f32.mxu0 %v6314_v7  ;;  %5864 = vmatpush3.bf16.msra.mxu0 %v6407_v15 }
0x164c   :  { %5866 = vmatprep.subr.bf16.mxu0 %v6420_v19  ;;  %v3509_v51 = vpop.permute.xlu1 %3508 }
0x164d   :  { %v3507_v12 = vpop.permute.xlu0 %3506 }
0x164e   :  { %4862 = vmatmul.mubr.msk.f32.gmra.mrb[74].mxu0 %vm59_vm0, %v3505_v45 }
0x164f   :  { %3594 = vmatprep.mubr.f32.mxu0 %v6314_v7  ;;  %5868 = vmatpush3.bf16.msra.mxu0 %v6420_v19 }
0x1650   :  { %5894 = vmatprep.subr.bf16.mxu0 %v6374_v3 }
0x1652   :  { %4863 = vmatmul.mubr.msk.f32.gmra.mrb[76].mxu0 %vm59_vm0, %v3507_v12 }
0x1653   :  { %3600 = vmatprep.mubr.f32.mxu0 %v6314_v7 }
0x1656   :  { %4864 = vmatmul.mubr.msk.f32.gmra.mrb[78].mxu0 %vm59_vm0, %v3509_v51 }
0x1657   :  { %5509 = vmatprep.mubr.msk.f32.mxu0 %vm59_vm0, %v3503_v48 }
0x165a   :  { %5510 = vmatmul.mubr.msk.f32.vlgmr.msra.gmra.mrb[80].mxu0 %vm59_vm0, %v3505_v45 }
0x165b   :  { %5512 = vmatprep.mubr.msk.f32.mxu0 %vm59_vm0, %v3507_v12  ;;  %5896 = vmatpush1.bf16.msra.mxu0 %v6386_v8 }
0x165c   :  { %5898 = vmatprep.subr.bf16.mxu0 %v6388_v9 }
0x165e   :  { %5513 = vmatmul.mubr.msk.f32.gmra.mrb[82].mxu0 %vm59_vm0, %v3509_v51 }
0x165f   :  { %5900 = vmatpush1.bf16.msra.mxu0 %v6404_v14  ;;  %4140 = vmatprep.mubr.f32.mxu0 %v6314_v7 }
0x1660   :  { %5902 = vmatprep.subr.bf16.mxu0 %v6407_v15 }
0x171d   :  { %v3584_v3 = vpop.f32.mrb[72].mxu0 }
0x171e   :  { %v3586_v0 = vpop.f32.mrb[73].mxu0 }
0x1721   :  { %v3590_v56 = vpop.f32.mrb[74].mxu0 }
0x1722   :  { %v5869_v63 = vpack.c.bf16 %v3590_v56, %v3584_v3  ;;  %v3592_v55 = vpop.f32.mrb[75].mxu0 }
0x1723   :  { %v5877_v50 = vpack.c.bf16 %v3592_v55, %v3586_v0 }
0x1724   :  { %5870 = vmatprep.subr.bf16.mxu1 %v5869_v63 }
0x1725   :  { %v3596_v5 = vpop.f32.mrb[76].mxu0  ;;  %5872 = vmatpush3.bf16.msra.mxu1 %v5869_v63 }
0x1726   :  { %v3598_v8 = vpop.f32.mrb[77].mxu0 }
0x1729   :  { %v3602_v6 = vpop.f32.mrb[78].mxu0 }
0x172a   :  { %v5873_v9 = vpack.c.bf16 %v3602_v6, %v3596_v5  ;;  %v3604_v18 = vpop.f32.mrb[79].mxu0 }
0x172b   :  { %v5881_v24 = vpack.c.bf16 %v3604_v18, %v3598_v8 }
0x172c   :  { %5874 = vmatprep.subr.bf16.mxu1 %v5873_v9 }
0x172d   :  { %v5511_v14 = vpop.f32.mrb[80].mxu0  ;;  %5876 = vmatpush3.bf16.msra.mxu1 %v5873_v9 }
0x172e   :  { %v3673_v28 = vpop.f32.mrb[81].mxu0  ;;  %5878 = vmatprep.subr.bf16.mxu1 %v5877_v50 }
0x172f   :  { %v5885_v30 = vpack.c.bf16 %v5511_v14, %v3673_v28 }
0x1730   :  { %5524 = vmatmul.mubr.msk.f32.vlgmr.msra.gmra.mrb[24].mxu1 %vm59_vm0, %v6925_v54 }
0x1731   :  { %v5514_v32 = vpop.f32.mrb[82].mxu0  ;;  %5880 = vmatpush3.bf16.msra.mxu1 %v5877_v50  ;;  %5526 = vmatprep.mubr.msk.f32.mxu1 %vm59_vm0, %v6932_v57 }
0x1732   :  { %v3683_v31 = vpop.f32.mrb[83].mxu0  ;;  %5882 = vmatprep.subr.bf16.mxu1 %v5881_v24 }
0x1733   :  { %v5889_v33 = vpack.c.bf16 %v5514_v32, %v3683_v31 }
0x1734   :  { %5527 = vmatmul.mubr.msk.f32.gmra.mrb[26].mxu1 %vm59_vm0, %v6939_v62 }
0x1735   :  { %5884 = vmatpush3.bf16.msra.mxu1 %v5881_v24  ;;  %5537 = vmatprep.mubr.msk.f32.mxu1 %vm59_vm0, %v6946_v1 }
0x1736   :  { %5886 = vmatprep.subr.bf16.mxu1 %v5885_v30 }
0x1738   :  { %5538 = vmatmul.mubr.msk.f32.vlgmr.msra.gmra.mrb[24].mxu1 %vm59_vm0, %v6953_v2 }
0x1739   :  { %5888 = vmatpush3.bf16.msra.mxu1 %v5885_v30  ;;  %5540 = vmatprep.mubr.msk.f32.mxu1 %vm59_vm0, %v6960_v38 }
0x173a   :  { %5890 = vmatprep.subr.bf16.mxu1 %v5889_v33 }
0x173c   :  { %5541 = vmatmul.mubr.msk.f32.gmra.mrb[26].mxu1 %vm59_vm0, %v6967_v43 }
0x173d   :  { %5892 = vmatpush3.bf16.msra.mxu1 %v5889_v33  ;;  %5551 = vmatprep.mubr.msk.f32.mxu1 %vm59_vm0, %v6974_v46 }
0x1740   :  { %5552 = vmatmul.mubr.msk.f32.vlgmr.msra.gmra.mrb[24].mxu1 %vm59_vm0, %v6981_v47 }
0x1741   :  { %5554 = vmatprep.mubr.msk.f32.mxu1 %vm59_vm0, %v6988_v4 }
0x1744   :  { %5555 = vmatmul.mubr.msk.f32.gmra.mrb[26].mxu1 %vm59_vm0, %v6995_v23 }
0x1745   :  { %5579 = vmatprep.mubr.msk.f32.mxu1 %vm59_vm0, %v6842_v36  ;;  %v4871_v36 = vld [vmem:[%s7448_s2 + $0xd0] sm:$0xff] }
0x1813   :  { %v5553_v60 = vpop.f32.mrb[24].mxu1 }
0x1814   :  { %v5957_v40 = vadd.f32 %v5553_v60, %v4870_v37  ;;  %v3941_v42 = vpop.f32.mrb[25].mxu1 }
0x1815   :  { %v5958_v49 = vadd.f32 %v4869_v39, %v3941_v42 }
0x1816   :  { %6184 = vtanh.f32 %v5957_v40  ;;  %v3965_v55 = vmul.f32 0.5, %v5957_v40 }
0x1817   :  { %6186 = vtanh.f32 %v5958_v49  ;;  %v5556_v48 = vpop.f32.mrb[26].mxu1  ;;  %v3964_v50 = vmul.f32 0.5, %v5958_v49 }
0x1818   :  { %v5959_v45 = vadd.f32 %v5556_v48, %v4872_v58  ;;  %v3951_v12 = vpop.f32.mrb[27].mxu1 }
0x1819   :  { %v5960_v51 = vadd.f32 %v4871_v36, %v3951_v12 }
0x181a   :  { %6188 = vtanh.f32 %v5959_v45  ;;  %v3967_v5 = vmul.f32 0.5, %v5959_v45 }
0x181b   :  { %6190 = vtanh.f32 %v5960_v51  ;;  %v3966_v8 = vmul.f32 0.5, %v5960_v51 }
0x181c   :  { %6192 = vtanh.f32 %v3965_v55 }
0x181d   :  { %6194 = vtanh.f32 %v3964_v50 }
0x181e   :  { %6196 = vtanh.f32 %v3967_v5 }
0x181f   :  { %6198 = vtanh.f32 %v3966_v8 }
0x1820   :  { %v6185_v3 = vpop.eup %6184 }
0x1821   :  { %v6187_v0 = vpop.eup %6186  ;;  %3994 = vrot.lane.b32.xlu1 %v6185_v3, %s6315_s15 }
0x1822   :  { %3992 = vrot.lane.b32.xlu0 %v6187_v0, %s6315_s15 }
0x1824   :  { %v6189_v56 = vpop.eup %6188 }
0x1825   :  { %v6191_v63 = vpop.eup %6190  ;;  %3998 = vrot.lane.b32.xlu1 %v6189_v56, %s6315_s15 }
0x1826   :  { %3996 = vrot.lane.b32.xlu0 %v6191_v63, %s6315_s15  ;;  %v6193_v6 = vpop.eup %6192 }
0x1827   :  { %v6195_v9 = vpop.eup %6194  ;;  %v3973_v18 = vadd.f32 1.0, %v6193_v6 }
0x1828   :  { %v6197_v24 = vpop.eup %6196  ;;  %v3972_v14 = vadd.f32 1.0, %v6195_v9 }
0x1829   :  { %v6199_v28 = vpop.eup %6198  ;;  %v3977_v30 = vmul.f32 0.5, %v3973_v18  ;;  %v3975_v32 = vadd.f32 1.0, %v6197_v24 }
0x182a   :  { %v3976_v33 = vmul.f32 0.5, %v3972_v14  ;;  %v3974_v37 = vadd.f32 1.0, %v6199_v28 }
0x182b   :  { %v3979_v42 = vmul.f32 0.5, %v3975_v32  ;;  %v3985_v12 = vmul.f32 %v3977_v30, %v7115_v10 }
0x182c   :  { %v3978_v58 = vmul.f32 0.5, %v3974_v37  ;;  %v3984_v3 = vmul.f32 %v3976_v33, %v7117_v26 }
0x182d   :  { %v3987_v55 = vmul.f32 %v3979_v42, %v7123_v34 }
0x182e   :  { %v3986_v5 = vmul.f32 %v3978_v58, %v7125_v35 }
0x1893   :  { %v3995_v31 = vpop.permute.xlu1 %3994 }
0x1894   :  { %v4005_v39 = vmul.f32 %v3995_v31, %v3977_v30  ;;  %v3993_v60 = vpop.permute.xlu0 %3992 }
0x1895   :  { %v4004_v40 = vmul.f32 %v3993_v60, %v3976_v33 }
0x1896   :  { %4014 = vrot.lane.b32.xlu1 %v4005_v39, %s6315_s15 }
0x1897   :  { %v3999_v49 = vpop.permute.xlu1 %3998  ;;  %4012 = vrot.lane.b32.xlu0 %v4004_v40, %s6315_s15 }
0x1898   :  { %v4007_v36 = vmul.f32 %v3999_v49, %v3979_v42  ;;  %v3997_v48 = vpop.permute.xlu0 %3996 }
0x1899   :  { %v4006_v45 = vmul.f32 %v3997_v48, %v3978_v58 }
0x189a   :  { %4018 = vrot.lane.b32.xlu1 %v4007_v36, %s6315_s15 }
0x189b   :  { %4016 = vrot.lane.b32.xlu0 %v4006_v45, %s6315_s15 }
0x1908   :  { %v4015_v51 = vpop.permute.xlu1 %4014 }
0x1909   :  { %v7215_v0 = vadd.f32 %v4015_v51, %v3985_v12  ;;  %v4013_v56 = vpop.permute.xlu0 %4012 }
0x190a   :  { %v7217_v63 = vadd.f32 %v4013_v56, %v3984_v3 }
0x190b   :  { %6200 = vtanh.f32 %v7215_v0 }
0x190c   :  { %6202 = vtanh.f32 %v7217_v63  ;;  %v4019_v50 = vpop.permute.xlu1 %4018 }
0x190d   :  { %v7223_v8 = vadd.f32 %v4019_v50, %v3987_v55  ;;  %v4017_v10 = vpop.permute.xlu0 %4016 }
0x190e   :  { %v7225_v6 = vadd.f32 %v4017_v10, %v3986_v5 }
0x190f   :  { %6204 = vtanh.f32 %v7223_v8 }
0x1910   :  { %6206 = vtanh.f32 %v7225_v6 }
0x1915   :  { %v6201_v26 = vpop.eup %6200 }
0x1916   :  { %v6203_v9 = vpop.eup %6202  ;;  %4038 = vrot.lane.b32.xlu1 %v6201_v26, %s6315_s15 }
0x1917   :  { %4036 = vrot.lane.b32.xlu0 %v6203_v9, %s6315_s15 }
0x1919   :  { %v6205_v34 = vpop.eup %6204 }
0x191a   :  { %v6207_v18 = vpop.eup %6206  ;;  %4042 = vrot.lane.b32.xlu1 %v6205_v34, %s6315_s15 }
0x191b   :  { %4040 = vrot.lane.b32.xlu0 %v6207_v18, %s6315_s15 }
0x1988   :  { %v4039_v35 = vpop.permute.xlu1 %4038 }
0x1989   :  { %v7233_v24 = vmul.f32 %v4039_v35, %v3977_v30  ;;  %v4037_v14 = vpop.permute.xlu0 %4036 }
0x198a   :  { %v7235_v28 = vmul.f32 %v4037_v14, %v3976_v33 }
0x198b   :  { %4062 = vrot.lane.b32.xlu1 %v7233_v24, %s6316_s4 }
0x198c   :  { %v4043_v32 = vpop.permute.xlu1 %4042  ;;  %4060 = vrot.lane.b32.xlu0 %v7235_v28, %s6316_s4 }
0x198d   :  { %v7241_v31 = vmul.f32 %v4043_v32, %v3979_v42  ;;  %v4041_v37 = vpop.permute.xlu0 %4040 }
0x198e   :  { %v7243_v39 = vmul.f32 %v4041_v37, %v3978_v58 }
0x198f   :  { %4066 = vrot.lane.b32.xlu1 %v7241_v31, %s6316_s4 }
0x1990   :  { %4064 = vrot.lane.b32.xlu0 %v7243_v39, %s6316_s4 }
0x19fd   :  { %v4063_v33 = vpop.permute.xlu1 %4062 }
0x19fe   :  { %v4061_v30 = vpop.permute.xlu0 %4060 }
0x19ff   :  { %4885 = vmatmul.mubr.msk.f32.vlgmr.msra.gmra.mrb[84].mxu0 %vm59_vm0, %v4061_v30 }
0x1a00   :  { %4146 = vmatprep.mubr.f32.mxu0 %v6314_v7  ;;  %5904 = vmatpush3.bf16.msra.mxu0 %v6407_v15 }
0x1a01   :  { %5906 = vmatprep.subr.bf16.mxu0 %v6420_v19  ;;  %v4067_v40 = vpop.permute.xlu1 %4066 }
0x1a02   :  { %v4065_v60 = vpop.permute.xlu0 %4064 }
0x1a03   :  { %4886 = vmatmul.mubr.msk.f32.gmra.mrb[86].mxu0 %vm59_vm0, %v4063_v33 }
0x1a04   :  { %4152 = vmatprep.mubr.f32.mxu0 %v6314_v7  ;;  %5908 = vmatpush3.bf16.msra.mxu0 %v6420_v19 }
0x1a07   :  { %4887 = vmatmul.mubr.msk.f32.gmra.mrb[88].mxu0 %vm59_vm0, %v4065_v60 }
0x1a08   :  { %4158 = vmatprep.mubr.f32.mxu0 %v6314_v7 }
0x1a0b   :  { %4888 = vmatmul.mubr.msk.f32.gmra.mrb[90].mxu0 %vm59_vm0, %v4067_v40 }
0x1a0c   :  { %5565 = vmatprep.mubr.msk.f32.mxu0 %vm59_vm0, %v4061_v30 }
0x1a0f   :  { %5566 = vmatmul.mubr.msk.f32.vlgmr.msra.gmra.mrb[92].mxu0 %vm59_vm0, %v4063_v33 }
0x1a10   :  { %5568 = vmatprep.mubr.msk.f32.mxu0 %vm59_vm0, %v4065_v60 }
0x1a13   :  { %5569 = vmatmul.mubr.msk.f32.gmra.mrb[94].mxu0 %vm59_vm0, %v4067_v40 }
0x1ad2   :  { %v4142_v15 = vpop.f32.mrb[84].mxu0 }
0x1ad3   :  { %v4144_v42 = vpop.f32.mrb[85].mxu0 }
0x1ad6   :  { %v4148_v49 = vpop.f32.mrb[86].mxu0 }
0x1ad7   :  { %v5909_v19 = vpack.c.bf16 %v4148_v49, %v4142_v15  ;;  %v4150_v58 = vpop.f32.mrb[87].mxu0 }
0x1ad8   :  { %v5917_v36 = vpack.c.bf16 %v4150_v58, %v4144_v42 }
0x1ad9   :  { %5910 = vmatprep.subr.bf16.mxu1 %v5909_v19 }
0x1ada   :  { %v4154_v48 = vpop.f32.mrb[88].mxu0  ;;  %5912 = vmatpush3.bf16.msra.mxu1 %v5909_v19 }
0x1adb   :  { %v4156_v7 = vpop.f32.mrb[89].mxu0 }
0x1ade   :  { %v4160_v45 = vpop.f32.mrb[90].mxu0 }
0x1adf   :  { %v5913_v12 = vpack.c.bf16 %v4160_v45, %v4154_v48  ;;  %v4162_v51 = vpop.f32.mrb[91].mxu0 }
0x1ae0   :  { %v5921_v3 = vpack.c.bf16 %v4162_v51, %v4156_v7 }
0x1ae1   :  { %5914 = vmatprep.subr.bf16.mxu1 %v5913_v12 }
0x1ae2   :  { %v5567_v56 = vpop.f32.mrb[92].mxu0  ;;  %5916 = vmatpush3.bf16.msra.mxu1 %v5913_v12 }
0x1ae3   :  { %v4231_v55 = vpop.f32.mrb[93].mxu0  ;;  %5918 = vmatprep.subr.bf16.mxu1 %v5917_v36 }
0x1ae4   :  { %v5925_v50 = vpack.c.bf16 %v5567_v56, %v4231_v55 }
0x1ae5   :  { %5580 = vmatmul.mubr.msk.f32.vlgmr.msra.gmra.mrb[28].mxu1 %vm59_vm0, %v6925_v54  ;;  %v4894_v54 = vld [vmem:[%s7448_s2 + $0xe8] sm:$0xff] }
0x1ae6   :  { %v5570_v5 = vpop.f32.mrb[94].mxu0  ;;  %5920 = vmatpush3.bf16.msra.mxu1 %v5917_v36  ;;  %5582 = vmatprep.mubr.msk.f32.mxu1 %vm59_vm0, %v6932_v57  ;;  %v4893_v57 = vld [vmem:[%s7448_s2 + $0xe0] sm:$0xff] }
0x1ae7   :  { %v4241_v10 = vpop.f32.mrb[95].mxu0  ;;  %5922 = vmatprep.subr.bf16.mxu1 %v5921_v3 }
0x1ae8   :  { %v5929_v26 = vpack.c.bf16 %v5570_v5, %v4241_v10 }
0x1ae9   :  { %5583 = vmatmul.mubr.msk.f32.gmra.mrb[30].mxu1 %vm59_vm0, %v6939_v62 }
0x1aea   :  { %5924 = vmatpush3.bf16.msra.mxu1 %v5921_v3  ;;  %5593 = vmatprep.mubr.msk.f32.mxu1 %vm59_vm0, %v6946_v1 }
0x1aeb   :  { %5926 = vmatprep.subr.bf16.mxu1 %v5925_v50 }
0x1aed   :  { %5594 = vmatmul.mubr.msk.f32.vlgmr.msra.gmra.mrb[28].mxu1 %vm59_vm0, %v6953_v2 }
0x1aee   :  { %5928 = vmatpush3.bf16.msra.mxu1 %v5925_v50  ;;  %5596 = vmatprep.mubr.msk.f32.mxu1 %vm59_vm0, %v6960_v38 }
0x1aef   :  { %5930 = vmatprep.subr.bf16.mxu1 %v5929_v26 }
0x1af1   :  { %5597 = vmatmul.mubr.msk.f32.gmra.mrb[30].mxu1 %vm59_vm0, %v6967_v43  ;;  %v4896_v43 = vld [vmem:[%s7448_s2 + $0xf8] sm:$0xff] }
0x1af2   :  { %5932 = vmatpush3.bf16.msra.mxu1 %v5929_v26  ;;  %5607 = vmatprep.mubr.msk.f32.mxu1 %vm59_vm0, %v6974_v46  ;;  %v4895_v46 = vld [vmem:[%s7448_s2 + $0xf0] sm:$0xff]  ;;  %s6317_s2 = smov 96  }
0x1af5   :  { %5608 = vmatmul.mubr.msk.f32.vlgmr.msra.gmra.mrb[28].mxu1 %vm59_vm0, %v6981_v47 }
0x1af6   :  { %5610 = vmatprep.mubr.msk.f32.mxu1 %vm59_vm0, %v6988_v4 }
0x1af9   :  { %5611 = vmatmul.mubr.msk.f32.gmra.mrb[30].mxu1 %vm59_vm0, %v6995_v23 }
0x1bc8   :  { %v5609_v62 = vpop.f32.mrb[28].mxu1 }
0x1bc9   :  { %v5961_v1 = vadd.f32 %v5609_v62, %v4894_v54  ;;  %v4499_v2 = vpop.f32.mrb[29].mxu1 }
0x1bca   :  { %v5962_v38 = vadd.f32 %v4893_v57, %v4499_v2 }
0x1bcb   :  { %6208 = vtanh.f32 %v5961_v1  ;;  %v4523_v32 = vmul.f32 0.5, %v5961_v1 }
0x1bcc   :  { %6210 = vtanh.f32 %v5962_v38  ;;  %v5612_v47 = vpop.f32.mrb[30].mxu1  ;;  %v4522_v37 = vmul.f32 0.5, %v5962_v38 }
0x1bcd   :  { %v5963_v4 = vadd.f32 %v5612_v47, %v4896_v43  ;;  %v4509_v23 = vpop.f32.mrb[31].mxu1 }
0x1bce   :  { %v5964_v9 = vadd.f32 %v4895_v46, %v4509_v23 }
0x1bcf   :  { %6212 = vtanh.f32 %v5963_v4  ;;  %v4525_v30 = vmul.f32 0.5, %v5963_v4 }
0x1bd0   :  { %6214 = vtanh.f32 %v5964_v9  ;;  %v4524_v33 = vmul.f32 0.5, %v5964_v9 }
0x1bd1   :  { %6216 = vtanh.f32 %v4523_v32 }
0x1bd2   :  { %6218 = vtanh.f32 %v4522_v37 }
0x1bd3   :  { %6220 = vtanh.f32 %v4525_v30 }
0x1bd4   :  { %6222 = vtanh.f32 %v4524_v33 }
0x1bd5   :  { %v6209_v34 = vpop.eup %6208 }
0x1bd6   :  { %v6211_v18 = vpop.eup %6210  ;;  %4552 = vrot.lane.b32.xlu1 %v6209_v34, %s6315_s15 }
0x1bd7   :  { %4550 = vrot.lane.b32.xlu0 %v6211_v18, %s6315_s15 }
0x1bd9   :  { %v6213_v35 = vpop.eup %6212 }
0x1bda   :  { %v6215_v14 = vpop.eup %6214  ;;  %4556 = vrot.lane.b32.xlu1 %v6213_v35, %s6315_s15 }
0x1bdb   :  { %4554 = vrot.lane.b32.xlu0 %v6215_v14, %s6315_s15  ;;  %v6217_v60 = vpop.eup %6216 }
0x1bdc   :  { %v6219_v40 = vpop.eup %6218  ;;  %v4531_v15 = vadd.f32 1.0, %v6217_v60 }
0x1bdd   :  { %v6221_v42 = vpop.eup %6220  ;;  %v4530_v49 = vadd.f32 1.0, %v6219_v40 }
0x1bde   :  { %v6223_v19 = vpop.eup %6222  ;;  %v4535_v58 = vmul.f32 0.5, %v4531_v15  ;;  %v4533_v36 = vadd.f32 1.0, %v6221_v42 }
0x1bdf   :  { %v4534_v7 = vmul.f32 0.5, %v4530_v49  ;;  %v4532_v45 = vadd.f32 1.0, %v6223_v19 }
0x1be0   :  { %v4537_v56 = vmul.f32 0.5, %v4533_v36  ;;  %v4543_v54 = vmul.f32 %v4535_v58, %v7215_v0 }
0x1be1   :  { %v4536_v50 = vmul.f32 0.5, %v4532_v45  ;;  %v4542_v62 = vmul.f32 %v4534_v7, %v7217_v63 }
0x1be2   :  { %v4545_v43 = vmul.f32 %v4537_v56, %v7223_v8 }
0x1be3   :  { %v4544_v47 = vmul.f32 %v4536_v50, %v7225_v6 }
0x1c48   :  { %v4553_v48 = vpop.permute.xlu1 %4552 }
0x1c49   :  { %v4563_v12 = vmul.f32 %v4553_v48, %v4535_v58  ;;  %v4551_v51 = vpop.permute.xlu0 %4550 }
0x1c4a   :  { %v4562_v3 = vmul.f32 %v4551_v51, %v4534_v7 }
0x1c4b   :  { %4572 = vrot.lane.b32.xlu1 %v4563_v12, %s6315_s15 }
0x1c4c   :  { %v4557_v55 = vpop.permute.xlu1 %4556  ;;  %4570 = vrot.lane.b32.xlu0 %v4562_v3, %s6315_s15 }
0x1c4d   :  { %v4565_v5 = vmul.f32 %v4557_v55, %v4537_v56  ;;  %v4555_v10 = vpop.permute.xlu0 %4554 }
0x1c4e   :  { %v4564_v26 = vmul.f32 %v4555_v10, %v4536_v50 }
0x1c4f   :  { %4576 = vrot.lane.b32.xlu1 %v4565_v5, %s6315_s15 }
0x1c50   :  { %4574 = vrot.lane.b32.xlu0 %v4564_v26, %s6315_s15 }
0x1cbd   :  { %v4573_v57 = vpop.permute.xlu1 %4572 }
0x1cbe   :  { %v4583_v1 = vadd.f32 %v4573_v57, %v4543_v54  ;;  %v4571_v2 = vpop.permute.xlu0 %4570 }
0x1cbf   :  { %v4582_v38 = vadd.f32 %v4571_v2, %v4542_v62 }
0x1cc0   :  { %6224 = vtanh.f32 %v4583_v1 }
0x1cc1   :  { %6226 = vtanh.f32 %v4582_v38  ;;  %v4577_v46 = vpop.permute.xlu1 %4576 }
0x1cc2   :  { %v7309_v4 = vadd.f32 %v4577_v46, %v4545_v43  ;;  %v4575_v23 = vpop.permute.xlu0 %4574 }
0x1cc3   :  { %v7311_v9 = vadd.f32 %v4575_v23, %v4544_v47 }
0x1cc4   :  { %6228 = vtanh.f32 %v7309_v4 }
0x1cc5   :  { %6230 = vtanh.f32 %v7311_v9 }
0x1cca   :  { %v6225_v0 = vpop.eup %6224 }
0x1ccb   :  { %v6227_v63 = vpop.eup %6226  ;;  %4596 = vrot.lane.b32.xlu1 %v6225_v0, %s6315_s15 }
0x1ccc   :  { %4594 = vrot.lane.b32.xlu0 %v6227_v63, %s6315_s15 }
0x1cce   :  { %v6229_v8 = vpop.eup %6228 }
0x1ccf   :  { %v6231_v34 = vpop.eup %6230  ;;  %4600 = vrot.lane.b32.xlu1 %v6229_v8, %s6315_s15 }
0x1cd0   :  { %4598 = vrot.lane.b32.xlu0 %v6231_v34, %s6315_s15 }
0x1cd3   :  { %1225 = vrot.lane.b32.xlu1 %v6681_v13, %s6317_s2 }
0x1cd4   :  { %1223 = vrot.lane.b32.xlu0 %v6683_v17, %s6317_s2 }
0x1cd7   :  { %1229 = vrot.lane.b32.xlu1 %v6689_v20, %s6317_s2 }
0x1cd8   :  { %1227 = vrot.lane.b32.xlu0 %v6691_v22, %s6317_s2 }
0x1cdb   :  { %3488 = vrot.lane.b32.xlu1 %v7133_v41, %s6317_s2 }
0x1cdc   :  { %3486 = vrot.lane.b32.xlu0 %v7135_v44, %s6317_s2 }
0x1cdf   :  { %3492 = vrot.lane.b32.xlu1 %v7141_v53, %s6317_s2 }
0x1ce0   :  { %3490 = vrot.lane.b32.xlu0 %v7143_v59, %s6317_s2 }
0x1ce3   :  { %2355 = vrot.lane.b32.xlu1 %v6886_v52, %s6315_s15 }
0x1ce4   :  { %2353 = vrot.lane.b32.xlu0 %v6888_v11, %s6315_s15 }
0x1ce7   :  { %2359 = vrot.lane.b32.xlu1 %v6894_v61, %s6315_s15 }
0x1ce8   :  { %2357 = vrot.lane.b32.xlu0 %v6896_v16, %s6315_s15 }
0x1ceb   :  { %4652 = vrot.lane.b32.xlu1 %v4583_v1, %s6317_s2 }
0x1cec   :  { %4650 = vrot.lane.b32.xlu0 %v4582_v38, %s6317_s2 }
0x1d3d   :  { %v4597_v13 = vpop.permute.xlu1 %4596 }
0x1d3e   :  { %v4607_v17 = vmul.f32 %v4597_v13, %v4535_v58  ;;  %v4595_v20 = vpop.permute.xlu0 %4594 }
0x1d3f   :  { %v4606_v22 = vmul.f32 %v4595_v20, %v4534_v7 }
0x1d40   :  { %4632 = vrot.lane.b32.xlu1 %v4607_v17, %s6316_s4 }
0x1d41   :  { %v4601_v52 = vpop.permute.xlu1 %4600  ;;  %4630 = vrot.lane.b32.xlu0 %v4606_v22, %s6316_s4 }
0x1d42   :  { %v4599_v11 = vpop.permute.xlu0 %4598  ;;  %v4609_v16 = vmul.f32 %v4601_v52, %v4537_v56 }
0x1d43   :  { %v4608_v44 = vmul.f32 %v4599_v11, %v4536_v50 }
0x1d44   :  { %4616 = vrot.lane.b32.xlu1 %v4607_v17, %s6315_s15 }
0x1d45   :  { %v1226_v61 = vpop.permute.xlu1 %1225  ;;  %4614 = vrot.lane.b32.xlu0 %v4606_v22, %s6315_s15 }
0x1d46   :  { %1237 = vst.msk [vmem:[#allocation2 + $0x10] sm:$0xff] %vm1235_vm1, %v1226_v61  ;;  %v1224_v41 = vpop.permute.xlu0 %1223 }
0x1d47   :  { %1236 = vst.msk [vmem:[#allocation2] sm:$0xff] %vm1235_vm1, %v1224_v41 }
0x1d48   :  { %1792 = vst.msk [vmem:[#allocation2 + $0x10] sm:$0xff] %vm1790_vm2, %v6781_v21  ;;  %4636 = vrot.lane.b32.xlu1 %v4609_v16, %s6316_s4  ;;  %1791 = vst.msk [vmem:[#allocation2] sm:$0xff] %vm1790_vm2, %v6783_v25 }
0x1d49   :  { %v1230_v53 = vpop.permute.xlu1 %1229  ;;  %4634 = vrot.lane.b32.xlu0 %v4608_v44, %s6316_s4 }
0x1d4a   :  { %1239 = vst.msk [vmem:[#allocation2 + $0x30] sm:$0xff] %vm1235_vm1, %v1230_v53  ;;  %v1228_v59 = vpop.permute.xlu0 %1227 }
0x1d4b   :  { %1238 = vst.msk [vmem:[#allocation2 + $0x20] sm:$0xff] %vm1235_vm1, %v1228_v59 }
0x1d4c   :  { %1794 = vst.msk [vmem:[#allocation2 + $0x30] sm:$0xff] %vm1790_vm2, %v6789_v27  ;;  %4620 = vrot.lane.b32.xlu1 %v4609_v16, %s6315_s15  ;;  %1793 = vst.msk [vmem:[#allocation2 + $0x20] sm:$0xff] %vm1790_vm2, %v6791_v29 }
0x1d4d   :  { %v3489_v21 = vpop.permute.xlu1 %3488  ;;  %4618 = vrot.lane.b32.xlu0 %v4608_v44, %s6315_s15  ;;  %s6318_s15 = smov [#allocation4]  }
0x1d4e   :  { %3499 = vst.msk [vmem:[#allocation2 + $0x18] sm:$0xff] %vm1235_vm1, %v3489_v21  ;;  %v3487_v25 = vpop.permute.xlu0 %3486  ;;  %s4683_s4 = sshll.u32 %s6318_s15, 4  ;;  %s4684_s4 = int_to_ptr.vmem [resolvable:$true] %s4683_s4 }
0x1d4f   :  { %3498 = vst.msk [vmem:[#allocation2 + $0x8] sm:$0xff] %vm1235_vm1, %v3487_v25  ;;  %s6244_s8 = scalar_lea.vmem %s4684_s4, 512  ;;  %p6249_p1 = scmp.lt.s32.totalorder %s4684_s4, %s4684_s4 }
0x1d50   :  { %4053 = vst.msk [vmem:[#allocation2 + $0x18] sm:$0xff] %vm1790_vm2, %v7233_v24  ;;  %4656 = vrot.lane.b32.xlu1 %v7309_v4, %s6317_s2  ;;  %4052 = vst.msk [vmem:[#allocation2 + $0x8] sm:$0xff] %vm1790_vm2, %v7235_v28  ;;  %p6245_p0 = scmp.ne.s32.totalorder %s4684_s4, %s6244_s8  ;;  %p6250_p2 = scmp.lt.s32.totalorder %s6244_s8, %s6244_s8 }
0x1d51   :  { %v3493_v27 = vpop.permute.xlu1 %3492  ;;  %4654 = vrot.lane.b32.xlu0 %v7311_v9, %s6317_s2 }
0x1d52   :  { %3501 = vst.msk [vmem:[#allocation2 + $0x38] sm:$0xff] %vm1235_vm1, %v3493_v27  ;;  %v3491_v29 = vpop.permute.xlu0 %3490  ;;  %p6251_p3 = por %p6250_p2, %p6249_p1 }
0x1d53   :  { %3500 = vst.msk [vmem:[#allocation2 + $0x28] sm:$0xff] %vm1235_vm1, %v3491_v29 }
0x1d54   :  { %4055 = vst.msk [vmem:[#allocation2 + $0x38] sm:$0xff] %vm1790_vm2, %v7241_v31  ;;  %4054 = vst.msk [vmem:[#allocation2 + $0x28] sm:$0xff] %vm1790_vm2, %v7243_v39  ;;  %p6252_p4 = pnand %p6251_p3, %p6245_p0 }
0x1d55   :  { %v2356_v6 = vpop.permute.xlu1 %2355 }
0x1d56   :  { %2367 = vst.msk [vmem:[#allocation2 + $0x10] sm:$0xff] %vm2365_vm3, %v2356_v6  ;;  %v2354_v24 = vpop.permute.xlu0 %2353 }
0x1d57   :  { %2366 = vst.msk [vmem:[#allocation2] sm:$0xff] %vm2365_vm3, %v2354_v24 }
0x1d59   :  { %v2360_v28 = vpop.permute.xlu1 %2359 }
0x1d5a   :  { %2369 = vst.msk [vmem:[#allocation2 + $0x30] sm:$0xff] %vm2365_vm3, %v2360_v28  ;;  %v2358_v18 = vpop.permute.xlu0 %2357 }
0x1d5b   :  { %2368 = vst.msk [vmem:[#allocation2 + $0x20] sm:$0xff] %vm2365_vm3, %v2358_v18 }
0x1d5d   :  { %v4653_v35 = vpop.permute.xlu1 %4652 }
0x1d5e   :  { %4663 = vst.msk [vmem:[#allocation6 + $0x8] sm:$0xff] %vm59_vm0, %v4653_v35  ;;  %v4651_v14 = vpop.permute.xlu0 %4650 }
0x1d5f   :  { %4662 = vst.msk [vmem:[#allocation6] sm:$0xff] %vm59_vm0, %v4651_v14 }
0x1db2   :  { %v4633_v31 = vpop.permute.xlu1 %4632 }
0x1db3   :  { %4643 = vst.msk [vmem:[#allocation4 + $0x8] sm:$0xff] %vm59_vm0, %v4633_v31  ;;  %v4631_v39 = vpop.permute.xlu0 %4630 }
0x1db4   :  { %4642 = vst.msk [vmem:[#allocation4] sm:$0xff] %vm59_vm0, %v4631_v39 }
0x1db6   :  { %v4617_v32 = vpop.permute.xlu1 %4616 }
0x1db7   :  { %4627 = vst.msk [vmem:[#allocation2 + $0x18] sm:$0xff] %vm2365_vm3, %v4617_v32  ;;  %v4615_v37 = vpop.permute.xlu0 %4614 }
0x1db8   :  { %4626 = vst.msk [vmem:[#allocation2 + $0x8] sm:$0xff] %vm2365_vm3, %v4615_v37 }
0x1dba   :  { %v4637_v30 = vpop.permute.xlu1 %4636 }
0x1dbb   :  { %4645 = vst.msk [vmem:[#allocation4 + $0x18] sm:$0xff] %vm59_vm0, %v4637_v30  ;;  %v4635_v33 = vpop.permute.xlu0 %4634 }
0x1dbc   :  { %4644 = vst.msk [vmem:[#allocation4 + $0x10] sm:$0xff] %vm59_vm0, %v4635_v33 }
0x1dbd   :  { %6255 = shalt.err (!%p6252_p4)
}
0x1dbe   :  { %s6256_s10 = scalar_lea.hbm %s7452_s6, 512 }
0x1dbf   :  { %p6257_p5 = scmp.ne.s32.totalorder %s7452_s6, %s6256_s10  ;;  %p6260_p6 = scmp.lt.u32.totalorder %s6256_s10, %s7452_s6 }
0x1dc1   :  { %p6262_p7 = pnand %p6260_p6, %p6257_p5 }
0x1dc3   :  { %6265 = shalt.err (!%p6262_p7)
}
0x1dc4   :  { %s6320_s16 = smov 128   ;;  %s6321_s17 = smov 8   ;;  %v4621_v60 = vpop.permute.xlu1 %4620  ;;  %v4619_v40 = vpop.permute.xlu0 %4618 }
0x1dc5   :  { %4689 = dma.vmem_to_hbm [thread:$0]  %s4684_s4, 512, %s7452_s6, [#allocation5], %s6320_s16, %s6320_s16, %s6321_s17   ;;  %4629 = vst.msk [vmem:[#allocation2 + $0x38] sm:$0xff] %vm2365_vm3, %v4621_v60  ;;  %4628 = vst.msk [vmem:[#allocation2 + $0x28] sm:$0xff] %vm2365_vm3, %v4619_v40 }
0x1dc6   :  { %s6322_s20 = smov [#allocation6]   ;;  %s6266_s22 = scalar_lea.vmem %s7393_s30, 1024 }
0x1dc7   :  { %s4695_s21 = sshll.u32 %s6322_s20, 4  ;;  %p6267_p8 = scmp.ne.s32.totalorder %s7393_s30, %s6266_s22  ;;  %s4696_s21 = int_to_ptr.vmem [resolvable:$true] %s4695_s21 }
0x1dc8   :  { %p6271_p9 = scmp.lt.s32.totalorder %s7393_s30, %s7393_s30  ;;  %p6272_p10 = scmp.lt.s32.totalorder %s6266_s22, %s6266_s22 }
0x1dca   :  { %p6273_p11 = por %p6272_p10, %p6271_p9 }
0x1dcc   :  { %p6274_p12 = pnand %p6273_p11, %p6267_p8 }
0x1dce   :  { %6277 = shalt.err (!%p6274_p12)
}
0x1dcf   :  { %s6278_s6 = scalar_lea.hbm %s7451_s5, 1024 }
0x1dd0   :  { %p6279_p13 = scmp.ne.s32.totalorder %s7451_s5, %s6278_s6  ;;  %p6282_p0 = scmp.lt.u32.totalorder %s6278_s6, %s7451_s5 }
0x1dd2   :  { %p6284_p1 = pnand %p6282_p0, %p6279_p13 }
0x1dd4   :  { %6287 = shalt.err (!%p6284_p1)
}
0x1dd5   :  { %s6323_s28 = smov 256   ;;  %s6324_s1 = smov 16   ;;  %v4657_v15 = vpop.permute.xlu1 %4656  ;;  %v4655_v42 = vpop.permute.xlu0 %4654 }
0x1dd6   :  { %4677 = dma.vmem_to_hbm [thread:$0]  %s7393_s30, 1024, %s7451_s5, [#allocation3], %s6323_s28, %s6323_s28, %s6324_s1   ;;  %4665 = vst.msk [vmem:[#allocation6 + $0x18] sm:$0xff] %vm59_vm0, %v4657_v15  ;;  %4664 = vst.msk [vmem:[#allocation6 + $0x10] sm:$0xff] %vm59_vm0, %v4655_v42 }
0x1dd7   :  { %s6288_s4 = scalar_lea.vmem %s4696_s21, 512  ;;  %p6293_p3 = scmp.lt.s32.totalorder %s4696_s21, %s4696_s21 }
0x1dd8   :  { %p6289_p2 = scmp.ne.s32.totalorder %s4696_s21, %s6288_s4  ;;  %p6294_p4 = scmp.lt.s32.totalorder %s6288_s4, %s6288_s4 }
0x1dda   :  { %p6295_p5 = por %p6294_p4, %p6293_p3 }
0x1ddc   :  { %p6296_p6 = pnand %p6295_p5, %p6289_p2 }
0x1dde   :  { %6299 = shalt.err (!%p6296_p6)
}
0x1ddf   :  { %s6300_s3 = scalar_lea.hbm %s7453_s7, 512 }
0x1de0   :  { %p6301_p7 = scmp.ne.s32.totalorder %s7453_s7, %s6300_s3  ;;  %p6304_p8 = scmp.lt.u32.totalorder %s6300_s3, %s7453_s7 }
0x1de2   :  { %p6306_p9 = pnand %p6304_p8, %p6301_p7 }
0x1de4   :  { %6309 = shalt.err (!%p6306_p9)
}
0x1de5   :  { %4701 = dma.vmem_to_hbm [thread:$0]  %s4696_s21, 512, %s7453_s7, [#allocation5], %s6320_s16, %s6320_s16, %s6321_s17  }
0x1de6   :  { %6310 = dma.done.wait [#allocation3], 1024  }
0x1de7   :  { %6311 = vsyncadd [#allocation3], 4294966272 }
0x1de8   :  { %6312 = dma.done.wait [#allocation5], 1024  }
0x1de9   :  { %6313 = vsyncadd [#allocation5], 4294966272 }
0x1dea   :  { %4711 = vsyncpa [#allocation3], 1 }
0x1deb   :  { %4712 = vsyncpa [#allocation5], 1 }

</bundles_post_ra>
